<compile_context>
chip_gen: v5e
topology: v5e:2x2
jax: 0.10.0
libtpu: 0.0.40
codegen_flags: <defaults>
</compile_context>

<pallas_src>
import functools
import math

import numpy as np
import jax
import jax.numpy as jnp
from jax.experimental import pallas as pl
from jax.experimental.pallas import tpu as pltpu

C_IN = 320    # ASPP input channels
C_MID = 256   # per-branch channels
C_OUT = 256   # output channels (final 1x1 conv: 512 -> 256)


def mobile_aspp_kernel(x_ref, w0_ref, b0_ref, wp_ref, bp_ref,
                       wfa_ref, wfp_ref, bf_ref, o_ref, *, bt):
    """One grid step processes `bt` batch elements.

    x_ref : (bt, C_IN, HWp)  bf16 activations (HWp = H*W padded to mult. of 128)
    w0_ref: (C_MID, C_IN)    bf16 folded aspp0 conv+bn weight
    b0_ref: (C_MID, 1)       f32  folded aspp0 bias (column -> lane broadcast)
    wp_ref: (C_MID, C_IN)    f32  folded image_pooling conv+bn weight (1/HW folded in)
    bp_ref: (C_MID, 1)       f32  folded image_pooling bias
    wfa_ref:(C_OUT, C_MID)   bf16 final conv weight, aspp0 half of the concat
    wfp_ref:(C_OUT, C_MID)   f32  final conv weight, pooling half of the concat
    bf_ref: (C_OUT, 1)       f32  folded final bias
    o_ref : (bt, C_OUT, HWp) bf16 output
    """
    hwp = x_ref.shape[-1]
    w0 = w0_ref[...]
    wfa = wfa_ref[...]
    b0 = b0_ref[...]

    # ---- image-pooling branch, batched across the bt tile -------------------
    # Padded lanes are zero and 1/HW is folded into wp, so plain sums are exact.
    # GAP accumulates in f32 (lane reduction over bf16 inputs).
    cols = [jnp.sum(x_ref[i], axis=-1, keepdims=True, dtype=jnp.float32)
            for i in range(bt)]                                       # bt x (C_IN, 1)
    pooled = cols[0] if bt == 1 else jnp.concatenate(cols, axis=-1)   # (C_IN, bt)
    pf = jnp.maximum(
        jnp.dot(wp_ref[...], pooled, preferred_element_type=jnp.float32)
        + bp_ref[...], 0.0)                                           # (C_MID, bt)
    # Pooling half of the final conv + final bias: one column per batch element,
    # constant over (H, W) -- this replaces the explicit channel concat.
    pcb = (jnp.dot(wfp_ref[...], pf, preferred_element_type=jnp.float32)
           + bf_ref[...])                                             # (C_OUT, bt)

    # Hoist the aspp0-bias lane broadcast out of the unrolled loop (JAX does not
    # CSE broadcast_in_dim); for bt == 1 the implicit broadcast in the add is fine.
    b0_add = jnp.broadcast_to(b0, (b0.shape[0], hwp)) if bt > 1 else b0

    for i in range(bt):  # static unroll; bt is kept small by the VMEM budget
        x = x_ref[i]                                                  # (C_IN, HWp) bf16
        # aspp0 branch: conv+bn -> relu (bf16 MXU operands, f32 accumulate)
        a = jnp.maximum(
            jnp.dot(w0, x, preferred_element_type=jnp.float32) + b0_add, 0.0
        ).astype(jnp.bfloat16)                                        # (C_MID, HWp)
        # final conv on the (virtual) concat + bn; pooling contribution as a column
        pcb_i = pcb if bt == 1 else pcb[:, i:i + 1]                   # (C_OUT, 1)
        o = jnp.dot(wfa, a, preferred_element_type=jnp.float32) + pcb_i
        # TODO(synk): Dropout2d(p=0.1) is identity in eval mode; training-mode
        # stochastic channel dropout is not implemented here.
        o_ref[i] = jnp.maximum(o, 0.0).astype(o_ref.dtype)


def _fold_bn(w, bn_stats, eps):
    """Fold eval-mode BatchNorm into a 1x1 conv: (Cout,Cin) weight, (Cout,) bias."""
    gamma, beta, mean, var = bn_stats
    scale = gamma / jnp.sqrt(var + eps)
    return w * scale[:, None], beta - scale * mean


_WEIGHT_VMEM_BYTES = 2 * (                 # default pipeline double-buffers these
    C_MID * C_IN * 2 +                     # w0   bf16
    C_OUT * C_MID * 2 +                    # wfa  bf16
    C_MID * C_IN * 4 +                     # wp   f32
    C_OUT * C_MID * 4 +                    # wfp  f32
    (2 * C_MID + C_OUT) * 4)               # biases f32


def _block_vmem_bytes(bt, hwp, io_itemsize=2):
    """Conservative per-grid-step VMEM estimate for a given batch tile."""
    f32 = 4
    in_blk = bt * C_IN * hwp * io_itemsize
    out_blk = bt * C_OUT * hwp * io_itemsize
    gap_tmp = C_IN * hwp * f32                               # f32-accum GAP reduce temp
    per_i = hwp * (C_MID * f32 + C_MID * 2 + C_OUT * f32)    # a_f32, a_bf16, o_f32
    bias_b = C_MID * hwp * f32                               # hoisted b0 broadcast
    # Pipelined blocks are double-buffered; per-iteration temps are counted for
    # every unrolled iteration (static unroll does not bound live ranges).
    return 2 * (in_blk + out_blk) + bt * (gap_tmp + per_i) + bias_b


def _vmem_limit_bytes():
    """~80% of physical VMEM: leaves Mosaic headroom on v7x (64 MiB/TC) while
    letting v5e/v6e (128 MiB) use tiles well past the 16/32 MiB scoped default."""
    try:
        cap = pltpu.get_tpu_info().vmem_capacity_bytes
        return max(int(cap * 0.8), 32 * 1024 * 1024)
    except Exception:
        return 48 * 1024 * 1024   # conservative fallback, safe on every generation


def _tensorcores_per_chip():
    try:
        kind = jax.devices()[0].device_kind.lower()
    except Exception:
        return 1
    return 2 if ("v7" in kind or "7x" in kind) else 1


def _pick_bt(batch, hwp, vmem_limit, tc_per_chip, io_itemsize=2):
    """Largest batch tile fitting the VMEM budget while keeping enough grid steps
    for DMA/compute overlap (>= 4 steps on 2-TensorCore chips, >= 2 otherwise)."""
    budget = int(vmem_limit * 0.75) - _WEIGHT_VMEM_BYTES
    min_steps = min(batch, 4 if tc_per_chip > 1 else 2)
    best = 1
    for bt in range(1, batch + 1):
        if batch % bt != 0:
            continue
        if batch // bt < min_steps:
            break
        if _block_vmem_bytes(bt, hwp, io_itemsize) <= budget:
            best = bt
    # TODO(synk): if even bt=1 exceeds the budget (very large H*W on v7x), this
    # kernel needs a spatial grid axis plus a GAP pre-pass; not implemented.
    return best


def mobile_aspp(x, params, *, eps=1e-5, bt=None,
                compute_dtype=jnp.bfloat16, out_dtype=None):
    """x: (B, 320, H, W).  Returns (B, 256, H, W) in `out_dtype` (default bf16)."""
    B, c_in, H, W = x.shape
    assert c_in == C_IN, f"expected {C_IN} input channels, got {c_in}"
    out_dtype = compute_dtype if out_dtype is None else out_dtype

    # Fold eval-mode BatchNorms into the 1x1 convs.
    w0, b0 = _fold_bn(params["w0"], params["bn0"], eps)    # (256, 320), (256,)
    wp, bp = _fold_bn(params["wp"], params["bnp"], eps)    # (256, 320), (256,)
    wf, bf = _fold_bn(params["wf"], params["bnf"], eps)    # (256, 512), (256,)
    wfp = wf[:, :C_MID]     # half acting on the pooling branch of the concat
    wfa = wf[:, C_MID:]     # half acting on the aspp0 branch

    HW = H * W
    HWp = ((HW + 127) // 128) * 128

    # Big-matmul weights travel in bf16 (match the bf16 activations, avoid in-kernel
    # promotion temps); the tiny pooling-branch weights/biases stay f32.
    w0 = w0.astype(compute_dtype)
    wfa = wfa.astype(compute_dtype)
    wp = (wp * (1.0 / HW)).astype(jnp.float32)   # fold the GAP mean's 1/HW into wp
    wfp = wfp.astype(jnp.float32)
    b0c = b0.reshape(C_MID, 1).astype(jnp.float32)
    bpc = bp.reshape(C_MID, 1).astype(jnp.float32)
    bfc = bf.reshape(C_OUT, 1).astype(jnp.float32)

    # Lane-dense spatial layout (B, C, H*W), last dim padded to a multiple of 128.
    # Ideally the producer already emits bf16; this cast is demo plumbing.
    x_flat = x.reshape(B, C_IN, HW).astype(compute_dtype)
    if HWp != HW:
        # TODO(synk): for ragged H*W, mask the tail inside the kernel instead of
        # paying an extra HBM round-trip for this pad.
        x_flat = jnp.pad(x_flat, ((0, 0), (0, 0), (0, HWp - HW)))

    io_itemsize = np.dtype(compute_dtype).itemsize
    vmem_limit = _vmem_limit_bytes()
    if bt is None:
        bt = _pick_bt(B, HWp, vmem_limit, _tensorcores_per_chip(), io_itemsize)

    kernel = functools.partial(mobile_aspp_kernel, bt=bt)

    cost = pl.CostEstimate(
        flops=2 * (C_MID * C_IN + C_OUT * C_MID) * B * (HW + 1),
        transcendentals=0,
        bytes_accessed=(B * HWp * (C_IN * io_itemsize
                                   + C_OUT * np.dtype(out_dtype).itemsize)
                        + (C_MID * C_IN + C_OUT * C_MID) * (io_itemsize + 4)
                        + (2 * C_MID + C_OUT) * 4),
    )

    out = pl.pallas_call(
        kernel,
        out_shape=jax.ShapeDtypeStruct((B, C_OUT, HWp), out_dtype),
        grid_spec=pltpu.PrefetchScalarGridSpec(
            num_scalar_prefetch=0,
            grid=(B // bt,),
            in_specs=[
                pl.BlockSpec((bt, C_IN, HWp), lambda g: (g, 0, 0)),   # x (bf16)
                pl.BlockSpec((C_MID, C_IN), lambda g: (0, 0)),        # w0 (bf16)
                pl.BlockSpec((C_MID, 1), lambda g: (0, 0)),           # b0 (f32)
                pl.BlockSpec((C_MID, C_IN), lambda g: (0, 0)),        # wp (f32)
                pl.BlockSpec((C_MID, 1), lambda g: (0, 0)),           # bp (f32)
                pl.BlockSpec((C_OUT, C_MID), lambda g: (0, 0)),       # wfa (bf16)
                pl.BlockSpec((C_OUT, C_MID), lambda g: (0, 0)),       # wfp (f32)
                pl.BlockSpec((C_OUT, 1), lambda g: (0, 0)),           # bf (f32)
            ],
            out_specs=pl.BlockSpec((bt, C_OUT, HWp), lambda g: (g, 0, 0)),
        ),
        compiler_params=pltpu.CompilerParams(
            dimension_semantics=("parallel",),
            vmem_limit_bytes=vmem_limit,
        ),
        cost_estimate=cost,
    )(x_flat, w0, b0c, wp, bpc, wfa, wfp, bfc)

    return out[..., :HW].reshape(B, C_OUT, H, W)


def mobile_aspp_ref(x, params, eps=1e-5):
    """Pure-JAX reference mirroring the PyTorch MobileASPP forward (eval mode)."""
    B, _, H, W = x.shape

    def bn(y, stats):
        g, b, m, v = stats
        return (y - m[None, :, None, None]) * (
            g / jnp.sqrt(v + eps)
        )[None, :, None, None] + b[None, :, None, None]

    def conv1x1(y, w):  # w: (Cout, Cin)
        return jnp.einsum("bchw,oc->bohw", y, w)

    # image_pooling: GAP -> conv -> bn -> relu; bilinear upsample of a 1x1 map is a
    # broadcast (exact for align_corners=True).
    p = jnp.mean(x, axis=(2, 3), keepdims=True)                  # (B, 320, 1, 1)
    p = jnp.maximum(bn(conv1x1(p, params["wp"]), params["bnp"]), 0.0)
    p = jnp.broadcast_to(p, (B, C_MID, H, W))
    # aspp0 branch
    a = jnp.maximum(bn(conv1x1(x, params["w0"]), params["bn0"]), 0.0)
    # concat -> conv -> bn -> relu (dropout = identity in eval)
    cat = jnp.concatenate([p, a], axis=1)                         # (B, 512, H, W)
    return jnp.maximum(bn(conv1x1(cat, params["wf"]), params["bnf"]), 0.0)


if __name__ == "__main__":
    key = jax.random.PRNGKey(0)
    B, H, W = 2, 16, 16  # small but lane-dense: H*W = 256

    keys = jax.random.split(key, 8)
    x = jax.random.normal(keys[0], (B, C_IN, H, W), dtype=jnp.float32)

    def mk_bn(k, c):
        kg, kb, km, kv = jax.random.split(k, 4)
        gamma = 1.0 + 0.1 * jax.random.normal(kg, (c,), dtype=jnp.float32)
        beta = 0.1 * jax.random.normal(kb, (c,), dtype=jnp.float32)
        mean = 0.1 * jax.random.normal(km, (c,), dtype=jnp.float32)
        var = jnp.abs(jax.random.normal(kv, (c,), dtype=jnp.float32)) + 0.5
        return (gamma, beta, mean, var)

    # Conv2d(.., .., 1, bias=False) weights, squeezed (Cout, Cin, 1, 1) -> (Cout, Cin).
    params = {
        "w0": jax.random.normal(keys[1], (C_MID, C_IN), dtype=jnp.float32)
        * (1.0 / math.sqrt(C_IN)),
        "bn0": mk_bn(keys[2], C_MID),
        "wp": jax.random.normal(keys[3], (C_MID, C_IN), dtype=jnp.float32)
        * (1.0 / math.sqrt(C_IN)),
        "bnp": mk_bn(keys[4], C_MID),
        "wf": jax.random.normal(keys[5], (C_OUT, 2 * C_MID), dtype=jnp.float32)
        * (1.0 / math.sqrt(2 * C_MID)),
        "bnf": mk_bn(keys[6], C_OUT),
    }

    out = jax.block_until_ready(mobile_aspp(x, params))
    ref = mobile_aspp_ref(x, params)

    assert out.shape == (B, C_OUT, H, W)
    out_f32 = out.astype(jnp.float32)
    # Tolerance covers bf16 I/O + default-precision (bf16-pass) MXU matmuls vs XLA einsum.
    assert jnp.allclose(out_f32, ref, atol=5e-2, rtol=5e-2), (
        "mismatch vs reference: max abs err = "
        f"{float(jnp.max(jnp.abs(out_f32 - ref)))}"
    )
    print("KERNEL_OK")
</pallas_src>

<mosaic_0001>
module attributes {stable_mosaic.version = 11 : i64} {
  func.func @mobile_aspp_kernel(%arg0: i32, %arg1: memref<1x320x256xbf16, #tpu.memory_space<vmem>>, %arg2: memref<256x320xbf16, #tpu.memory_space<vmem>>, %arg3: memref<256x1xf32, #tpu.memory_space<vmem>>, %arg4: memref<256x320xf32, #tpu.memory_space<vmem>>, %arg5: memref<256x1xf32, #tpu.memory_space<vmem>>, %arg6: memref<256x256xbf16, #tpu.memory_space<vmem>>, %arg7: memref<256x256xf32, #tpu.memory_space<vmem>>, %arg8: memref<256x1xf32, #tpu.memory_space<vmem>>, %arg9: memref<1x256x256xbf16, #tpu.memory_space<vmem>>) attributes {dimension_semantics = [#tpu.dimension_semantics<parallel>], iteration_bounds = array<i64: 2>, scalar_prefetch = 0 : i64, scratch_operands = 0 : i64, tpu.core_type = #tpu.core_type<tc>, window_params = [{transform_indices = @transform_0, window_bounds = array<i64: 1, 320, 256>}, {pipeline_mode = #tpu.pipeline_mode<synchronous>, transform_indices = @transform_1, window_bounds = array<i64: 256, 320>}, {pipeline_mode = #tpu.pipeline_mode<synchronous>, transform_indices = @transform_2, window_bounds = array<i64: 256, 1>}, {pipeline_mode = #tpu.pipeline_mode<synchronous>, transform_indices = @transform_3, window_bounds = array<i64: 256, 320>}, {pipeline_mode = #tpu.pipeline_mode<synchronous>, transform_indices = @transform_4, window_bounds = array<i64: 256, 1>}, {pipeline_mode = #tpu.pipeline_mode<synchronous>, transform_indices = @transform_5, window_bounds = array<i64: 256, 256>}, {pipeline_mode = #tpu.pipeline_mode<synchronous>, transform_indices = @transform_6, window_bounds = array<i64: 256, 256>}, {pipeline_mode = #tpu.pipeline_mode<synchronous>, transform_indices = @transform_7, window_bounds = array<i64: 256, 1>}, {transform_indices = @transform_8, window_bounds = array<i64: 1, 256, 256>}]} {
    %c0 = arith.constant 0 : index
    %c0_0 = arith.constant 0 : index
    %0 = vector.load %arg2[%c0, %c0_0] : memref<256x320xbf16, #tpu.memory_space<vmem>>, vector<256x320xbf16>
    %c0_1 = arith.constant 0 : index
    %c0_2 = arith.constant 0 : index
    %1 = vector.load %arg6[%c0_1, %c0_2] : memref<256x256xbf16, #tpu.memory_space<vmem>>, vector<256x256xbf16>
    %c0_3 = arith.constant 0 : index
    %c0_4 = arith.constant 0 : index
    %2 = vector.load %arg3[%c0_3, %c0_4] : memref<256x1xf32, #tpu.memory_space<vmem>>, vector<256x1xf32>
    %c0_5 = arith.constant 0 : index
    %c0_6 = arith.constant 0 : index
    %c0_7 = arith.constant 0 : index
    %3 = vector.load %arg1[%c0_5, %c0_6, %c0_7] : memref<1x320x256xbf16, #tpu.memory_space<vmem>>, vector<1x320x256xbf16>
    %4 = vector.shape_cast %3 : vector<1x320x256xbf16> to vector<320x256xbf16>
    %5 = arith.extf %4 : vector<320x256xbf16> to vector<320x256xf32>
    %cst = arith.constant dense<0.000000e+00> : vector<320xf32>
    %6 = vector.multi_reduction <add>, %5, %cst [1] : vector<320x256xf32> to vector<320xf32>
    %7 = vector.shape_cast %6 : vector<320xf32> to vector<320x1xf32>
    %c0_8 = arith.constant 0 : index
    %c0_9 = arith.constant 0 : index
    %8 = vector.load %arg4[%c0_8, %c0_9] : memref<256x320xf32, #tpu.memory_space<vmem>>, vector<256x320xf32>
    %cst_10 = arith.constant dense<0.000000e+00> : vector<256x1xf32>
    %9 = tpu.matmul %8, %7, %cst_10 {dimension_numbers = #tpu.dot_dimension_numbers<[1], [0], [0], [1], [0, 0, 1, 1], [], []>} : vector<256x320xf32>, vector<320x1xf32>, vector<256x1xf32> -> vector<256x1xf32>
    %c0_11 = arith.constant 0 : index
    %c0_12 = arith.constant 0 : index
    %10 = vector.load %arg5[%c0_11, %c0_12] : memref<256x1xf32, #tpu.memory_space<vmem>>, vector<256x1xf32>
    %11 = arith.addf %9, %10 : vector<256x1xf32>
    %cst_13 = arith.constant 0.000000e+00 : f32
    %12 = vector.broadcast %cst_13 : f32 to vector<256x1xf32>
    %13 = arith.maximumf %11, %12 : vector<256x1xf32>
    %c0_14 = arith.constant 0 : index
    %c0_15 = arith.constant 0 : index
    %14 = vector.load %arg7[%c0_14, %c0_15] : memref<256x256xf32, #tpu.memory_space<vmem>>, vector<256x256xf32>
    %cst_16 = arith.constant dense<0.000000e+00> : vector<256x1xf32>
    %15 = tpu.matmul %14, %13, %cst_16 {dimension_numbers = #tpu.dot_dimension_numbers<[1], [0], [0], [1], [0, 0, 1, 1], [], []>} : vector<256x256xf32>, vector<256x1xf32>, vector<256x1xf32> -> vector<256x1xf32>
    %c0_17 = arith.constant 0 : index
    %c0_18 = arith.constant 0 : index
    %16 = vector.load %arg8[%c0_17, %c0_18] : memref<256x1xf32, #tpu.memory_space<vmem>>, vector<256x1xf32>
    %17 = arith.addf %15, %16 : vector<256x1xf32>
    %c0_19 = arith.constant 0 : index
    %c0_20 = arith.constant 0 : index
    %c0_21 = arith.constant 0 : index
    %18 = vector.load %arg1[%c0_19, %c0_20, %c0_21] : memref<1x320x256xbf16, #tpu.memory_space<vmem>>, vector<1x320x256xbf16>
    %19 = vector.shape_cast %18 : vector<1x320x256xbf16> to vector<320x256xbf16>
    %cst_22 = arith.constant dense<0.000000e+00> : vector<256x256xf32>
    %20 = tpu.matmul %0, %19, %cst_22 {dimension_numbers = #tpu.dot_dimension_numbers<[1], [0], [0], [1], [0, 0, 1, 1], [], []>} : vector<256x320xbf16>, vector<320x256xbf16>, vector<256x256xf32> -> vector<256x256xf32>
    %21 = vector.broadcast %2 : vector<256x1xf32> to vector<256x256xf32>
    %22 = arith.addf %20, %21 : vector<256x256xf32>
    %cst_23 = arith.constant 0.000000e+00 : f32
    %23 = vector.broadcast %cst_23 : f32 to vector<256x256xf32>
    %24 = arith.maximumf %22, %23 : vector<256x256xf32>
    %25 = arith.truncf %24 : vector<256x256xf32> to vector<256x256xbf16>
    %cst_24 = arith.constant dense<0.000000e+00> : vector<256x256xf32>
    %26 = tpu.matmul %1, %25, %cst_24 {dimension_numbers = #tpu.dot_dimension_numbers<[1], [0], [0], [1], [0, 0, 1, 1], [], []>} : vector<256x256xbf16>, vector<256x256xbf16>, vector<256x256xf32> -> vector<256x256xf32>
    %27 = vector.broadcast %17 : vector<256x1xf32> to vector<256x256xf32>
    %28 = arith.addf %26, %27 : vector<256x256xf32>
    %cst_25 = arith.constant 0.000000e+00 : f32
    %29 = vector.broadcast %cst_25 : f32 to vector<256x256xf32>
    %30 = arith.maximumf %28, %29 : vector<256x256xf32>
    %31 = arith.truncf %30 : vector<256x256xf32> to vector<256x256xbf16>
    %c0_26 = arith.constant 0 : index
    %c0_27 = arith.constant 0 : index
    %c0_28 = arith.constant 0 : index
    %32 = vector.load %arg9[%c0_26, %c0_27, %c0_28] : memref<1x256x256xbf16, #tpu.memory_space<vmem>>, vector<1x256x256xbf16>
    %33 = vector.shape_cast %32 : vector<1x256x256xbf16> to vector<256x256xbf16>
    %34 = vector.shape_cast %31 : vector<256x256xbf16> to vector<1x256x256xbf16>
    tpu.vector_store %arg9[%c0_26, %c0_27, %c0_28], %34 {strides = array<i32>} : memref<1x256x256xbf16, #tpu.memory_space<vmem>>, vector<1x256x256xbf16>,
    return
  }
  func.func @transform_0(%arg0: i32) -> (i32, i32, i32) {
    %c0_i32 = arith.constant 0 : i32
    %c0_i32_0 = arith.constant 0 : i32
    %c0_i32_1 = arith.constant 0 : i32
    return %arg0, %c0_i32, %c0_i32_0 : i32, i32, i32
  }
  func.func @transform_1(%arg0: i32) -> (i32, i32) {
    %c0_i32 = arith.constant 0 : i32
    %c0_i32_0 = arith.constant 0 : i32
    %c0_i32_1 = arith.constant 0 : i32
    return %c0_i32, %c0_i32_0 : i32, i32
  }
  func.func @transform_2(%arg0: i32) -> (i32, i32) {
    %c0_i32 = arith.constant 0 : i32
    %c0_i32_0 = arith.constant 0 : i32
    %c0_i32_1 = arith.constant 0 : i32
    return %c0_i32, %c0_i32_0 : i32, i32
  }
  func.func @transform_3(%arg0: i32) -> (i32, i32) {
    %c0_i32 = arith.constant 0 : i32
    %c0_i32_0 = arith.constant 0 : i32
    %c0_i32_1 = arith.constant 0 : i32
    return %c0_i32, %c0_i32_0 : i32, i32
  }
  func.func @transform_4(%arg0: i32) -> (i32, i32) {
    %c0_i32 = arith.constant 0 : i32
    %c0_i32_0 = arith.constant 0 : i32
    %c0_i32_1 = arith.constant 0 : i32
    return %c0_i32, %c0_i32_0 : i32, i32
  }
  func.func @transform_5(%arg0: i32) -> (i32, i32) {
    %c0_i32 = arith.constant 0 : i32
    %c0_i32_0 = arith.constant 0 : i32
    %c0_i32_1 = arith.constant 0 : i32
    return %c0_i32, %c0_i32_0 : i32, i32
  }
  func.func @transform_6(%arg0: i32) -> (i32, i32) {
    %c0_i32 = arith.constant 0 : i32
    %c0_i32_0 = arith.constant 0 : i32
    %c0_i32_1 = arith.constant 0 : i32
    return %c0_i32, %c0_i32_0 : i32, i32
  }
  func.func @transform_7(%arg0: i32) -> (i32, i32) {
    %c0_i32 = arith.constant 0 : i32
    %c0_i32_0 = arith.constant 0 : i32
    %c0_i32_1 = arith.constant 0 : i32
    return %c0_i32, %c0_i32_0 : i32, i32
  }
  func.func @transform_8(%arg0: i32) -> (i32, i32, i32) {
    %c0_i32 = arith.constant 0 : i32
    %c0_i32_0 = arith.constant 0 : i32
    %c0_i32_1 = arith.constant 0 : i32
    return %arg0, %c0_i32, %c0_i32_0 : i32, i32, i32
  }
}

</mosaic_0001>

<bundles_post_ra>
// kernel: tpu_custom_call.1
= control target key start
LH: loop header
LB: loop body
LE: loop exit
PB: predicated region body
PF: predicated region fallthrough
CT: control target
= control target key end

     0   :  { %13 = vsyncpa [#allocation3], 0  ;;  %s7286_s0 = inlined_call_operand.vmem [shape: bf16[2,320,256], index: 0, kind: input, shape index: {}]   ;;  %s7287_s1 = inlined_call_operand.vmem [shape: bf16[256,320], index: 1, kind: input, shape index: {}]   ;;  %s7288_s2 = inlined_call_operand.vmem [shape: f32[256,1], index: 2, kind: input, shape index: {}]   ;;  %s7289_s3 = inlined_call_operand.vmem [shape: f32[256,320], index: 3, kind: input, shape index: {}]   ;;  %s7290_s4 = inlined_call_operand.vmem [shape: f32[256,1], index: 4, kind: input, shape index: {}]   ;;  %s7291_s5 = inlined_call_operand.vmem [shape: bf16[256,256], index: 5, kind: input, shape index: {}]   ;;  %s7292_s6 = inlined_call_operand.vmem [shape: f32[256,256], index: 6, kind: input, shape index: {}]   ;;  %s7293_s7 = inlined_call_operand.vmem [shape: f32[256,1], index: 7, kind: input, shape index: {}]   ;;  %s7294_s8 = inlined_call_operand.hbm [shape: bf16[2,256,256], index: 8, kind: output, shape index: {}]  }
   0x1   :  { %15 = vsyncpa [#allocation3 + $0x1], 0  ;;  %s4625_s27 = smov 0   ;;  %s4627_s28 = smov 0  }
   0x2   :  { %s4629_s29 = smov 0   ;;  %s4631_s30 = smov 0  }
   0x3 LB: > { %s4646_s9 = sadd.s32 4294967295, %s4575_s30   ;;  %s3751_s10 = sadd.s32 4294967294, %s4575_s30   ;;  %s4575_s30 = sphi %s4631_s30, %s7481_s30   ;;  %s4571_s29 = sphi %s4629_s29, %s7480_s29   ;;  %s4567_s28 = sphi %s4627_s28, %s7479_s28   ;;  %s4563_s27 = sphi %s4625_s27, %s7478_s27  }
   0x4   : > { %s4650_s11 = sadd.s32 1, %s4575_s30   ;;  %s201_s12 = sadd.s32 1, %s4571_s29 }
   0x5   : > { %s198_s13 = ssub.s32 %s4575_s30, %s4650_s11  ;;  %p211_p0 = scmp.ne.s32.totalorder %s4571_s29, %s4567_s28 }
   0x6   : > { %p199_p1 = scmp.eq.s32.totalorder %s198_s13, 0  ;;  %p212_p2 = scmp.eq.s32.totalorder %s4646_s9, 1 }
   0x7   : > { %p217_p3 = scmp.ne.s32.totalorder %s4567_s28, %s4563_s27  ;;  %p218_p4 = scmp.eq.s32.totalorder %s3751_s10, 1 }
   0x8   : > { %s4661_s14 = scalar_select %p199_p1, %s4571_s29, %s201_s12  }
   0x9   : > { %p4663_p5 = por %p212_p2, %p211_p0  ;;  %p4667_p6 = por %p218_p4, %p217_p3 }
   0xa   : > { %p3754_p7 = scmp.ge.s32.totalorder %s4575_s30, 1  ;;  %p265_p8 = scmp.lt.s32.totalorder %s4575_s30, 3 }
   0xc   : > { %p266_p9 = pnand %p3754_p7, %p265_p8 }
   0xe   : > { %269 = sbr.rel (%p266_p9) target bundleno = 1644 (0x66c), region = 52 }
  0x13   : > { %p299_p10 = scmp.lt.s32.totalorder %s4646_s9, 1  ;;  %vm801_vm0 = vcmask 523264   ;;  %s296_s13 = sand.u32 1, %s4567_s28  }
  0x14   : > { %s4426_s25 = sshll.u32 %s4646_s9, 8  ;;  %s4533_s24 = scalar_lea.hbm %s7294_s8, 512 }
  0x15   : > { %s300_s17 = scalar_select %p299_p10, %s4646_s9, 1 }
  0x16   : > { %s3685_s10 = scalar_lea.hbm %s7294_s8, %s4426_s25  ;;  %s3674_s9 = scalar_lea.sflag [#allocation3], %s296_s13 }
  0x17   : > { %s4467_s18 = smul.u32 320, %s300_s17  ;;  %s3755_s17 = sshll.u32 %s296_s13, 8 }
  0x19   : > { %s4678_s21 = scalar_lea.vmem %s7286_s0, %s4467_s18  ;;  %s7104_s18 = scalar_lea.vmem [#allocation2], %s3755_s17 }
  0x1a   : > { %v472_v0 = vld [vmem:[%s4678_s21 + $0x138] sm:$0xff]  ;;  %v447_v1 = vld [vmem:[%s4678_s21 + $0x70] sm:$0xff]  ;;  %v469_v10 = vld [vmem:[%s4678_s21 + $0x120] sm:$0xff]  ;;  %s3686_s12 = sshll.u32 %s7104_s18, 4  ;;  %s3688_s17 = sshll.u32 %s3685_s10, 4  ;;  %s3687_s12 = int_to_ptr.vmem [resolvable:$true] %s3686_s12  ;;  %s3689_s17 = int_to_ptr.hbm [resolvable:$true] %s3688_s17 }
  0x1b   : > { %v448_v2 = vld [vmem:[%s4678_s21 + $0x78] sm:$0xff]  ;;  %v551_v3 = vunpack.c.l.bf16 %v472_v0  ;;  %v552_v4 = vunpack.c.h.bf16 %v472_v0  ;;  %v501_v5 = vunpack.c.l.bf16 %v447_v1  ;;  %v502_v6 = vunpack.c.h.bf16 %v447_v1  ;;  %v471_v9 = vld [vmem:[%s4678_s21 + $0x130] sm:$0xff]  ;;  %v470_v13 = vld [vmem:[%s4678_s21 + $0x128] sm:$0xff]  ;;  %s4527_s19 = sshra.s32 %s3689_s17, 4  ;;  %s4528_s19 = int_to_ptr.hbm [resolvable:$true] %s4527_s19 }
  0x1c   : > { %v503_v7 = vunpack.c.l.bf16 %v448_v2  ;;  %v504_v8 = vunpack.c.h.bf16 %v448_v2  ;;  %v549_v15 = vunpack.c.l.bf16 %v471_v9  ;;  %v550_v16 = vunpack.c.h.bf16 %v471_v9  ;;  %v468_v24 = vld [vmem:[%s4678_s21 + $0x118] sm:$0xff]  ;;  %v446_v25 = vld [vmem:[%s4678_s21 + $0x68] sm:$0xff]  ;;  %v467_v36 = vld [vmem:[%s4678_s21 + $0x110] sm:$0xff]  ;;  %s4529_s20 = scalar_lea.hbm %s4528_s19, 256  ;;  %p4534_p0 = scmp.lt.s32.totalorder %s4528_s19, %s7294_s8 }
  0x1d   : > { %v670_v11 = vadd.f32 %v552_v4, %v551_v3  ;;  %v595_v12 = vadd.f32 %v502_v6, %v501_v5  ;;  %v545_v17 = vunpack.c.l.bf16 %v469_v10  ;;  %v546_v18 = vunpack.c.h.bf16 %v469_v10  ;;  %v464_v26 = vld [vmem:[%s4678_s21 + $0xf8] sm:$0xff]  ;;  %v445_v37 = vld [vmem:[%s4678_s21 + $0x60] sm:$0xff]  ;;  %v463_v38 = vld [vmem:[%s4678_s21 + $0xf0] sm:$0xff]  ;;  %p4530_p11 = scmp.ne.s32.totalorder %s4528_s19, %s4529_s20  ;;  %p4535_p1 = scmp.lt.s32.totalorder %s4533_s24, %s4529_s20 }
  0x1e   : > { %v598_v14 = vadd.f32 %v504_v8, %v503_v7  ;;  %v547_v19 = vunpack.c.l.bf16 %v470_v13  ;;  %v548_v20 = vunpack.c.h.bf16 %v470_v13  ;;  %v667_v21 = vadd.f32 %v550_v16, %v549_v15  ;;  %v466_v48 = vld [vmem:[%s4678_s21 + $0x108] sm:$0xff]  ;;  %v444_v49 = vld [vmem:[%s4678_s21 + $0x58] sm:$0xff]  ;;  %v465_v60 = vld [vmem:[%s4678_s21 + $0x100] sm:$0xff] }
  0x1f   : > { %671 = vadd.xlane.f32.xlu0 %v670_v11  ;;  %596 = vadd.xlane.f32.xlu2 %v595_v12  ;;  %v661_v22 = vadd.f32 %v546_v18, %v545_v17  ;;  %v543_v27 = vunpack.c.l.bf16 %v468_v24  ;;  %v544_v28 = vunpack.c.h.bf16 %v468_v24  ;;  %v499_v29 = vunpack.c.l.bf16 %v446_v25  ;;  %v462_v50 = vld [vmem:[%s4678_s21 + $0xe8] sm:$0xff]  ;;  %v443_v61 = vld [vmem:[%s4678_s21 + $0x50] sm:$0xff]  ;;  %v461_v62 = vld [vmem:[%s4678_s21 + $0xe0] sm:$0xff]  ;;  %p4531_p12 = pnand %p4530_p11, %p4663_p5  ;;  %p4536_p2 = por %p4535_p1, %p4534_p0 }
  0x20   : > { %599 = vadd.xlane.f32.xlu1 %v598_v14  ;;  %v664_v23 = vadd.f32 %v548_v20, %v547_v19  ;;  %v500_v30 = vunpack.c.h.bf16 %v446_v25  ;;  %v535_v31 = vunpack.c.l.bf16 %v464_v26  ;;  %v536_v32 = vunpack.c.h.bf16 %v464_v26  ;;  %v442_v8 = vld [vmem:[%s4678_s21 + $0x48] sm:$0xff]  ;;  %v441_v9 = vld [vmem:[%s4678_s21 + $0x40] sm:$0xff]  ;;  %v460_v10 = vld [vmem:[%s4678_s21 + $0xd8] sm:$0xff] }
  0x21   : > { %v658_v33 = vadd.f32 %v544_v28, %v543_v27  ;;  %v541_v39 = vunpack.c.l.bf16 %v467_v36  ;;  %v542_v40 = vunpack.c.h.bf16 %v467_v36  ;;  %v497_v41 = vunpack.c.l.bf16 %v445_v37  ;;  %v459_v20 = vld [vmem:[%s4678_s21 + $0xd0] sm:$0xff]  ;;  %p4532_p13 = pneg %p4531_p12 }
  0x22   : > { %v592_v34 = vadd.f32 %v500_v30, %v499_v29  ;;  %v646_v35 = vadd.f32 %v536_v32, %v535_v31  ;;  %v498_v42 = vunpack.c.h.bf16 %v445_v37  ;;  %v533_v43 = vunpack.c.l.bf16 %v463_v38  ;;  %v439_v32 = vld [vmem:[%s4678_s21 + $0x30] sm:$0xff] }
  0x23   : > { %v534_v44 = vunpack.c.h.bf16 %v463_v38  ;;  %v655_v45 = vadd.f32 %v542_v40, %v541_v39  ;;  %v539_v51 = vunpack.c.l.bf16 %v466_v48  ;;  %v540_v52 = vunpack.c.h.bf16 %v466_v48  ;;  %p4537_p3 = pnand %p4536_p2, %p4532_p13 }
  0x24   : > { %v589_v46 = vadd.f32 %v498_v42, %v497_v41  ;;  %v495_v53 = vunpack.c.l.bf16 %v444_v49  ;;  %v496_v54 = vunpack.c.h.bf16 %v444_v49  ;;  %v531_v55 = vunpack.c.l.bf16 %v462_v50 }
  0x25   : > { %v643_v47 = vadd.f32 %v534_v44, %v533_v43  ;;  %v532_v56 = vunpack.c.h.bf16 %v462_v50  ;;  %v652_v57 = vadd.f32 %v540_v52, %v539_v51  ;;  %v537_v63 = vunpack.c.l.bf16 %v465_v60  ;;  %v456_v44 = vld [vmem:[%s4678_s21 + $0xb8] sm:$0xff] }
  0x26   : > { %v586_v58 = vadd.f32 %v496_v54, %v495_v53  ;;  %v538_v0 = vunpack.c.h.bf16 %v465_v60  ;;  %v493_v1 = vunpack.c.l.bf16 %v443_v61  ;;  %v494_v2 = vunpack.c.h.bf16 %v443_v61 }
  0x27   : > { %668 = vadd.xlane.f32.xlu0 %v667_v21  ;;  %662 = vadd.xlane.f32.xlu2 %v661_v22  ;;  %v640_v59 = vadd.f32 %v532_v56, %v531_v55  ;;  %v529_v3 = vunpack.c.l.bf16 %v461_v62  ;;  %v530_v4 = vunpack.c.h.bf16 %v461_v62  ;;  %v491_v11 = vunpack.c.l.bf16 %v442_v8  ;;  %v458_v21 = vld [vmem:[%s4678_s21 + $0xc8] sm:$0xff]  ;;  %v440_v22 = vld [vmem:[%s4678_s21 + $0x38] sm:$0xff] }
  0x28   : > { %665 = vadd.xlane.f32.xlu1 %v664_v23  ;;  %v649_v5 = vadd.f32 %v538_v0, %v537_v63  ;;  %v583_v6 = vadd.f32 %v494_v2, %v493_v1  ;;  %v492_v12 = vunpack.c.h.bf16 %v442_v8  ;;  %v489_v13 = vunpack.c.l.bf16 %v441_v9  ;;  %v436_v56 = vld [vmem:[%s4678_s21 + $0x18] sm:$0xff] }
  0x29   : > { %v637_v7 = vadd.f32 %v530_v4, %v529_v3  ;;  %v490_v14 = vunpack.c.h.bf16 %v441_v9  ;;  %v527_v15 = vunpack.c.l.bf16 %v460_v10  ;;  %v528_v16 = vunpack.c.h.bf16 %v460_v10  ;;  %v453_v4 = vld [vmem:[%s4678_s21 + $0xa0] sm:$0xff] }
  0x2a   : > { %v580_v17 = vadd.f32 %v492_v12, %v491_v11  ;;  %v525_v23 = vunpack.c.l.bf16 %v459_v20  ;;  %v526_v24 = vunpack.c.h.bf16 %v459_v20  ;;  %v523_v25 = vunpack.c.l.bf16 %v458_v21 }
  0x2b   : > { %v577_v18 = vadd.f32 %v490_v14, %v489_v13  ;;  %v634_v19 = vadd.f32 %v528_v16, %v527_v15  ;;  %v524_v26 = vunpack.c.h.bf16 %v458_v21  ;;  %v487_v27 = vunpack.c.l.bf16 %v440_v22  ;;  %v433_v16 = vld [vmem:[%s4678_s21] sm:$0xff] }
  0x2c   : > { %v488_v28 = vunpack.c.h.bf16 %v440_v22  ;;  %v631_v29 = vadd.f32 %v526_v24, %v525_v23  ;;  %v486_v36 = vunpack.c.h.bf16 %v439_v32  ;;  %v520_v48 = vunpack.c.h.bf16 %v456_v44 }
  0x2d   : > { %v628_v30 = vadd.f32 %v524_v26, %v523_v25  ;;  %v480_v60 = vunpack.c.h.bf16 %v436_v56  ;;  %v514_v8 = vunpack.c.h.bf16 %v453_v4  ;;  %v474_v20 = vunpack.c.h.bf16 %v433_v16 }
  0x2e   : > { %v574_v31 = vadd.f32 %v488_v28, %v487_v27  ;;  %v449_v28 = vld [vmem:[%s4678_s21 + $0x80] sm:$0xff] }
  0x2f   : > { %659 = vadd.xlane.f32.xlu2 %v658_v33  ;;  %593 = vadd.xlane.f32.xlu0 %v592_v34  ;;  %v438_v33 = vld [vmem:[%s4678_s21 + $0x28] sm:$0xff]  ;;  %v457_v34 = vld [vmem:[%s4678_s21 + $0xc0] sm:$0xff] }
  0x30   : > { %647 = vadd.xlane.f32.xlu1 %v646_v35  ;;  %v485_v35 = vunpack.c.l.bf16 %v439_v32  ;;  %v483_v37 = vunpack.c.l.bf16 %v438_v33  ;;  %v484_v38 = vunpack.c.h.bf16 %v438_v33  ;;  %v521_v39 = vunpack.c.l.bf16 %v457_v34 }
  0x31   : > { %v522_v40 = vunpack.c.h.bf16 %v457_v34 }
  0x32   : > { %v571_v41 = vadd.f32 %v486_v36, %v485_v35  ;;  %v568_v42 = vadd.f32 %v484_v38, %v483_v37 }
  0x33   : > { %v625_v43 = vadd.f32 %v522_v40, %v521_v39 }
  0x37   : > { %656 = vadd.xlane.f32.xlu2 %v655_v45  ;;  %590 = vadd.xlane.f32.xlu0 %v589_v46  ;;  %v455_v45 = vld [vmem:[%s4678_s21 + $0xb0] sm:$0xff]  ;;  %v437_v46 = vld [vmem:[%s4678_s21 + $0x20] sm:$0xff] }
  0x38   : > { %644 = vadd.xlane.f32.xlu1 %v643_v47  ;;  %v519_v47 = vunpack.c.l.bf16 %v456_v44  ;;  %v517_v49 = vunpack.c.l.bf16 %v455_v45  ;;  %v518_v50 = vunpack.c.h.bf16 %v455_v45  ;;  %v481_v51 = vunpack.c.l.bf16 %v437_v46 }
  0x39   : > { %v482_v52 = vunpack.c.h.bf16 %v437_v46 }
  0x3a   : > { %v622_v53 = vadd.f32 %v520_v48, %v519_v47  ;;  %v619_v54 = vadd.f32 %v518_v50, %v517_v49  ;;  %v675_v49 = vld [vmem:[%s7289_s3 + $0x10] sm:$0xff] }
  0x3b   : > { %v565_v55 = vadd.f32 %v482_v52, %v481_v51  ;;  %v678_v52 = vld [vmem:[%s7289_s3 + $0x28] sm:$0xff] }
  0x3f   : > { %653 = vadd.xlane.f32.xlu2 %v652_v57  ;;  %587 = vadd.xlane.f32.xlu0 %v586_v58  ;;  %v435_v57 = vld [vmem:[%s4678_s21 + $0x10] sm:$0xff]  ;;  %v454_v58 = vld [vmem:[%s4678_s21 + $0xa8] sm:$0xff] }
  0x40   : > { %641 = vadd.xlane.f32.xlu1 %v640_v59  ;;  %v479_v59 = vunpack.c.l.bf16 %v436_v56  ;;  %v477_v61 = vunpack.c.l.bf16 %v435_v57  ;;  %v478_v62 = vunpack.c.h.bf16 %v435_v57  ;;  %v515_v63 = vunpack.c.l.bf16 %v454_v58  ;;  %v681_v56 = vld [vmem:[%s7289_s3 + $0x40] sm:$0xff] }
  0x41   : > { %v516_v0 = vunpack.c.h.bf16 %v454_v58 }
  0x42   : > { %v562_v1 = vadd.f32 %v480_v60, %v479_v59  ;;  %v559_v2 = vadd.f32 %v478_v62, %v477_v61  ;;  %v684_v60 = vld [vmem:[%s7289_s3 + $0x58] sm:$0xff] }
  0x43   : > { %v616_v3 = vadd.f32 %v516_v0, %v515_v63  ;;  %v687_v0 = vld [vmem:[%s7289_s3 + $0x70] sm:$0xff] }
  0x47   : > { %650 = vadd.xlane.f32.xlu2 %v649_v5  ;;  %584 = vadd.xlane.f32.xlu0 %v583_v6  ;;  %v452_v5 = vld [vmem:[%s4678_s21 + $0x98] sm:$0xff]  ;;  %v434_v6 = vld [vmem:[%s4678_s21 + $0x8] sm:$0xff] }
  0x48   : > { %638 = vadd.xlane.f32.xlu1 %v637_v7  ;;  %v513_v7 = vunpack.c.l.bf16 %v453_v4  ;;  %v511_v9 = vunpack.c.l.bf16 %v452_v5  ;;  %v512_v10 = vunpack.c.h.bf16 %v452_v5  ;;  %v475_v11 = vunpack.c.l.bf16 %v434_v6  ;;  %v690_v4 = vld [vmem:[%s7289_s3 + $0x88] sm:$0xff] }
  0x49   : > { %v476_v12 = vunpack.c.h.bf16 %v434_v6 }
  0x4a   : > { %v613_v13 = vadd.f32 %v514_v8, %v513_v7  ;;  %v610_v14 = vadd.f32 %v512_v10, %v511_v9  ;;  %v693_v8 = vld [vmem:[%s7289_s3 + $0xa0] sm:$0xff] }
  0x4b   : > { %v556_v15 = vadd.f32 %v476_v12, %v475_v11  ;;  %v745_v11 = vld [vmem:[%s7289_s3 + $0x240] sm:$0xff] }
  0x4f   : > { %581 = vadd.xlane.f32.xlu0 %v580_v17  ;;  %578 = vadd.xlane.f32.xlu2 %v577_v18  ;;  %v450_v17 = vld [vmem:[%s4678_s21 + $0x88] sm:$0xff]  ;;  %v451_v18 = vld [vmem:[%s4678_s21 + $0x90] sm:$0xff] }
  0x50   : > { %635 = vadd.xlane.f32.xlu1 %v634_v19  ;;  %v473_v19 = vunpack.c.l.bf16 %v433_v16  ;;  %v507_v21 = vunpack.c.l.bf16 %v450_v17  ;;  %v508_v22 = vunpack.c.h.bf16 %v450_v17  ;;  %v509_v23 = vunpack.c.l.bf16 %v451_v18  ;;  %v673_v16 = vld [vmem:[%s7289_s3] sm:$0xff]  ;;  %v748_v17 = vld [vmem:[%s7289_s3 + $0x258] sm:$0xff] }
  0x51   : > { %v510_v24 = vunpack.c.h.bf16 %v451_v18  ;;  %v674_v18 = vld [vmem:[%s7289_s3 + $0x8] sm:$0xff] }
  0x52   : > { %v553_v25 = vadd.f32 %v474_v20, %v473_v19  ;;  %v604_v26 = vadd.f32 %v508_v22, %v507_v21  ;;  %v699_v20 = vld [vmem:[%s7289_s3 + $0xd0] sm:$0xff]  ;;  %v676_v21 = vld [vmem:[%s7289_s3 + $0x18] sm:$0xff] }
  0x53   : > { %v607_v27 = vadd.f32 %v510_v24, %v509_v23  ;;  %v751_v22 = vld [vmem:[%s7289_s3 + $0x270] sm:$0xff]  ;;  %v677_v23 = vld [vmem:[%s7289_s3 + $0x20] sm:$0xff]  ;;  %v702_v24 = vld [vmem:[%s7289_s3 + $0xe8] sm:$0xff] }
  0x57   : > { %632 = vadd.xlane.f32.xlu0 %v631_v29  ;;  %629 = vadd.xlane.f32.xlu2 %v628_v30  ;;  %v505_v29 = vunpack.c.l.bf16 %v449_v28  ;;  %v506_v30 = vunpack.c.h.bf16 %v449_v28  ;;  %v705_v28 = vld [vmem:[%s7289_s3 + $0x100] sm:$0xff] }
  0x58   : > { %575 = vadd.xlane.f32.xlu1 %v574_v31 }
  0x59   : > { %v601_v31 = vadd.f32 %v506_v30, %v505_v29  ;;  %v682_v29 = vld [vmem:[%s7289_s3 + $0x48] sm:$0xff]  ;;  %v683_v30 = vld [vmem:[%s7289_s3 + $0x50] sm:$0xff] }
  0x5f   : > { %572 = vadd.xlane.f32.xlu0 %v571_v41  ;;  %569 = vadd.xlane.f32.xlu2 %v568_v42 }
  0x60   : > { %626 = vadd.xlane.f32.xlu1 %v625_v43 }
  0x67   : > { %623 = vadd.xlane.f32.xlu0 %v622_v53  ;;  %620 = vadd.xlane.f32.xlu2 %v619_v54 }
  0x68   : > { %566 = vadd.xlane.f32.xlu1 %v565_v55 }
  0x6f   : > { %563 = vadd.xlane.f32.xlu0 %v562_v1  ;;  %560 = vadd.xlane.f32.xlu2 %v559_v2 }
  0x70   : > { %617 = vadd.xlane.f32.xlu1 %v616_v3 }
  0x77   : > { %614 = vadd.xlane.f32.xlu0 %v613_v13  ;;  %611 = vadd.xlane.f32.xlu2 %v610_v14  ;;  %v696_v13 = vld [vmem:[%s7289_s3 + $0xb8] sm:$0xff] }
  0x78   : > { %557 = vadd.xlane.f32.xlu1 %v556_v15 }
  0x7f   : > { %554 = vadd.xlane.f32.xlu0 %v553_v25  ;;  %605 = vadd.xlane.f32.xlu2 %v604_v26  ;;  %v679_v25 = vld [vmem:[%s7289_s3 + $0x30] sm:$0xff]  ;;  %v754_v26 = vld [vmem:[%s7289_s3 + $0x288] sm:$0xff] }
  0x80   : > { %608 = vadd.xlane.f32.xlu1 %v607_v27  ;;  %v680_v27 = vld [vmem:[%s7289_s3 + $0x38] sm:$0xff] }
  0x87   : > { %602 = vadd.xlane.f32.xlu0 %v601_v31  ;;  %v757_v31 = vld [vmem:[%s7289_s3 + $0x2a0] sm:$0xff] }
  0x92   : > { %v4720_v32 = vpop.xlane.xlu0 %671  ;;  %v597_v33 = vpop.xlane.xlu2 %596 }
  0x93   : > { %1132 = vmatpush.msra.mxu2 %v4720_v32  ;;  %v600_v34 = vpop.xlane.xlu1 %599 }
  0x94   : > { %898 = vmatpush.msra.mxu0 %v600_v34  ;;  %4427 = vmatpush.msra.mxu3 %v600_v34  ;;  %v685_v34 = vld [vmem:[%s7289_s3 + $0x60] sm:$0xff] }
  0x96   : > { %899 = vmatpush.msra.mxu0 %v597_v33  ;;  %4428 = vmatpush.msra.mxu3 %v597_v33  ;;  %v708_v33 = vld [vmem:[%s7289_s3 + $0x118] sm:$0xff] }
  0x9a   : > { %v4723_v35 = vpop.xlane.xlu0 %668  ;;  %v4725_v36 = vpop.xlane.xlu2 %662 }
  0x9b   : > { %1133 = vmatpush.msra.mxu2 %v4723_v35  ;;  %v4728_v37 = vpop.xlane.xlu1 %665 }
  0x9d   : > { %1134 = vmatpush.msra.mxu2 %v4728_v37 }
  0x9f   : > { %1135 = vmatpush.msra.mxu2 %v4725_v36 }
  0xa2   : > { %v4732_v38 = vpop.xlane.xlu2 %659  ;;  %v594_v39 = vpop.xlane.xlu0 %593 }
  0xa3   : > { %900 = vmatpush.msra.mxu0 %v594_v39  ;;  %4429 = vmatpush.msra.mxu3 %v594_v39  ;;  %v4734_v40 = vpop.xlane.xlu1 %647  ;;  %v686_v39 = vld [vmem:[%s7289_s3 + $0x68] sm:$0xff] }
  0xa4   : > { %1011 = vmatpush.msra.mxu1 %v4734_v40  ;;  %1136 = vmatpush.msra.mxu2 %v4732_v38 }
  0xaa   : > { %v4738_v41 = vpop.xlane.xlu2 %656  ;;  %v591_v42 = vpop.xlane.xlu0 %590 }
  0xab   : > { %901 = vmatpush.msra.mxu0 %v591_v42  ;;  %4430 = vmatpush.msra.mxu3 %v591_v42  ;;  %v4740_v43 = vpop.xlane.xlu1 %644  ;;  %v692_v42 = vld [vmem:[%s7289_s3 + $0x98] sm:$0xff] }
  0xac   : > { %1012 = vmatpush.msra.mxu1 %v4740_v43  ;;  %1137 = vmatpush.msra.mxu2 %v4738_v41 }
  0xb2   : > { %v4744_v44 = vpop.xlane.xlu2 %653  ;;  %v588_v45 = vpop.xlane.xlu0 %587 }
  0xb3   : > { %902 = vmatpush.msra.mxu0 %v588_v45  ;;  %4431 = vmatpush.msra.mxu3 %v588_v45  ;;  %v4746_v46 = vpop.xlane.xlu1 %641  ;;  %v694_v45 = vld [vmem:[%s7289_s3 + $0xa8] sm:$0xff] }
  0xb4   : > { %1013 = vmatpush.msra.mxu1 %v4746_v46  ;;  %1138 = vmatpush.msra.mxu2 %v4744_v44 }
  0xba   : > { %v4750_v47 = vpop.xlane.xlu2 %650  ;;  %v585_v48 = vpop.xlane.xlu0 %584 }
  0xbb   : > { %903 = vmatpush.msra.mxu0 %v585_v48  ;;  %4432 = vmatpush.msra.mxu3 %v585_v48  ;;  %v4755_v50 = vpop.xlane.xlu1 %638  ;;  %v720_v48 = vld [vmem:[%s7289_s3 + $0x178] sm:$0xff] }
  0xbc   : > { %1139 = vmatpush.msra.mxu2 %v4750_v47  ;;  %1014 = vmatpush.msra.mxu1 %v4755_v50 }
  0xbd   : > { %3757 = vmatmul.msk.f32.vlgmr.msra.gmra.mxu2 %vm801_vm0, %v675_v49  ;;  %v697_v49 = vld [vmem:[%s7289_s3 + $0xc0] sm:$0xff] }
  0xc2   : > { %v582_v51 = vpop.xlane.xlu0 %581  ;;  %v579_v53 = vpop.xlane.xlu2 %578 }
  0xc3   : > { %904 = vmatpush.msra.mxu0 %v582_v51  ;;  %4433 = vmatpush.msra.mxu3 %v582_v51  ;;  %v4763_v54 = vpop.xlane.xlu1 %635  ;;  %v749_v51 = vld [vmem:[%s7289_s3 + $0x260] sm:$0xff] }
  0xc4   : > { %1015 = vmatpush.msra.mxu1 %v4763_v54 }
  0xc5   : > { %3758 = vmatmul.msk.f32.gmra.mxu2 %vm801_vm0, %v678_v52  ;;  %905 = vmatpush.msra.mxu0 %v579_v53  ;;  %v723_v52 = vld [vmem:[%s7289_s3 + $0x190] sm:$0xff] }
  0xc6   : > { %4434 = vmatpush.msra.mxu3 %v579_v53  ;;  %v700_v53 = vld [vmem:[%s7289_s3 + $0xd8] sm:$0xff] }
  0xca   : > { %v4767_v55 = vpop.xlane.xlu0 %632  ;;  %v4772_v57 = vpop.xlane.xlu2 %629 }
  0xcb   : > { %1016 = vmatpush.msra.mxu1 %v4767_v55  ;;  %v576_v58 = vpop.xlane.xlu1 %575 }
  0xcc   : > { %906 = vmatpush.msra.mxu0 %v576_v58  ;;  %4435 = vmatpush.msra.mxu3 %v576_v58  ;;  %v703_v58 = vld [vmem:[%s7289_s3 + $0xf0] sm:$0xff] }
  0xcd   : > { %3759 = vmatmul.msk.f32.gmra.mxu2 %vm801_vm0, %v681_v56  ;;  %1017 = vmatpush.msra.mxu1 %v4772_v57  ;;  %v752_v56 = vld [vmem:[%s7289_s3 + $0x278] sm:$0xff] }
  0xd2   : > { %v573_v59 = vpop.xlane.xlu0 %572  ;;  %v570_v61 = vpop.xlane.xlu2 %569 }
  0xd3   : > { %907 = vmatpush.msra.mxu0 %v573_v59  ;;  %4436 = vmatpush.msra.mxu3 %v573_v59  ;;  %v4780_v62 = vpop.xlane.xlu1 %626 }
  0xd4   : > { %1018 = vmatpush.msra.mxu1 %v4780_v62 }
  0xd5   : > { %3760 = vmatmul.msk.f32.gmra.mxu2 %vm801_vm0, %v684_v60  ;;  %908 = vmatpush.msra.mxu0 %v570_v61  ;;  %v704_v60 = vld [vmem:[%s7289_s3 + $0xf8] sm:$0xff] }
  0xd6   : > { %4437 = vmatpush.msra.mxu3 %v570_v61  ;;  %v755_v61 = vld [vmem:[%s7289_s3 + $0x290] sm:$0xff] }
  0xda   : > { %v4784_v63 = vpop.xlane.xlu0 %623  ;;  %v4789_v1 = vpop.xlane.xlu2 %620 }
  0xdb   : > { %1019 = vmatpush.msra.mxu1 %v4784_v63  ;;  %v567_v2 = vpop.xlane.xlu1 %566 }
  0xdc   : > { %909 = vmatpush.msra.mxu0 %v567_v2  ;;  %4438 = vmatpush.msra.mxu3 %v567_v2  ;;  %v758_v2 = vld [vmem:[%s7289_s3 + $0x2a8] sm:$0xff] }
  0xdd   : > { %3761 = vmatmul.msk.f32.gmra.mxu2 %vm801_vm0, %v687_v0  ;;  %1020 = vmatpush.msra.mxu1 %v4789_v1 }
  0xe2   : > { %v564_v3 = vpop.xlane.xlu0 %563  ;;  %v561_v5 = vpop.xlane.xlu2 %560 }
  0xe3   : > { %910 = vmatpush.msra.mxu0 %v564_v3  ;;  %4439 = vmatpush.msra.mxu3 %v564_v3  ;;  %v618_v6 = vpop.xlane.xlu1 %617  ;;  %v732_v3 = vld [vmem:[%s7289_s3 + $0x1d8] sm:$0xff] }
  0xe4   : > { %1021 = vmatpush.msra.mxu1 %v618_v6 }
  0xe5   : > { %3762 = vmatmul.msk.f32.gmra.mxu2 %vm801_vm0, %v690_v4  ;;  %911 = vmatpush.msra.mxu0 %v561_v5  ;;  %v709_v4 = vld [vmem:[%s7289_s3 + $0x120] sm:$0xff] }
  0xe6   : > { %4440 = vmatpush.msra.mxu3 %v561_v5 }
  0xea   : > { %v615_v7 = vpop.xlane.xlu0 %614  ;;  %v612_v9 = vpop.xlane.xlu2 %611 }
  0xeb   : > { %1022 = vmatpush.msra.mxu1 %v615_v7  ;;  %v558_v10 = vpop.xlane.xlu1 %557 }
  0xec   : > { %912 = vmatpush.msra.mxu0 %v558_v10  ;;  %4441 = vmatpush.msra.mxu3 %v558_v10 }
  0xed   : > { %3763 = vmatmul.msk.f32.gmra.mxu2 %vm801_vm0, %v693_v8  ;;  %1023 = vmatpush.msra.mxu1 %v612_v9  ;;  %v735_v8 = vld [vmem:[%s7289_s3 + $0x1f0] sm:$0xff] }
  0xf2   : > { %v555_v12 = vpop.xlane.xlu0 %554  ;;  %v606_v15 = vpop.xlane.xlu2 %605 }
  0xf3   : > { %913 = vmatpush.msra.mxu0 %v555_v12  ;;  %4442 = vmatpush.msra.mxu3 %v555_v12  ;;  %v609_v14 = vpop.xlane.xlu1 %608  ;;  %v764_v12 = vld [vmem:[%s7289_s3 + $0x2d8] sm:$0xff] }
  0xf4   : > { %986 = vmatmul.f32.vlgmr.msra.gmra.mxu3 %v745_v11  ;;  %1024 = vmatpush.msra.mxu1 %v609_v14  ;;  %v713_v11 = vld [vmem:[%s7289_s3 + $0x140] sm:$0xff] }
  0xf5   : > { %4443 = vmatpush.msrb.mxu3 %v4734_v40  ;;  %3764 = vmatmul.msk.f32.gmra.mxu2 %vm801_vm0, %v696_v13  ;;  %v760_v40 = vld [vmem:[%s7289_s3 + $0x2b8] sm:$0xff]  ;;  %v738_v13 = vld [vmem:[%s7289_s3 + $0x208] sm:$0xff] }
  0xf6   : > { %1025 = vmatpush.msra.mxu1 %v606_v15  ;;  %914 = vmatmul.f32.vlgmr.msra.gmra.mxu0 %v673_v16  ;;  %v716_v16 = vld [vmem:[%s7289_s3 + $0x158] sm:$0xff] }
  0xf7   : > { %4444 = vmatpush.msrb.mxu3 %v4740_v43  ;;  %v766_v43 = vld [vmem:[%s7289_s3 + $0x2e8] sm:$0xff] }
  0xf9   : > { %4445 = vmatpush.msrb.mxu3 %v4746_v46  ;;  %v695_v46 = vld [vmem:[%s7289_s3 + $0xb0] sm:$0xff] }
  0xfa   : > { %v603_v19 = vpop.xlane.xlu0 %602 }
  0xfb   : > { %4446 = vmatpush.msrb.mxu3 %v4755_v50  ;;  %1026 = vmatpush.msra.mxu1 %v603_v19  ;;  %v698_v50 = vld [vmem:[%s7289_s3 + $0xc8] sm:$0xff] }
  0xfc   : > { %989 = vmatmul.f32.gmra.mxu3 %v748_v17  ;;  %1027 = vmatmul.f32.vlgmr.msra.gmra.mxu1 %v674_v18  ;;  %v767_v17 = vld [vmem:[%s7289_s3 + $0x2f0] sm:$0xff]  ;;  %v741_v18 = vld [vmem:[%s7289_s3 + $0x220] sm:$0xff] }
  0xfd   : > { %4447 = vmatpush.msrb.mxu3 %v4763_v54  ;;  %3765 = vmatmul.msk.f32.gmra.mxu2 %vm801_vm0, %v699_v20 }
  0xfe   : > { %917 = vmatmul.f32.gmra.mxu0 %v676_v21  ;;  %v719_v21 = vld [vmem:[%s7289_s3 + $0x170] sm:$0xff] }
  0xff   : > { %4448 = vmatpush.msrb.mxu3 %v4767_v55  ;;  %v701_v55 = vld [vmem:[%s7289_s3 + $0xe0] sm:$0xff] }
 0x101   : > { %4449 = vmatpush.msrb.mxu3 %v4772_v57  ;;  %v726_v57 = vld [vmem:[%s7289_s3 + $0x1a8] sm:$0xff] }
 0x103   : > { %4450 = vmatpush.msrb.mxu3 %v4780_v62  ;;  %v729_v62 = vld [vmem:[%s7289_s3 + $0x1c0] sm:$0xff] }
 0x104   : > { %992 = vmatmul.f32.gmra.mxu3 %v751_v22  ;;  %1030 = vmatmul.f32.gmra.mxu1 %v677_v23  ;;  %v744_v22 = vld [vmem:[%s7289_s3 + $0x238] sm:$0xff]  ;;  %v753_v23 = vld [vmem:[%s7289_s3 + $0x280] sm:$0xff] }
 0x105   : > { %4451 = vmatpush.msrb.mxu3 %v4784_v63  ;;  %3766 = vmatmul.msk.f32.gmra.mxu2 %vm801_vm0, %v702_v24  ;;  %v706_v63 = vld [vmem:[%s7289_s3 + $0x108] sm:$0xff]  ;;  %v769_v24 = vld [vmem:[%s7290_s4] sm:$0xff] }
 0x106   : > { %920 = vmatmul.f32.gmra.mxu0 %v679_v25 }
 0x107   : > { %4452 = vmatpush.msrb.mxu3 %v4789_v1  ;;  %v707_v1 = vld [vmem:[%s7289_s3 + $0x110] sm:$0xff] }
 0x109   : > { %4453 = vmatpush.msrb.mxu3 %v618_v6  ;;  %v710_v6 = vld [vmem:[%s7289_s3 + $0x128] sm:$0xff] }
 0x10b   : > { %4454 = vmatpush.msrb.mxu3 %v615_v7  ;;  %v761_v7 = vld [vmem:[%s7289_s3 + $0x2c0] sm:$0xff] }
 0x10c   : > { %995 = vmatmul.f32.gmra.mxu3 %v754_v26  ;;  %1033 = vmatmul.f32.gmra.mxu1 %v680_v27  ;;  %v721_v26 = vld [vmem:[%s7289_s3 + $0x180] sm:$0xff] }
 0x10d   : > { %4455 = vmatpush.msrb.mxu3 %v612_v9  ;;  %3767 = vmatmul.msk.f32.gmra.mxu2 %vm801_vm0, %v705_v28  ;;  %v712_v9 = vld [vmem:[%s7289_s3 + $0x138] sm:$0xff] }
 0x10e   : > { %923 = vmatmul.f32.gmra.mxu0 %v682_v29 }
 0x10f   : > { %4456 = vmatpush.msrb.mxu3 %v609_v14  ;;  %v715_v14 = vld [vmem:[%s7289_s3 + $0x150] sm:$0xff] }
 0x111   : > { %4457 = vmatpush.msrb.mxu3 %v606_v15 }
 0x113   : > { %4458 = vmatpush.msrb.mxu3 %v603_v19  ;;  %v718_v19 = vld [vmem:[%s7289_s3 + $0x168] sm:$0xff] }
 0x114   : > { %1036 = vmatmul.f32.gmra.mxu1 %v683_v30  ;;  %998 = vmatmul.f32.gmra.mxu3 %v757_v31  ;;  %v722_v31 = vld [vmem:[%s7289_s3 + $0x188] sm:$0xff] }
 0x115   : > { %4459 = vmatpush.msra.mxu3 %v4720_v32  ;;  %3768 = vmatmul.msk.f32.gmra.mxu2 %vm801_vm0, %v708_v33  ;;  %v711_v32 = vld [vmem:[%s7289_s3 + $0x130] sm:$0xff] }
 0x116   : > { %926 = vmatmul.f32.gmra.mxu0 %v685_v34  ;;  %v747_v34 = vld [vmem:[%s7289_s3 + $0x250] sm:$0xff] }
 0x117   : > { %4460 = vmatpush.msra.mxu3 %v4723_v35  ;;  %v688_v35 = vld [vmem:[%s7289_s3 + $0x78] sm:$0xff] }
 0x119   : > { %4461 = vmatpush.msra.mxu3 %v4728_v37  ;;  %v763_v37 = vld [vmem:[%s7289_s3 + $0x2d0] sm:$0xff] }
 0x11b   : > { %4462 = vmatpush.msra.mxu3 %v4725_v36  ;;  %v689_v36 = vld [vmem:[%s7289_s3 + $0x80] sm:$0xff] }
 0x11c   : > { %1039 = vmatmul.f32.gmra.mxu1 %v686_v39  ;;  %1001 = vmatmul.f32.gmra.mxu3 %v760_v40  ;;  %v756_v39 = vld [vmem:[%s7289_s3 + $0x298] sm:$0xff] }
 0x11d   : > { %4463 = vmatpush.msra.mxu3 %v4732_v38  ;;  %3769 = vmatmul.msk.f32.gmra.mxu2 %vm801_vm0, %v711_v32  ;;  %v714_v38 = vld [vmem:[%s7289_s3 + $0x148] sm:$0xff]  ;;  %v724_v32 = vld [vmem:[%s7289_s3 + $0x198] sm:$0xff] }
 0x11e   : > { %929 = vmatmul.f32.gmra.mxu0 %v688_v35 }
 0x11f   : > { %4464 = vmatpush.msra.mxu3 %v4738_v41  ;;  %v691_v41 = vld [vmem:[%s7289_s3 + $0x90] sm:$0xff] }
 0x121   : > { %4465 = vmatpush.msra.mxu3 %v4744_v44  ;;  %v717_v44 = vld [vmem:[%s7289_s3 + $0x160] sm:$0xff] }
 0x123   : > { %4466 = vmatpush.msra.mxu3 %v4750_v47  ;;  %v746_v47 = vld [vmem:[%s7289_s3 + $0x248] sm:$0xff] }
 0x124   : > { %1042 = vmatmul.f32.gmra.mxu1 %v689_v36  ;;  %1004 = vmatmul.f32.gmra.mxu3 %v763_v37 }
 0x125   : > { %3770 = vmatmul.msk.f32.gmra.mxu2 %vm801_vm0, %v714_v38 }
 0x126   : > { %932 = vmatmul.f32.gmra.mxu0 %v691_v41  ;;  %v725_v41 = vld [vmem:[%s7289_s3 + $0x1a0] sm:$0xff] }
 0x12c   : > { %1045 = vmatmul.f32.gmra.mxu1 %v692_v42  ;;  %1007 = vmatmul.f32.gmra.mxu3 %v766_v43  ;;  %v750_v42 = vld [vmem:[%s7289_s3 + $0x268] sm:$0xff]  ;;  %v759_v43 = vld [vmem:[%s7289_s3 + $0x2b0] sm:$0xff] }
 0x12d   : > { %3771 = vmatmul.msk.f32.gmra.mxu2 %vm801_vm0, %v717_v44  ;;  %v771_v44 = vld [vmem:[%s7290_s4 + $0x10] sm:$0xff] }
 0x12e   : > { %935 = vmatmul.f32.gmra.mxu0 %v694_v45 }
 0x134   : > { %1048 = vmatmul.f32.gmra.mxu1 %v695_v46  ;;  %1099 = vmatmul.f32.vlgmr.msrb.gmra.mxu3 %v746_v47  ;;  %v727_v46 = vld [vmem:[%s7289_s3 + $0x1b0] sm:$0xff] }
 0x135   : > { %3772 = vmatmul.msk.f32.gmra.mxu2 %vm801_vm0, %v720_v48 }
 0x136   : > { %938 = vmatmul.f32.gmra.mxu0 %v697_v49 }
 0x13c   : > { %1051 = vmatmul.f32.gmra.mxu1 %v698_v50  ;;  %1102 = vmatmul.f32.gmra.mxu3 %v749_v51  ;;  %v728_v51 = vld [vmem:[%s7289_s3 + $0x1b8] sm:$0xff] }
 0x13d   : > { %3773 = vmatmul.msk.f32.gmra.mxu2 %vm801_vm0, %v723_v52 }
 0x13e   : > { %941 = vmatmul.f32.gmra.mxu0 %v700_v53  ;;  %v762_v53 = vld [vmem:[%s7289_s3 + $0x2c8] sm:$0xff] }
 0x140   : > { %v4947_v54 = vpop.f32.mrf.mxu2 }
 0x144   : > { %1054 = vmatmul.f32.gmra.mxu1 %v701_v55  ;;  %1105 = vmatmul.f32.gmra.mxu3 %v752_v56  ;;  %v730_v55 = vld [vmem:[%s7289_s3 + $0x1c8] sm:$0xff] }
 0x145   : > { %3774 = vmatmul.msk.f32.gmra.mxu2 %vm801_vm0, %v726_v57 }
 0x146   : > { %944 = vmatmul.f32.gmra.mxu0 %v703_v58  ;;  %v731_v58 = vld [vmem:[%s7289_s3 + $0x1d0] sm:$0xff] }
 0x148   : > { %v4962_v59 = vpop.f32.mrf.mxu2 }
 0x14c   : > { %1057 = vmatmul.f32.gmra.mxu1 %v704_v60  ;;  %1108 = vmatmul.f32.gmra.mxu3 %v755_v61  ;;  %v765_v61 = vld [vmem:[%s7289_s3 + $0x2e0] sm:$0xff] }
 0x14d   : > { %3775 = vmatmul.msk.f32.gmra.mxu2 %vm801_vm0, %v729_v62  ;;  %v773_v62 = vld [vmem:[%s7290_s4 + $0x20] sm:$0xff] }
 0x14e   : > { %947 = vmatmul.f32.gmra.mxu0 %v706_v63 }
 0x150   : > { %v4977_v0 = vpop.f32.mrf.mxu2 }
 0x154   : > { %1060 = vmatmul.f32.gmra.mxu1 %v707_v1  ;;  %1111 = vmatmul.f32.gmra.mxu3 %v758_v2  ;;  %v733_v1 = vld [vmem:[%s7289_s3 + $0x1e0] sm:$0xff] }
 0x155   : > { %3776 = vmatmul.msk.f32.gmra.mxu2 %vm801_vm0, %v732_v3 }
 0x156   : > { %950 = vmatmul.f32.gmra.mxu0 %v709_v4 }
 0x158   : > { %v4992_v5 = vpop.f32.mrf.mxu2 }
 0x15c   : > { %1063 = vmatmul.f32.gmra.mxu1 %v710_v6  ;;  %1114 = vmatmul.f32.gmra.mxu3 %v761_v7  ;;  %v734_v6 = vld [vmem:[%s7289_s3 + $0x1e8] sm:$0xff] }
 0x15d   : > { %3777 = vmatmul.msk.f32.gmra.mxu2 %vm801_vm0, %v735_v8  ;;  %v768_v8 = vld [vmem:[%s7289_s3 + $0x2f8] sm:$0xff] }
 0x15e   : > { %953 = vmatmul.f32.gmra.mxu0 %v712_v9 }
 0x160   : > { %v5007_v10 = vpop.f32.mrf.mxu2 }
 0x164   : > { %1066 = vmatmul.f32.gmra.mxu1 %v713_v11  ;;  %1117 = vmatmul.f32.gmra.mxu3 %v764_v12  ;;  %v736_v11 = vld [vmem:[%s7289_s3 + $0x1f8] sm:$0xff] }
 0x165   : > { %3778 = vmatmul.msk.f32.gmra.mxu2 %vm801_vm0, %v738_v13 }
 0x166   : > { %956 = vmatmul.f32.gmra.mxu0 %v715_v14 }
 0x168   : > { %v5022_v15 = vpop.f32.mrf.mxu2 }
 0x16c   : > { %1069 = vmatmul.f32.gmra.mxu1 %v716_v16  ;;  %1120 = vmatmul.f32.gmra.mxu3 %v767_v17  ;;  %v737_v16 = vld [vmem:[%s7289_s3 + $0x200] sm:$0xff]  ;;  %v775_v17 = vld [vmem:[%s7290_s4 + $0x30] sm:$0xff] }
 0x16d   : > { %3779 = vmatmul.msk.f32.gmra.mxu2 %vm801_vm0, %v741_v18 }
 0x16e   : > { %959 = vmatmul.f32.gmra.mxu0 %v718_v19  ;;  %v739_v19 = vld [vmem:[%s7289_s3 + $0x210] sm:$0xff] }
 0x170   : > { %v5037_v20 = vpop.f32.mrf.mxu2 }
 0x173   : > { %v915_v25 = vpop.f32.mrf.mxu0 }
 0x174   : > { %1072 = vmatmul.f32.gmra.mxu1 %v719_v21  ;;  %3783 = vmatmul.msk.f32.vlgmr.msra.gmra.mxu3 %vm801_vm0, %v753_v23  ;;  %v916_v27 = vadd.f32 %v915_v25, %v769_v24  ;;  %v740_v25 = vld [vmem:[%s7289_s3 + $0x218] sm:$0xff] }
 0x175   : > { %3780 = vmatmul.msk.f32.gmra.mxu2 %vm801_vm0, %v744_v22 }
 0x176   : > { %962 = vmatmul.f32.gmra.mxu0 %v721_v26 }
 0x177   : > { %v5056_v28 = vpop.f32.mrf.mxu3 }
 0x178   : > { %7340 = vst [vmem:[#allocation5_spill] sm:$0xff] %v5056_v28  ;;  %v5058_v29 = vpop.f32.mrf.mxu2  ;;  %v780_v28 = vld [vmem:[%s7290_s4 + $0x58] sm:$0xff] }
 0x179   : > { %v1028_v30 = vpop.f32.mrf.mxu1 }
 0x17a   : > { %v1029_v33 = vadd.f32 %v1028_v30, %v916_v27  ;;  %v742_v30 = vld [vmem:[%s7289_s3 + $0x228] sm:$0xff] }
 0x17b   : > { %v5069_v40 = vpop.f32.mrf.mxu0 }
 0x17c   : > { %v5075_v35 = vadd.f32 %v4947_v54, %v1029_v33  ;;  %1075 = vmatmul.f32.gmra.mxu1 %v722_v31  ;;  %3784 = vmatmul.msk.f32.gmra.mxu3 %vm801_vm0, %v756_v39  ;;  %v743_v39 = vld [vmem:[%s7289_s3 + $0x230] sm:$0xff] }
 0x17d   : > { %3781 = vmatmul.msk.f32.gmra.mxu2 %vm801_vm0, %v747_v34 }
 0x17e   : > { %965 = vmatmul.f32.gmra.mxu0 %v724_v32  ;;  %v777_v32 = vld [vmem:[%s7290_s4 + $0x40] sm:$0xff] }
 0x17f   : > { %v5079_v36 = vpop.f32.mrf.mxu3 }
 0x180   : > { %7341 = vst [vmem:[#allocation6_spill] sm:$0xff] %v5079_v36  ;;  %v5081_v37 = vpop.f32.mrf.mxu2 }
 0x181   : > { %v5083_v38 = vpop.f32.mrf.mxu1 }
 0x183   : > { %v921_v45 = vpop.f32.mrf.mxu0 }
 0x184   : > { %1078 = vmatmul.f32.gmra.mxu1 %v725_v41  ;;  %3785 = vmatmul.msk.f32.gmra.mxu3 %vm801_vm0, %v759_v43  ;;  %v922_v47 = vadd.f32 %v921_v45, %v771_v44 }
 0x185   : > { %3782 = vmatmul.msk.f32.gmra.mxu2 %vm801_vm0, %v750_v42 }
 0x186   : > { %968 = vmatmul.f32.gmra.mxu0 %v727_v46 }
 0x187   : > { %v5102_v48 = vpop.f32.mrf.mxu3 }
 0x188   : > { %7342 = vst [vmem:[#allocation7_spill] sm:$0xff] %v5102_v48  ;;  %v5104_v49 = vpop.f32.mrf.mxu2 }
 0x189   : > { %v1034_v50 = vpop.f32.mrf.mxu1 }
 0x18a   : > { %v5109_v52 = vadd.f32 %v1034_v50, %v922_v47 }
 0x18b   : > { %v5114_v54 = vpop.f32.mrf.mxu0 }
 0x18c   : > { %1081 = vmatmul.f32.gmra.mxu1 %v728_v51  ;;  %3786 = vmatmul.msk.f32.gmra.mxu3 %vm801_vm0, %v762_v53 }
 0x18e   : > { %971 = vmatmul.f32.gmra.mxu0 %v730_v55 }
 0x18f   : > { %v5120_v56 = vpop.f32.mrf.mxu3 }
 0x190   : > { %7343 = vst [vmem:[#allocation8_spill] sm:$0xff] %v5120_v56  ;;  %v5127_v60 = vpop.f32.mrf.mxu2 }
 0x191   : > { %v5122_v57 = vpop.f32.mrf.mxu1 }
 0x193   : > { %v927_v63 = vpop.f32.mrf.mxu0 }
 0x194   : > { %1084 = vmatmul.f32.gmra.mxu1 %v731_v58  ;;  %3787 = vmatmul.msk.f32.gmra.mxu3 %vm801_vm0, %v765_v61  ;;  %v928_v2 = vadd.f32 %v927_v63, %v773_v62 }
 0x196   : > { %974 = vmatmul.f32.gmra.mxu0 %v733_v1 }
 0x197   : > { %v5139_v3 = vpop.f32.mrf.mxu3 }
 0x198   : > { %v5154_v12 = vpop.f32.mrf.mxu2 }
 0x199   : > { %v1040_v4 = vpop.f32.mrf.mxu1 }
 0x19a   : > { %v5144_v7 = vadd.f32 %v1040_v4, %v928_v2 }
 0x19b   : > { %v5149_v9 = vpop.f32.mrf.mxu0 }
 0x19c   : > { %1087 = vmatmul.f32.gmra.mxu1 %v734_v6  ;;  %3788 = vmatmul.msk.f32.gmra.mxu3 %vm801_vm0, %v768_v8 }
 0x19e   : > { %977 = vmatmul.f32.gmra.mxu0 %v736_v11 }
 0x19f   : > { %v5157_v13 = vpop.f32.mrf.mxu3 }
 0x1a0   : > { %v5170_v21 = vpop.f32.mrf.mxu2 }
 0x1a1   : > { %v5159_v14 = vpop.f32.mrf.mxu1 }
 0x1a3   : > { %v933_v18 = vpop.f32.mrf.mxu0 }
 0x1a4   : > { %1090 = vmatmul.f32.gmra.mxu1 %v737_v16  ;;  %v934_v22 = vadd.f32 %v933_v18, %v775_v17 }
 0x1a6   : > { %980 = vmatmul.f32.gmra.mxu0 %v739_v19 }
 0x1a7   : > { %v5172_v23 = vpop.f32.mrf.mxu3 }
 0x1a8   : > { %v5184_v31 = vpop.f32.mrf.mxu2 }
 0x1a9   : > { %v1046_v24 = vpop.f32.mrf.mxu1 }
 0x1aa   : > { %v5177_v26 = vadd.f32 %v1046_v24, %v934_v22 }
 0x1ab   : > { %v5179_v27 = vpop.f32.mrf.mxu0 }
 0x1ac   : > { %1093 = vmatmul.f32.gmra.mxu1 %v740_v25  ;;  %v783_v25 = vld [vmem:[%s7290_s4 + $0x70] sm:$0xff] }
 0x1ae   : > { %983 = vmatmul.f32.gmra.mxu0 %v742_v30 }
 0x1af   : > { %v5186_v33 = vpop.f32.mrf.mxu3 }
 0x1b0   : > { %v1183_v45 = vpop.f32.mrf.mxu2 }
 0x1b1   : > { %v5188_v34 = vpop.f32.mrf.mxu1 }
 0x1b3   : > { %v939_v41 = vpop.f32.mrf.mxu0 }
 0x1b4   : > { %1096 = vmatmul.f32.gmra.mxu1 %v743_v39  ;;  %v940_v42 = vadd.f32 %v939_v41, %v777_v32  ;;  %v4577_v39 = vmov 0   ;;  %v415_v32 = vld [vmem:[%s7288_s2 + $0x70] sm:$0xff]  ;;  %v782_v41 = vld [vmem:[%s7290_s4 + $0x68] sm:$0xff] }
 0x1b5   : > { %4510 = vset.pattern.permute.xlu1 %v4577_v39  ;;  %4511 = vset.pattern.permute.xlu2 %v4577_v39 }
 0x1b6   : > { %1663 = vperm.xlu1 %4510, %v415_v32   ;;  %4512 = vset.pattern.permute.xlu0 %v4577_v39  ;;  %v779_v39 = vld [vmem:[%s7290_s4 + $0x50] sm:$0xff] }
 0x1b7   : > { %v5196_v43 = vpop.f32.mrf.mxu3 }
 0x1b8   : > { %7344 = vst [vmem:[#allocation9_spill] sm:$0xff] %v5196_v43  ;;  %v1186_v55 = vpop.f32.mrf.mxu2 }
 0x1b9   : > { %v1052_v44 = vpop.f32.mrf.mxu1 }
 0x1ba   : > { %v5198_v46 = vadd.f32 %v1052_v44, %v940_v42  ;;  %v784_v42 = vld [vmem:[%s7290_s4 + $0x78] sm:$0xff] }
 0x1bb   : > { %v942_v47 = vpop.f32.mrf.mxu0 }
 0x1bf   : > { %v5200_v50 = vpop.f32.mrf.mxu3 }
 0x1c0   : > { %7345 = vst [vmem:[#allocation10_spill] sm:$0xff] %v5200_v50  ;;  %v5206_v63 = vpop.f32.mrf.mxu2 }
 0x1c1   : > { %v5202_v51 = vpop.f32.mrf.mxu1  ;;  %7347 = vst [vmem:[#allocation12_spill] sm:$0xff] %v5206_v63 }
 0x1c3   : > { %v945_v53 = vpop.f32.mrf.mxu0 }
 0x1c7   : > { %v5204_v58 = vpop.f32.mrf.mxu3 }
 0x1c8   : > { %7346 = vst [vmem:[#allocation11_spill] sm:$0xff] %v5204_v58  ;;  %v5210_v6 = vpop.f32.mrf.mxu2 }
 0x1c9   : > { %v1058_v61 = vpop.f32.mrf.mxu1  ;;  %7349 = vst [vmem:[#allocation14_spill] sm:$0xff] %v5210_v6 }
 0x1cb   : > { %v948_v62 = vpop.f32.mrf.mxu0 }
 0x1cf   : > { %v5208_v1 = vpop.f32.mrf.mxu3 }
 0x1d0   : > { %7348 = vst [vmem:[#allocation13_spill] sm:$0xff] %v5208_v1  ;;  %v5216_v19 = vpop.f32.mrf.mxu2 }
 0x1d1   : > { %v1061_v2 = vpop.f32.mrf.mxu1  ;;  %7351 = vst [vmem:[#allocation16_spill] sm:$0xff] %v5216_v19  ;;  %v781_v19 = vld [vmem:[%s7290_s4 + $0x60] sm:$0xff] }
 0x1d3   : > { %v951_v4 = vpop.f32.mrf.mxu0 }
 0x1d4   : > { %v952_v58 = vadd.f32 %v951_v4, %v781_v19  ;;  %v785_v4 = vld [vmem:[%s7290_s4 + $0x80] sm:$0xff]  ;;  %v946_v19 = vadd.f32 %v945_v53, %v779_v39  ;;  %v772_v39 = vld [vmem:[%s7290_s4 + $0x18] sm:$0xff] }
 0x1d7   : > { %v5212_v8 = vpop.f32.mrf.mxu3 }
 0x1d8   : > { %7350 = vst [vmem:[#allocation15_spill] sm:$0xff] %v5212_v8  ;;  %v5232_v63 = vpop.f32.mrf.mxu2  ;;  %v1059_v8 = vadd.f32 %v1058_v61, %v946_v19  ;;  %v429_v61 = vld [vmem:[%s7288_s2 + $0xe0] sm:$0xff] }
 0x1d9   : > { %v1064_v11 = vpop.f32.mrf.mxu1  ;;  %7352 = vst [vmem:[#allocation17_spill] sm:$0xff] %v5232_v63 }
 0x1db   : > { %v954_v16 = vpop.f32.mrf.mxu0 }
 0x1dc   : > { %v955_v43 = vadd.f32 %v954_v16, %v782_v41 }
 0x1df   : > { %v5214_v17 = vpop.f32.mrf.mxu3 }
 0x1e1   : > { %v1067_v18 = vpop.f32.mrf.mxu1 }
 0x1e2   : > { %v1068_v16 = vadd.f32 %v1067_v18, %v955_v43 }
 0x1e3   : > { %v957_v22 = vpop.f32.mrf.mxu0 }
 0x1e4   : > { %v958_v6 = vadd.f32 %v957_v22, %v783_v25  ;;  %v778_v22 = vld [vmem:[%s7290_s4 + $0x48] sm:$0xff]  ;;  %v949_v25 = vadd.f32 %v948_v62, %v780_v28  ;;  %v776_v28 = vld [vmem:[%s7290_s4 + $0x38] sm:$0xff]  ;;  %v1181_v62 = vadd.f32 %v5184_v31, %v1068_v16 }
 0x1e5   : > { %v943_v48 = vadd.f32 %v942_v47, %v778_v22  ;;  %v1166_v22 = vadd.f32 %v5081_v37, %v5198_v46  ;;  %v416_v37 = vld [vmem:[%s7288_s2 + $0x78] sm:$0xff]  ;;  %v411_v46 = vld [vmem:[%s7288_s2 + $0x50] sm:$0xff] }
 0x1e6   : > { %v1062_v43 = vadd.f32 %v1061_v2, %v949_v25  ;;  %v1250_v31 = vmax.f32 %v1181_v62, 0.0  ;;  %1668 = vperm.xlu2 %4511, %v416_v37   ;;  %v1154_v62 = vadd.f32 %v5007_v10, %v5144_v7  ;;  %v432_v7 = vld [vmem:[%s7288_s2 + $0xf8] sm:$0xff]  ;;  %v4015_v37 = vld [vmem:[%s4678_s21 + $0x40] sm:$0xf] }
 0x1e7   : > { %v5218_v24 = vpop.f32.mrf.mxu3  ;;  %v1056_v47 = vadd.f32 %v5202_v51, %v943_v48 }
 0x1e9   : > { %v1070_v30 = vpop.f32.mrf.mxu1  ;;  %v1169_v2 = vadd.f32 %v5104_v49, %v1056_v47  ;;  %v4031_v47 = vld [vmem:[%s4678_s21 + $0x60] sm:$0xf] }
 0x1ea   : > { %v1071_v36 = vadd.f32 %v1070_v30, %v958_v6  ;;  %v1065_v30 = vadd.f32 %v1064_v11, %v952_v58 }
 0x1eb   : > { %v960_v44 = vpop.f32.mrf.mxu0 }
 0x1ec   : > { %v961_v50 = vadd.f32 %v960_v44, %v784_v42  ;;  %v413_v42 = vld [vmem:[%s7288_s2 + $0x60] sm:$0xff]  ;;  %v1184_v44 = vadd.f32 %v1183_v45, %v1071_v36  ;;  %v1178_v56 = vadd.f32 %v5170_v21, %v1065_v30  ;;  %v937_v36 = vadd.f32 %v5179_v27, %v776_v28  ;;  %v774_v21 = vld [vmem:[%s7290_s4 + $0x28] sm:$0xff]  ;;  %v4401_v28 = vld [vmem:[%s4678_s21 + $0x74] sm:$0xf0] }
 0x1ed   : > { %1653 = vperm.xlu1 %4510, %v413_v42   ;;  %v1172_v27 = vadd.f32 %v5127_v60, %v1059_v8  ;;  %v1246_v8 = vmax.f32 %v1169_v2, 0.0  ;;  %v4023_v2 = vld [vmem:[%s4678_s21 + $0x50] sm:$0xf] }
 0x1ee   : > { %v1251_v42 = vmax.f32 %v1184_v44, 0.0  ;;  %v1249_v48 = vmax.f32 %v1178_v56, 0.0  ;;  %v1050_v51 = vadd.f32 %v5188_v34, %v937_v36  ;;  %v4039_v44 = vld [vmem:[%s4678_s21 + $0x70] sm:$0xf]  ;;  %1748 = vperm.xlu2 %4511, %v432_v7   ;;  %v800_v7 = vld [vmem:[%s7290_s4 + $0xf8] sm:$0xff] }
 0x1ef   : > { %v5240_v1 = vpop.f32.mrf.mxu3  ;;  %v1247_v25 = vmax.f32 %v1172_v27, 0.0  ;;  %v4415_v27 = vld [vmem:[%s4678_s21 + $0xe4] sm:$0xf0] }
 0x1f0   : > { %v1163_v34 = vadd.f32 %v5058_v29, %v1050_v51  ;;  %v1160_v29 = vadd.f32 %v5037_v20, %v5177_v26  ;;  %v4103_v26 = vld [vmem:[%s4678_s21 + $0xf0] sm:$0xf] }
 0x1f1   : > { %v1073_v32 = vpop.f32.mrf.mxu1 }
 0x1f2   : > { %v1074_v41 = vadd.f32 %v1073_v32, %v961_v50  ;;  %v5257_v50 = vpop.f32.mrf.mxu2  ;;  %v1244_v30 = vmax.f32 %v1163_v34, 0.0  ;;  %v414_v34 = vld [vmem:[%s7288_s2 + $0x68] sm:$0xff] }
 0x1f3   : > { %v963_v6 = vpop.f32.mrf.mxu0 }
 0x1f4   : > { %v1187_v63 = vadd.f32 %v1186_v55, %v1074_v41  ;;  %v964_v32 = vadd.f32 %v963_v6, %v785_v4  ;;  %v1175_v55 = vadd.f32 %v5154_v12, %v1062_v43  ;;  %v931_v12 = vadd.f32 %v5149_v9, %v774_v21  ;;  %v4095_v21 = vld [vmem:[%s4678_s21 + $0xe0] sm:$0xf] }
 0x1f5   : > { %1733 = vperm.xlu1 %4510, %v429_v61   ;;  %v925_v9 = vadd.f32 %v5114_v54, %v772_v39  ;;  %v770_v54 = vld [vmem:[%s7290_s4 + $0x8] sm:$0xff]  ;;  %v4040_v43 = vor.u32 %v4401_v28, %v4039_v44  ;;  %v4007_v28 = vld [vmem:[%s4678_s21 + $0x30] sm:$0xf] }
 0x1f6   : > { %v1252_v18 = vmax.f32 %v1187_v63, 0.0  ;;  %v1248_v11 = vmax.f32 %v1175_v55, 0.0  ;;  %v1044_v49 = vadd.f32 %v5159_v14, %v931_v12  ;;  %v1245_v14 = vmax.f32 %v1166_v22, 0.0  ;;  %1658 = vperm.xlu2 %4511, %v414_v34  }
 0x1f7   : > { %v5261_v53 = vpop.f32.mrf.mxu3  ;;  %v919_v4 = vadd.f32 %v5069_v40, %v770_v54  ;;  %v1038_v6 = vadd.f32 %v5122_v57, %v925_v9  ;;  %v4417_v40 = vld [vmem:[%s4678_s21 + $0xf4] sm:$0xf0]  ;;  %2239 = vmatpush.bf16.msrb.mxu0 %v4040_v43  ;;  %v4395_v54 = vld [vmem:[%s4678_s21 + $0x44] sm:$0xf0] }
 0x1f8   : > { %1365 = vmatpush.msrb.mxu3 %v1252_v18  ;;  %v1157_v19 = vadd.f32 %v5022_v15, %v1044_v49  ;;  %v1243_v18 = vmax.f32 %v1160_v29, 0.0  ;;  %v4104_v15 = vor.u32 %v4417_v40, %v4103_v26  ;;  %v4079_v29 = vld [vmem:[%s4678_s21 + $0xc0] sm:$0xf]  ;;  %v4393_v43 = vld [vmem:[%s4678_s21 + $0x34] sm:$0xf0]  ;;  %v431_v40 = vld [vmem:[%s7288_s2 + $0xf0] sm:$0xff] }
 0x1f9   : > { %v1076_v45 = vpop.f32.mrf.mxu1  ;;  %v1032_v57 = vadd.f32 %v5083_v38, %v919_v4  ;;  %v1148_v38 = vadd.f32 %v4977_v0, %v5109_v52  ;;  %v4087_v52 = vld [vmem:[%s4678_s21 + $0xd0] sm:$0xf]  ;;  %v408_v26 = vld [vmem:[%s7288_s2 + $0x38] sm:$0xff]  ;;  %1743 = vperm.xlu0 %4512, %v431_v40  }
 0x1fa   : > { %v5266_v58 = vadd.f32 %v1076_v45, %v964_v32  ;;  %1366 = vmatpush.msrb.mxu3 %v1251_v42  ;;  %v5285_v16 = vpop.f32.mrf.mxu2  ;;  %v1151_v42 = vadd.f32 %v4992_v5, %v1038_v6  ;;  %v1242_v10 = vmax.f32 %v1157_v19, 0.0  ;;  %v428_v45 = vld [vmem:[%s7288_s2 + $0xd8] sm:$0xff]  ;;  %v4399_v5 = vld [vmem:[%s4678_s21 + $0x64] sm:$0xf0]  ;;  %2328 = vmatpush.bf16.msrb.mxu1 %v4104_v15  ;;  %v1269_v6 = vld [vmem:[%s7292_s6] sm:$0xff]  ;;  %v4016_v19 = vor.u32 %v4395_v54, %v4015_v37 }
 0x1fb   : > { %v5274_v63 = vpop.f32.mrf.mxu0  ;;  %v4032_v61 = vor.u32 %v4399_v5, %v4031_v47  ;;  %v1145_v12 = vadd.f32 %v4962_v59, %v1032_v57  ;;  %v1239_v22 = vmax.f32 %v1148_v38, 0.0  ;;  %v799_v15 = vld [vmem:[%s7290_s4 + $0xf0] sm:$0xff]  ;;  %v3999_v47 = vld [vmem:[%s4678_s21 + $0x20] sm:$0xf]  ;;  %v4391_v5 = vld [vmem:[%s4678_s21 + $0x24] sm:$0xf0] }
 0x1fc   : > { %1367 = vmatpush.msrb.mxu3 %v1250_v31  ;;  %v1241_v31 = vmax.f32 %v1154_v62, 0.0  ;;  %v1240_v51 = vmax.f32 %v1151_v42, 0.0  ;;  %v4071_v42 = vld [vmem:[%s4678_s21 + $0xb0] sm:$0xf]  ;;  %v798_v38 = vld [vmem:[%s7290_s4 + $0xe8] sm:$0xff] }
 0x1fd   : > { %1643 = vperm.xlu1 %4510, %v411_v46   ;;  %2240 = vmatpush.bf16.msrb.mxu0 %v4032_v61  ;;  %v1238_v59 = vmax.f32 %v1145_v12, 0.0  ;;  %v4000_v61 = vor.u32 %v4391_v5, %v3999_v47  ;;  %v1006_v12 = vadd.f32 %v5172_v23, %v799_v15  ;;  %v4047_v47 = vld [vmem:[%s4678_s21 + $0x80] sm:$0xf]  ;;  %v4403_v5 = vld [vmem:[%s4678_s21 + $0x84] sm:$0xf0] }
 0x1fe   : > { %1368 = vmatpush.msrb.mxu3 %v1249_v48  ;;  %v4096_v48 = vor.u32 %v4415_v27, %v4095_v21  ;;  %v1271_v21 = vld [vmem:[%s7292_s6 + $0x10] sm:$0xff]  ;;  %v4063_v27 = vld [vmem:[%s4678_s21 + $0xa0] sm:$0xf] }
 0x1ff   : > { %v5287_v56 = vpop.f32.mrf.mxu3  ;;  %v1119_v23 = vadd.f32 %v5218_v24, %v1006_v12  ;;  %v412_v24 = vld [vmem:[%s7288_s2 + $0x58] sm:$0xff]  ;;  %v4307_v12 = vld [vmem:[%s7287_s1 + $0x8] sm:$0xf0] }
 0x200   : > { %1369 = vmatpush.msrb.mxu3 %v1248_v11  ;;  %v4397_v11 = vld [vmem:[%s4678_s21 + $0x54] sm:$0xf0]  ;;  %2329 = vmatpush.bf16.msrb.mxu1 %v4096_v48  ;;  %v4407_v48 = vld [vmem:[%s4678_s21 + $0xa4] sm:$0xf0] }
 0x201   : > { %v5289_v60 = vpop.f32.mrf.mxu1  ;;  %v4024_v39 = vor.u32 %v4397_v11, %v4023_v2  ;;  %v4064_v2 = vor.u32 %v4407_v48, %v4063_v27  ;;  %v797_v11 = vld [vmem:[%s7290_s4 + $0xe0] sm:$0xff]  ;;  %1648 = vperm.xlu0 %4512, %v412_v24   ;;  %v4048_v27 = vor.u32 %v4403_v5, %v4047_v47  ;;  %v7360_v24 = vld [vmem:[#allocation10_spill] sm:$0xff] }
 0x202   : > { %1370 = vmatpush.msrb.mxu3 %v1247_v25  ;;  %v5322_v36 = vpop.f32.mrf.mxu2  ;;  %v4413_v25 = vld [vmem:[%s4678_s21 + $0xd4] sm:$0xf0]  ;;  %v1000_v37 = vadd.f32 %v5139_v3, %v797_v11  ;;  %v794_v3 = vld [vmem:[%s7290_s4 + $0xc8] sm:$0xff]  ;;  %v3791_v48 = vld [vmem:[%s7287_s1] sm:$0xf] }
 0x203   : > { %v5303_v41 = vpop.f32.mrf.mxu0  ;;  %v4088_v49 = vor.u32 %v4413_v25, %v4087_v52  ;;  %2241 = vmatpush.bf16.msrb.mxu0 %v4024_v39  ;;  %v4389_v52 = vld [vmem:[%s4678_s21 + $0x14] sm:$0xf0]  ;;  %v7357_v11 = vld [vmem:[#allocation6_spill] sm:$0xff] }
 0x204   : > { %1371 = vmatpush.msrb.mxu3 %v1246_v8  ;;  %v425_v8 = vld [vmem:[%s7288_s2 + $0xc0] sm:$0xff]  ;;  %v796_v25 = vld [vmem:[%s7290_s4 + $0xd8] sm:$0xff] }
 0x205   : > { %1728 = vperm.xlu1 %4510, %v428_v45   ;;  %2330 = vmatpush.bf16.msrb.mxu1 %v4088_v49  ;;  %v1003_v49 = vadd.f32 %v5157_v13, %v798_v38  ;;  %v405_v13 = vld [vmem:[%s7288_s2 + $0x20] sm:$0xff] }
 0x206   : > { %1372 = vmatpush.msrb.mxu3 %v1245_v14  ;;  %v1237_v14 = vmax.f32 %v5075_v35, 0.0  ;;  %v4008_v35 = vor.u32 %v4393_v43, %v4007_v28  ;;  %v7356_v38 = vld [vmem:[#allocation13_spill] sm:$0xff] }
 0x207   : > { %v5314_v20 = vpop.f32.mrf.mxu3  ;;  %2242 = vmatpush.bf16.msrb.mxu0 %v4016_v19  ;;  %v1116_v54 = vadd.f32 %v5214_v17, %v1003_v49  ;;  %v4055_v19 = vld [vmem:[%s4678_s21 + $0x90] sm:$0xf] }
 0x208   : > { %1373 = vmatpush.msrb.mxu3 %v1244_v30  ;;  %v4411_v30 = vld [vmem:[%s4678_s21 + $0xc4] sm:$0xf0]  ;;  %v7354_v17 = vld [vmem:[#allocation15_spill] sm:$0xff] }
 0x209   : > { %v5318_v32 = vpop.f32.mrf.mxu1  ;;  %v4080_v44 = vor.u32 %v4411_v30, %v4079_v29  ;;  %v4405_v30 = vld [vmem:[%s4678_s21 + $0x94] sm:$0xf0] }
 0x20a   : > { %1374 = vmatpush.msrb.mxu3 %v1243_v18  ;;  %v5359_v4 = vpop.f32.mrf.mxu2  ;;  %v430_v18 = vld [vmem:[%s7288_s2 + $0xe8] sm:$0xff]  ;;  %v4056_v43 = vor.u32 %v4405_v30, %v4055_v19 }
 0x20b   : > { %v5331_v55 = vpop.f32.mrf.mxu0  ;;  %2331 = vmatpush.bf16.msrb.mxu1 %v4080_v44  ;;  %2243 = vmatpush.bf16.msrb.mxu0 %v4008_v35  ;;  %v7353_v44 = vld [vmem:[#allocation8_spill] sm:$0xff]  ;;  %v3983_v35 = vld [vmem:[%s4678_s21] sm:$0xf]  ;;  %v410_v19 = vld [vmem:[%s7288_s2 + $0x48] sm:$0xff] }
 0x20c   : > { %1375 = vmatpush.msrb.mxu3 %v1242_v10  ;;  %v4409_v10 = vld [vmem:[%s4678_s21 + $0xb4] sm:$0xf0]  ;;  %1738 = vperm.xlu2 %4511, %v430_v18   ;;  %v997_v28 = vadd.f32 %v7353_v44, %v796_v25  ;;  %v4387_v18 = vld [vmem:[%s4678_s21 + $0x4] sm:$0xf0]  ;;  %v7361_v44 = vld [vmem:[#allocation9_spill] sm:$0xff] }
 0x20d   : > { %1713 = vperm.xlu1 %4510, %v425_v8   ;;  %v4072_v45 = vor.u32 %v4409_v10, %v4071_v42  ;;  %v427_v8 = vld [vmem:[%s7288_s2 + $0xd0] sm:$0xff]  ;;  %v3984_v42 = vor.u32 %v4387_v18, %v3983_v35  ;;  %v422_v30 = vld [vmem:[%s7288_s2 + $0xa8] sm:$0xff]  ;;  %v792_v18 = vld [vmem:[%s7290_s4 + $0xb8] sm:$0xff] }
 0x20e   : > { %1376 = vmatpush.msrb.mxu3 %v1241_v31  ;;  %v7355_v10 = vld [vmem:[#allocation7_spill] sm:$0xff] }
 0x20f   : > { %v5341_v0 = vpop.f32.mrf.mxu3  ;;  %2332 = vmatpush.bf16.msrb.mxu1 %v4072_v45  ;;  %2244 = vmatpush.bf16.msrb.mxu0 %v4000_v61  ;;  %v1273_v45 = vld [vmem:[%s7292_s6 + $0x20] sm:$0xff]  ;;  %v1110_v61 = vadd.f32 %v7356_v38, %v997_v28  ;;  %v426_v38 = vld [vmem:[%s7288_s2 + $0xc8] sm:$0xff] }
 0x210   : > { %1377 = vmatpush.msrb.mxu3 %v1240_v51  ;;  %v1009_v51 = vadd.f32 %v5186_v33, %v800_v7 }
 0x211   : > { %v5345_v9 = vpop.f32.mrf.mxu1  ;;  %v1223_v25 = vadd.f32 %v5287_v56, %v1110_v61  ;;  %v7359_v56 = vld [vmem:[#allocation5_spill] sm:$0xff] }
 0x212   : > { %1378 = vmatpush.msrb.mxu3 %v1239_v22  ;;  %v5403_v39 = vpop.f32.mrf.mxu2  ;;  %v3991_v22 = vld [vmem:[%s4678_s21 + $0x10] sm:$0xf]  ;;  %v1122_v33 = vadd.f32 %v5240_v1, %v1009_v51  ;;  %v793_v51 = vld [vmem:[%s7290_s4 + $0xc0] sm:$0xff] }
 0x213   : > { %v5354_v46 = vpop.f32.mrf.mxu0  ;;  %2333 = vmatpush.bf16.msrb.mxu1 %v4064_v2  ;;  %v795_v1 = vld [vmem:[%s7290_s4 + $0xd0] sm:$0xff]  ;;  %v5456_v2 = vor.u32 %v4307_v12, %v3791_v48  ;;  %v1264_v35 = vmax.f32 %v1223_v25, 0.0 }
 0x214   : > { %1379 = vmatpush.msrb.mxu3 %v1238_v59  ;;  %v3992_v59 = vor.u32 %v4389_v52, %v3991_v22  ;;  %1723 = vperm.xlu2 %4511, %v427_v8   ;;  %v994_v7 = vadd.f32 %v7355_v10, %v795_v1  ;;  %v7358_v22 = vld [vmem:[#allocation11_spill] sm:$0xff]  ;;  %v409_v8 = vld [vmem:[%s7288_s2 + $0x40] sm:$0xff] }
 0x215   : > { %1628 = vperm.xlu1 %4510, %v408_v26   ;;  %v1229_v26 = vadd.f32 %v5341_v0, %v1116_v54  ;;  %v791_v54 = vld [vmem:[%s7290_s4 + $0xb0] sm:$0xff]  ;;  %1633 = vperm.xlu0 %4512, %v409_v8   ;;  %v424_v8 = vld [vmem:[%s7288_s2 + $0xb8] sm:$0xff] }
 0x216   : > { %1380 = vmatpush.msrb.mxu3 %v1237_v14  ;;  %2245 = vmatpush.bf16.msrb.mxu0 %v3992_v59  ;;  %v1107_v52 = vadd.f32 %v7358_v22, %v994_v7 }
 0x217   : > { %1381 = vmatmul.f32.vlgmr.msrb.gmra.mxu3 %v1269_v6  ;;  %v1231_v62 = vpop.f32.mrf.mxu3  ;;  %2334 = vmatpush.bf16.msrb.mxu1 %v4056_v43  ;;  %v1266_v49 = vmax.f32 %v1229_v26, 0.0  ;;  %v790_v43 = vld [vmem:[%s7290_s4 + $0xa8] sm:$0xff] }
 0x218   : > { %v1232_v29 = vadd.f32 %v1231_v62, %v1119_v23  ;;  %v1113_v62 = vadd.f32 %v7354_v17, %v1000_v37  ;;  %v4306_v23 = vld [vmem:[%s7287_s1 + $0x4] sm:$0xf]  ;;  %v1220_v37 = vadd.f32 %v5261_v53, %v1107_v52 }
 0x219   : > { %v5379_v57 = vpop.f32.mrf.mxu1 }
 0x21a   : > { %v1267_v0 = vmax.f32 %v1232_v29, 0.0  ;;  %2246 = vmatpush.bf16.msrb.mxu0 %v3984_v42  ;;  %v1216_v59 = vpop.f32.mrf.mxu2  ;;  %v1263_v42 = vmax.f32 %v1220_v37, 0.0  ;;  %v1279_v37 = vld [vmem:[%s7292_s6 + $0x50] sm:$0xff] }
 0x21b   : > { %v5391_v31 = vpop.f32.mrf.mxu0  ;;  %2335 = vmatpush.bf16.msrb.mxu1 %v4048_v27 }
 0x21c   : > { %1638 = vperm.xlu2 %4511, %v410_v19   ;;  %v979_v10 = vadd.f32 %v5391_v31, %v790_v43  ;;  %v421_v43 = vld [vmem:[%s7288_s2 + $0xa0] sm:$0xff] }
 0x21d   : > { %1613 = vperm.xlu1 %4510, %v405_v13   ;;  %v988_v13 = vadd.f32 %v7359_v56, %v793_v51  ;;  %2247 = vmatmul.bf16.vlgmr.msrb.gmra.mxu0 %v5456_v2 }
 0x21e   : > { %1718 = vperm.xlu0 %4512, %v426_v38   ;;  %v1274_v38 = vld [vmem:[%s7292_s6 + $0x28] sm:$0xff] }
 0x21f   : > { %1384 = vmatmul.f32.gmra.mxu3 %v1271_v21  ;;  %v1234_v34 = vpop.f32.mrf.mxu3  ;;  %v1226_v21 = vadd.f32 %v5314_v20, %v1113_v62  ;;  %v991_v20 = vadd.f32 %v7357_v11, %v794_v3  ;;  %v1101_v53 = vadd.f32 %v7361_v44, %v988_v13  ;;  %v1275_v62 = vld [vmem:[%s7292_s6 + $0x30] sm:$0xff]  ;;  %v7362_v13 = vld [vmem:[#allocation17_spill] sm:$0xff] }
 0x220   : > { %v1235_v14 = vadd.f32 %v1234_v34, %v1122_v33  ;;  %v3793_v33 = vld [vmem:[%s7287_s1 + $0xc] sm:$0xf0] }
 0x221   : > { %v5427_v6 = vpop.f32.mrf.mxu1  ;;  %v5467_v34 = vor.u32 %v4306_v23, %v3793_v33  ;;  %v1104_v1 = vadd.f32 %v7360_v24, %v991_v20  ;;  %v1214_v26 = vadd.f32 %v5403_v39, %v1101_v53  ;;  %v787_v39 = vld [vmem:[%s7290_s4 + $0x90] sm:$0xff]  ;;  %v1277_v20 = vld [vmem:[%s7292_s6 + $0x40] sm:$0xff]  ;;  %v7365_v53 = vld [vmem:[#allocation12_spill] sm:$0xff] }
 0x222   : > { %v1268_v40 = vmax.f32 %v1235_v14, 0.0  ;;  %v1265_v14 = vmax.f32 %v1226_v21, 0.0  ;;  %v407_v21 = vld [vmem:[%s7288_s2 + $0x30] sm:$0xff]  ;;  %v1092_v48 = vadd.f32 %v5427_v6, %v979_v10  ;;  %v970_v51 = vadd.f32 %v5303_v41, %v787_v39  ;;  %v3803_v6 = vld [vmem:[%s7287_s1 + $0x18] sm:$0xf] }
 0x223   : > { %v981_v15 = vpop.f32.mrf.mxu0  ;;  %v1217_v28 = vadd.f32 %v1216_v59, %v1104_v1  ;;  %2336 = vmatmul.bf16.vlgmr.msrb.gmra.mxu1 %v5467_v34  ;;  %v1261_v61 = vmax.f32 %v1214_v26, 0.0  ;;  %v4310_v41 = vld [vmem:[%s7287_s1 + $0x20] sm:$0xf0]  ;;  %v1272_v39 = vld [vmem:[%s7292_s6 + $0x18] sm:$0xff] }
 0x224   : > { %1478 = vmatpush.msrb.mxu2 %v1268_v40  ;;  %v982_v17 = vadd.f32 %v981_v15, %v791_v54  ;;  %v789_v40 = vld [vmem:[%s7290_s4 + $0xa0] sm:$0xff]  ;;  %v788_v15 = vld [vmem:[%s7290_s4 + $0x98] sm:$0xff]  ;;  %1623 = vperm.xlu2 %4511, %v407_v21   ;;  %v1083_v23 = vadd.f32 %v5318_v32, %v970_v51 }
 0x225   : > { %1698 = vperm.xlu1 %4510, %v422_v30   ;;  %v976_v47 = vadd.f32 %v5354_v46, %v789_v40  ;;  %v786_v46 = vld [vmem:[%s7290_s4 + $0x88] sm:$0xff]  ;;  %v973_v27 = vadd.f32 %v5331_v55, %v788_v15  ;;  %v7363_v54 = vld [vmem:[#allocation16_spill] sm:$0xff]  ;;  %v4312_v40 = vld [vmem:[%s7287_s1 + $0x34] sm:$0xf] }
 0x226   : > { %1479 = vmatpush.msrb.mxu2 %v1267_v0  ;;  %v419_v0 = vld [vmem:[%s7288_s2 + $0x90] sm:$0xff]  ;;  %v967_v55 = vadd.f32 %v5274_v63, %v786_v46  ;;  %v4309_v63 = vld [vmem:[%s7287_s1 + $0x1c] sm:$0xf]  ;;  %v406_v30 = vld [vmem:[%s7288_s2 + $0x28] sm:$0xff] }
 0x227   : > { %1387 = vmatmul.f32.gmra.mxu3 %v1273_v45  ;;  %v1262_v45 = vmax.f32 %v1217_v28, 0.0  ;;  %v1089_v11 = vadd.f32 %v5379_v57, %v976_v47  ;;  %v1086_v57 = vadd.f32 %v5345_v9, %v973_v27  ;;  %v1190_v28 = vadd.f32 %v7365_v53, %v5266_v58  ;;  %v3815_v58 = vld [vmem:[%s7287_s1 + $0x30] sm:$0xf]  ;;  %v404_v15 = vld [vmem:[%s7288_s2 + $0x18] sm:$0xff]  ;;  %v401_v47 = vld [vmem:[%s7288_s2] sm:$0xff] }
 0x228   : > { %1480 = vmatpush.msrb.mxu2 %v1266_v49  ;;  %v1205_v49 = vadd.f32 %v5285_v16, %v1092_v48  ;;  %v423_v16 = vld [vmem:[%s7288_s2 + $0xb0] sm:$0xff]  ;;  %v1080_v56 = vadd.f32 %v5289_v60, %v967_v55  ;;  %v3829_v46 = vld [vmem:[%s7287_s1 + $0x54] sm:$0xf0] }
 0x229   : > { %v1094_v29 = vpop.f32.mrf.mxu1  ;;  %v1202_v9 = vadd.f32 %v5257_v50, %v1089_v11  ;;  %v1199_v24 = vadd.f32 %v7362_v13, %v1086_v57  ;;  %v402_v50 = vld [vmem:[%s7288_s2 + $0x8] sm:$0xff]  ;;  %1703 = vperm.xlu0 %4512, %v423_v16   ;;  %v1287_v48 = vld [vmem:[%s7292_s6 + $0x90] sm:$0xff]  ;;  %v5647_v11 = vpop.permute.xlu1 %1663  ;;  %v1293_v16 = vld [vmem:[%s7292_s6 + $0xc0] sm:$0xff] }
 0x22a   : > { %1481 = vmatpush.msrb.mxu2 %v1265_v14  ;;  %v1095_v5 = vadd.f32 %v1094_v29, %v982_v17  ;;  %v1258_v32 = vmax.f32 %v1205_v49, 0.0  ;;  %v1196_v29 = vadd.f32 %v7363_v54, %v1083_v23  ;;  %v7364_v14 = vld [vmem:[#allocation14_spill] sm:$0xff]  ;;  %7367 = vst [vmem:[#allocation15_spill] sm:$0xff] %v5647_v11  ;;  %v3841_v49 = vld [vmem:[%s7287_s1 + $0x6c] sm:$0xf0]  ;;  %v1280_v23 = vld [vmem:[%s7292_s6 + $0x58] sm:$0xff] }
 0x22b   : > { %v984_v3 = vpop.f32.mrf.mxu0  ;;  %v1257_v1 = vmax.f32 %v1202_v9, 0.0  ;;  %v1256_v60 = vmax.f32 %v1199_v24, 0.0  ;;  %v1193_v19 = vadd.f32 %v7364_v14, %v1080_v56  ;;  %v1270_v17 = vld [vmem:[%s7292_s6 + $0x8] sm:$0xff]  ;;  %v3851_v13 = vld [vmem:[%s7287_s1 + $0x78] sm:$0xf] }
 0x22c   : > { %1482 = vmatpush.msrb.mxu2 %v1264_v35  ;;  %v985_v7 = vadd.f32 %v984_v3, %v792_v18  ;;  %v1208_v52 = vadd.f32 %v5322_v36, %v1095_v5  ;;  %v3805_v36 = vld [vmem:[%s7287_s1 + $0x24] sm:$0xf0]  ;;  %1708 = vperm.xlu2 %4511, %v424_v8   ;;  %v1255_v44 = vmax.f32 %v1196_v29, 0.0  ;;  %v1253_v18 = vmax.f32 %v1190_v28, 0.0  ;;  %v1281_v3 = vld [vmem:[%s7292_s6 + $0x60] sm:$0xff]  ;;  %v1295_v29 = vld [vmem:[%s7292_s6 + $0xd0] sm:$0xff] }
 0x22d   : > { %1683 = vperm.xlu1 %4510, %v419_v0   ;;  %v5548_v59 = vor.u32 %v4309_v63, %v3805_v36  ;;  %v1254_v35 = vmax.f32 %v1193_v19, 0.0  ;;  %v1285_v5 = vld [vmem:[%s7292_s6 + $0x80] sm:$0xff]  ;;  %v4315_v0 = vld [vmem:[%s7287_s1 + $0x4c] sm:$0xf]  ;;  %v1291_v36 = vld [vmem:[%s7292_s6 + $0xb0] sm:$0xff] }
 0x22e   : > { %1483 = vmatpush.msrb.mxu2 %v1263_v42  ;;  %v1259_v33 = vmax.f32 %v1208_v52, 0.0  ;;  %v3817_v42 = vld [vmem:[%s7287_s1 + $0x3c] sm:$0xf0]  ;;  %v5635_v27 = vor.u32 %v4315_v0, %v3829_v46  ;;  %v1282_v8 = vld [vmem:[%s7292_s6 + $0x68] sm:$0xff]  ;;  %v4322_v24 = vld [vmem:[%s7287_s1 + $0x80] sm:$0xf0] }
 0x22f   : > { %1390 = vmatmul.f32.gmra.mxu3 %v1275_v62  ;;  %v4313_v62 = vld [vmem:[%s7287_s1 + $0x38] sm:$0xf0]  ;;  %v5596_v10 = vor.u32 %v4312_v40, %v3817_v42  ;;  %v3863_v28 = vld [vmem:[%s7287_s1 + $0x90] sm:$0xf]  ;;  %v4327_v46 = vld [vmem:[%s7287_s1 + $0xac] sm:$0xf] }
 0x230   : > { %1484 = vmatpush.msrb.mxu2 %v1262_v45  ;;  %v5588_v26 = vor.u32 %v4313_v62, %v3815_v58  ;;  %v1283_v45 = vld [vmem:[%s7292_s6 + $0x70] sm:$0xff]  ;;  %v1288_v42 = vld [vmem:[%s7292_s6 + $0x98] sm:$0xff] }
 0x231   : > { %v1097_v31 = vpop.f32.mrf.mxu1  ;;  %1618 = vperm.xlu0 %4512, %v406_v30   ;;  %v1297_v30 = vld [vmem:[%s7292_s6 + $0xe0] sm:$0xff]  ;;  %v1299_v40 = vld [vmem:[%s7292_s6 + $0xf0] sm:$0xff] }
 0x232   : > { %v1098_v12 = vadd.f32 %v1097_v31, %v985_v7  ;;  %1485 = vmatpush.msrb.mxu2 %v1261_v61  ;;  %v403_v7 = vld [vmem:[%s7288_s2 + $0x10] sm:$0xff]  ;;  %v3827_v31 = vld [vmem:[%s7287_s1 + $0x48] sm:$0xf] }
 0x233   : > { %2341 = vmatmul.bf16.gmra.mxu1 %v5548_v59  ;;  %v4316_v61 = vld [vmem:[%s7287_s1 + $0x50] sm:$0xf0] }
 0x234   : > { %v1211_v22 = vadd.f32 %v5359_v4, %v1098_v12  ;;  %v5538_v4 = vor.u32 %v4310_v41, %v3803_v6  ;;  %1693 = vperm.xlu2 %4511, %v421_v43   ;;  %v5627_v21 = vor.u32 %v4316_v61, %v3827_v31  ;;  %v1276_v12 = vld [vmem:[%s7292_s6 + $0x38] sm:$0xff]  ;;  %v3839_v6 = vld [vmem:[%s7287_s1 + $0x60] sm:$0xf]  ;;  %v4319_v41 = vld [vmem:[%s7287_s1 + $0x68] sm:$0xf0] }
 0x235   : > { %1598 = vperm.xlu1 %4510, %v402_v50   ;;  %v5665_v57 = vor.u32 %v4319_v41, %v3839_v6  ;;  %v5703_v50 = vor.u32 %v4322_v24, %v3851_v13  ;;  %v4325_v43 = vld [vmem:[%s7287_s1 + $0x98] sm:$0xf0]  ;;  %v4328_v31 = vld [vmem:[%s7287_s1 + $0xb0] sm:$0xf0]  ;;  %v3887_v24 = vld [vmem:[%s7287_s1 + $0xc0] sm:$0xf] }
 0x236   : > { %v1260_v25 = vmax.f32 %v1211_v22, 0.0  ;;  %2252 = vmatmul.bf16.gmra.mxu0 %v5538_v4  ;;  %v1278_v22 = vld [vmem:[%s7292_s6 + $0x48] sm:$0xff]  ;;  %v1292_v6 = vld [vmem:[%s7292_s6 + $0xb8] sm:$0xff] }
 0x237   : > { %1393 = vmatmul.f32.gmra.mxu3 %v1277_v20  ;;  %v1289_v20 = vld [vmem:[%s7292_s6 + $0xa0] sm:$0xff] }
 0x238   : > { %1486 = vmatpush.msrb.mxu2 %v1260_v25  ;;  %v4318_v25 = vld [vmem:[%s7287_s1 + $0x64] sm:$0xf] }
 0x239   : > { %1603 = vperm.xlu0 %4512, %v403_v7   ;;  %v5673_v63 = vor.u32 %v4318_v25, %v3841_v49 }
 0x23a   : > { %1487 = vmatpush.msrb.mxu2 %v1259_v33 }
 0x23c   : > { %1488 = vmatpush.msrb.mxu2 %v1258_v32  ;;  %1608 = vperm.xlu2 %4511, %v404_v15  }
 0x23e   : > { %1489 = vmatpush.msrb.mxu2 %v1257_v1  ;;  %v4321_v1 = vld [vmem:[%s7287_s1 + $0x7c] sm:$0xf] }
 0x23f   : > { %1396 = vmatmul.f32.gmra.mxu3 %v1279_v37  ;;  %v3853_v37 = vld [vmem:[%s7287_s1 + $0x84] sm:$0xf0] }
 0x240   : > { %1490 = vmatpush.msrb.mxu2 %v1256_v60  ;;  %v5645_v51 = vpop.permute.xlu2 %1668  ;;  %v5711_v54 = vor.u32 %v4321_v1, %v3853_v37  ;;  %v1284_v60 = vld [vmem:[%s7292_s6 + $0x78] sm:$0xff]  ;;  %v4331_v1 = vld [vmem:[%s7287_s1 + $0xc8] sm:$0xf0] }
 0x241   : > { %7366 = vst [vmem:[#allocation8_spill] sm:$0xff] %v5645_v51 }
 0x242   : > { %1491 = vmatpush.msrb.mxu2 %v1255_v44  ;;  %v1286_v44 = vld [vmem:[%s7292_s6 + $0x88] sm:$0xff] }
 0x243   : > { %2346 = vmatmul.bf16.gmra.mxu1 %v5596_v10 }
 0x244   : > { %1492 = vmatpush.msrb.mxu2 %v1254_v35  ;;  %1593 = vperm.xlu2 %4511, %v401_v47   ;;  %v1290_v47 = vld [vmem:[%s7292_s6 + $0xa8] sm:$0xff] }
 0x246   : > { %1493 = vmatpush.msrb.mxu2 %v1253_v18  ;;  %2257 = vmatmul.bf16.gmra.mxu0 %v5588_v26  ;;  %v5741_v18 = vor.u32 %v4325_v43, %v3863_v28  ;;  %v3889_v28 = vld [vmem:[%s7287_s1 + $0xcc] sm:$0xf0] }
 0x247   : > { %1399 = vmatmul.f32.gmra.mxu3 %v1281_v3  ;;  %1494 = vmatmul.f32.vlgmr.msrb.gmra.mxu2 %v1270_v17  ;;  %v4324_v3 = vld [vmem:[%s7287_s1 + $0x94] sm:$0xf]  ;;  %v3865_v17 = vld [vmem:[%s7287_s1 + $0x9c] sm:$0xf0] }
 0x248   : > { %v5655_v52 = vpop.permute.xlu2 %1748  ;;  %v5749_v58 = vor.u32 %v4324_v3, %v3865_v17 }
 0x249   : > { %7368 = vst [vmem:[#allocation7_spill] sm:$0xff] %v5655_v52 }
 0x24f   : > { %1402 = vmatmul.f32.gmra.mxu3 %v1283_v45  ;;  %1497 = vmatmul.f32.gmra.mxu2 %v1272_v39  ;;  %v1301_v39 = vld [vmem:[%s7292_s6 + $0x100] sm:$0xff] }
 0x250   : > { %v5683_v33 = vpop.permute.xlu2 %1658 }
 0x251   : > { %7370 = vst [vmem:[#allocation6_spill] sm:$0xff] %v5683_v33 }
 0x253   : > { %2351 = vmatmul.bf16.gmra.mxu1 %v5635_v27 }
 0x256   : > { %2262 = vmatmul.bf16.gmra.mxu0 %v5627_v21 }
 0x257   : > { %1405 = vmatmul.f32.gmra.mxu3 %v1285_v5  ;;  %1500 = vmatmul.f32.gmra.mxu2 %v1274_v38  ;;  %v3875_v38 = vld [vmem:[%s7287_s1 + $0xa8] sm:$0xf] }
 0x258   : > { %v5783_v0 = vor.u32 %v4328_v31, %v3875_v38 }
 0x25a   : > { %7383 = vst [vmem:[#allocation22_spill] sm:$0xff] %v5783_v0 }
 0x25f   : > { %1408 = vmatmul.f32.gmra.mxu3 %v1287_v48  ;;  %1503 = vmatmul.f32.gmra.mxu2 %v1276_v12  ;;  %v5657_v55 = vpop.permute.xlu1 %1653  ;;  %v3877_v48 = vld [vmem:[%s7287_s1 + $0xb4] sm:$0xf0] }
 0x260   : > { %7369 = vst [vmem:[#allocation13_spill] sm:$0xff] %v5657_v55  ;;  %v5791_v12 = vor.u32 %v4327_v46, %v3877_v48 }
 0x263   : > { %2356 = vmatmul.bf16.gmra.mxu1 %v5673_v63 }
 0x266   : > { %2267 = vmatmul.bf16.gmra.mxu0 %v5665_v57  ;;  %v5693_v56 = vpop.permute.xlu2 %1738 }
 0x267   : > { %1411 = vmatmul.f32.gmra.mxu3 %v1289_v20  ;;  %1506 = vmatmul.f32.gmra.mxu2 %v1278_v22  ;;  %v5685_v9 = vpop.permute.xlu1 %1733  ;;  %7372 = vst [vmem:[#allocation5_spill] sm:$0xff] %v5693_v56  ;;  %v1303_v22 = vld [vmem:[%s7292_s6 + $0x110] sm:$0xff] }
 0x268   : > { %7371 = vst [vmem:[#allocation11_spill] sm:$0xff] %v5685_v9 }
 0x26b   : > { %v5753_v62 = vpop.permute.xlu0 %1743 }
 0x26c   : > { %7377 = vst [vmem:[#allocation14_spill] sm:$0xff] %v5753_v62 }
 0x26e   : > { %v5721_v14 = vpop.permute.xlu2 %1723 }
 0x26f   : > { %1414 = vmatmul.f32.gmra.mxu3 %v1291_v36  ;;  %1509 = vmatmul.f32.gmra.mxu2 %v1280_v23  ;;  %v5695_v32 = vpop.permute.xlu1 %1643  ;;  %7374 = vst [vmem:[#allocation9_spill] sm:$0xff] %v5721_v14  ;;  %v420_v23 = vld [vmem:[%s7288_s2 + $0x98] sm:$0xff] }
 0x270   : > { %7373 = vst [vmem:[#allocation10_spill] sm:$0xff] %v5695_v32  ;;  %1688 = vperm.xlu0 %4512, %v420_v23  }
 0x273   : > { %2361 = vmatmul.bf16.gmra.mxu1 %v5711_v54  ;;  %v5765_v45 = vpop.permute.xlu0 %1648 }
 0x274   : > { %7380 = vst [vmem:[#allocation19_spill] sm:$0xff] %v5765_v45 }
 0x276   : > { %2272 = vmatmul.bf16.gmra.mxu0 %v5703_v50  ;;  %v5739_v35 = vpop.permute.xlu2 %1638 }
 0x277   : > { %1417 = vmatmul.f32.gmra.mxu3 %v1293_v16  ;;  %1512 = vmatmul.f32.gmra.mxu2 %v1282_v8  ;;  %v5723_v19 = vpop.permute.xlu1 %1728  ;;  %7376 = vst [vmem:[#allocation16_spill] sm:$0xff] %v5739_v35  ;;  %v1305_v16 = vld [vmem:[%s7292_s6 + $0x120] sm:$0xff]  ;;  %v1294_v8 = vld [vmem:[%s7292_s6 + $0xc8] sm:$0xff] }
 0x278   : > { %7375 = vst [vmem:[#allocation17_spill] sm:$0xff] %v5723_v19 }
 0x27e   : > { %v5763_v15 = vpop.permute.xlu2 %1623 }
 0x27f   : > { %1420 = vmatmul.f32.gmra.mxu3 %v1295_v29  ;;  %1515 = vmatmul.f32.gmra.mxu2 %v1284_v60  ;;  %v5731_v53 = vpop.permute.xlu1 %1713  ;;  %7379 = vst [vmem:[#allocation18_spill] sm:$0xff] %v5763_v15  ;;  %v5832_v60 = vor.u32 %v4331_v1, %v3887_v24  ;;  %v418_v24 = vld [vmem:[%s7288_s2 + $0x88] sm:$0xff]  ;;  %v1309_v1 = vld [vmem:[%s7292_s6 + $0x140] sm:$0xff] }
 0x280   : > { %1678 = vperm.xlu2 %4511, %v418_v24   ;;  %v1311_v24 = vld [vmem:[%s7292_s6 + $0x150] sm:$0xff] }
 0x281   : > { %7388 = vst [vmem:[#allocation27_spill] sm:$0xff] %v5832_v60 }
 0x283   : > { %2366 = vmatmul.bf16.gmra.mxu1 %v5749_v58 }
 0x286   : > { %2277 = vmatmul.bf16.gmra.mxu0 %v5741_v18  ;;  %v5781_v61 = vpop.permute.xlu2 %1708 }
 0x287   : > { %1423 = vmatmul.f32.gmra.mxu3 %v1297_v30  ;;  %1518 = vmatmul.f32.gmra.mxu2 %v1286_v44  ;;  %v5761_v7 = vpop.permute.xlu1 %1628  ;;  %7382 = vst [vmem:[#allocation21_spill] sm:$0xff] %v5781_v61  ;;  %v5803_v41 = vpop.permute.xlu0 %1633  ;;  %v4330_v44 = vld [vmem:[%s7287_s1 + $0xc4] sm:$0xf] }
 0x288   : > { %7378 = vst [vmem:[#allocation12_spill] sm:$0xff] %v5761_v7  ;;  %v5840_v3 = vor.u32 %v4330_v44, %v3889_v28  ;;  %v3899_v28 = vld [vmem:[%s7287_s1 + $0xd8] sm:$0xf] }
 0x289   : > { %7384 = vst [vmem:[#allocation23_spill] sm:$0xff] %v5803_v41 }
 0x28e   : > { %v5805_v25 = vpop.permute.xlu2 %1693 }
 0x28f   : > { %1426 = vmatmul.f32.gmra.mxu3 %v1299_v40  ;;  %1521 = vmatmul.f32.gmra.mxu2 %v1288_v42  ;;  %v5773_v5 = vpop.permute.xlu1 %1613  ;;  %v417_v40 = vld [vmem:[%s7288_s2 + $0x80] sm:$0xff]  ;;  %v1307_v42 = vld [vmem:[%s7292_s6 + $0x130] sm:$0xff] }
 0x290   : > { %7381 = vst [vmem:[#allocation20_spill] sm:$0xff] %v5773_v5  ;;  %v5820_v13 = vpop.permute.xlu0 %1718  ;;  %1673 = vperm.xlu0 %4512, %v417_v40  }
 0x291   : > { %7386 = vst [vmem:[#allocation25_spill] sm:$0xff] %v5820_v13 }
 0x293   : > { %2371 = vmatmul.bf16.gmra.mxu1 %v5791_v12 }
 0x296   : > { %2282 = vmatmul.bf16.gmra.mxu0 %v5783_v0  ;;  %v5828_v37 = vpop.permute.xlu2 %1608 }
 0x297   : > { %1429 = vmatmul.f32.gmra.mxu3 %v1301_v39  ;;  %1524 = vmatmul.f32.gmra.mxu2 %v1290_v47  ;;  %v5807_v49 = vpop.permute.xlu1 %1698  ;;  %7387 = vst [vmem:[#allocation26_spill] sm:$0xff] %v5828_v37  ;;  %v1296_v39 = vld [vmem:[%s7292_s6 + $0xd8] sm:$0xff] }
 0x298   : > { %7385 = vst [vmem:[#allocation24_spill] sm:$0xff] %v5807_v49 }
 0x29a   : > { %v5794_v20 = vpop.f32.mrf.mxu3  ;;  %v2248_v30 = vpop.f32.mrf.mxu0 }
 0x29b   : > { %v5855_v47 = vpop.permute.xlu0 %1703 }
 0x29e   : > { %v5857_v38 = vpop.permute.xlu2 %1593 }
 0x29f   : > { %1432 = vmatmul.f32.gmra.mxu3 %v1303_v22  ;;  %1527 = vmatmul.f32.gmra.mxu2 %v1292_v6  ;;  %v5830_v29 = vpop.permute.xlu1 %1683  ;;  %7389 = vst [vmem:[#allocation28_spill] sm:$0xff] %v5857_v38  ;;  %v2249_v31 = vadd.f32 %v2248_v30, %v5857_v38  ;;  %v1298_v30 = vld [vmem:[%s7292_s6 + $0xe8] sm:$0xff] }
 0x2a0   : > { %v2337_v43 = vpop.f32.mrf.mxu1 }
 0x2a1   : > { %v5863_v23 = vadd.f32 %v2337_v43, %v2249_v31  ;;  %v4334_v43 = vld [vmem:[%s7287_s1 + $0xe0] sm:$0xf0]  ;;  %v3901_v31 = vld [vmem:[%s7287_s1 + $0xe4] sm:$0xf0] }
 0x2a2   : > { %v5809_v36 = vpop.f32.mrf.mxu3  ;;  %v2250_v48 = vpop.f32.mrf.mxu0  ;;  %v5886_v40 = vor.u32 %v4334_v43, %v3899_v28 }
 0x2a3   : > { %2376 = vmatmul.bf16.gmra.mxu1 %v5840_v3  ;;  %v5878_v44 = vpop.permute.xlu0 %1618 }
 0x2a4   : > { %7391 = vst [vmem:[#allocation30_spill] sm:$0xff] %v5878_v44 }
 0x2a5   : > { %7392 = vst [vmem:[#allocation31_spill] sm:$0xff] %v5886_v40 }
 0x2a6   : > { %2287 = vmatmul.bf16.gmra.mxu0 %v5832_v60  ;;  %v1333_v60 = vld [vmem:[%s7293_s7] sm:$0xff] }
 0x2a7   : > { %1435 = vmatmul.f32.gmra.mxu3 %v1305_v16  ;;  %1530 = vmatmul.f32.gmra.mxu2 %v1294_v8  ;;  %v5860_v46 = vpop.permute.xlu1 %1598 }
 0x2a8   : > { %7390 = vst [vmem:[#allocation29_spill] sm:$0xff] %v5860_v46  ;;  %v2251_v22 = vadd.f32 %v2250_v48, %v5860_v46  ;;  %v2339_v6 = vpop.f32.mrf.mxu1 }
 0x2aa   : > { %v5843_v17 = vpop.f32.mrf.mxu3  ;;  %v5867_v8 = vadd.f32 %v2339_v6, %v2251_v22 }
 0x2af   : > { %1438 = vmatmul.f32.gmra.mxu3 %v1307_v42  ;;  %1533 = vmatmul.f32.gmra.mxu2 %v1296_v39  ;;  %v4333_v39 = vld [vmem:[%s7287_s1 + $0xdc] sm:$0xf] }
 0x2b0   : > { %v2342_v48 = vpop.f32.mrf.mxu1  ;;  %v5894_v22 = vor.u32 %v4333_v39, %v3901_v31 }
 0x2b2   : > { %v5865_v16 = vpop.f32.mrf.mxu3  ;;  %7393 = vst [vmem:[#allocation32_spill] sm:$0xff] %v5894_v22 }
 0x2b3   : > { %v2253_v42 = vpop.f32.mrf.mxu0  ;;  %2381 = vmatmul.bf16.gmra.mxu1 %v5894_v22 }
 0x2b6   : > { %2292 = vmatmul.bf16.gmra.mxu0 %v5886_v40 }
 0x2b7   : > { %1441 = vmatmul.f32.gmra.mxu3 %v1309_v1  ;;  %1536 = vmatmul.f32.gmra.mxu2 %v1298_v30  ;;  %v1300_v1 = vld [vmem:[%s7292_s6 + $0xf8] sm:$0xff]  ;;  %v5906_v30 = vpop.permute.xlu0 %1603 }
 0x2b8   : > { %7394 = vst [vmem:[#allocation33_spill] sm:$0xff] %v5906_v30  ;;  %v2254_v28 = vadd.f32 %v2253_v42, %v5906_v30  ;;  %v2344_v31 = vpop.f32.mrf.mxu1  ;;  %v1313_v42 = vld [vmem:[%s7292_s6 + $0x160] sm:$0xff] }
 0x2ba   : > { %v5897_v6 = vpop.f32.mrf.mxu3  ;;  %v5910_v40 = vadd.f32 %v2342_v48, %v2254_v28  ;;  %v3911_v48 = vld [vmem:[%s7287_s1 + $0xf0] sm:$0xf] }
 0x2bb   : > { %v2255_v43 = vpop.f32.mrf.mxu0 }
 0x2bc   : > { %v2256_v39 = vadd.f32 %v2255_v43, %v5828_v37  ;;  %v1383_v43 = vadd.f32 %v5794_v20, %v1333_v60  ;;  %v3913_v37 = vld [vmem:[%s7287_s1 + $0xfc] sm:$0xf0] }
 0x2be   : > { %v5914_v38 = vadd.f32 %v2344_v31, %v2256_v39  ;;  %v4336_v31 = vld [vmem:[%s7287_s1 + $0xf4] sm:$0xf] }
 0x2bf   : > { %1444 = vmatmul.f32.gmra.mxu3 %v1311_v24  ;;  %1539 = vmatmul.f32.gmra.mxu2 %v1300_v1  ;;  %v1302_v24 = vld [vmem:[%s7292_s6 + $0x108] sm:$0xff]  ;;  %v4337_v1 = vld [vmem:[%s7287_s1 + $0xf8] sm:$0xf0]  ;;  %v5941_v0 = vor.u32 %v4336_v31, %v3913_v37 }
 0x2c0   : > { %v5931_v28 = vor.u32 %v4337_v1, %v3911_v48  ;;  %v2347_v22 = vpop.f32.mrf.mxu1  ;;  %v1315_v1 = vld [vmem:[%s7292_s6 + $0x170] sm:$0xff]  ;;  %v1304_v37 = vld [vmem:[%s7292_s6 + $0x118] sm:$0xff] }
 0x2c1   : > { %7396 = vst [vmem:[#allocation35_spill] sm:$0xff] %v5941_v0 }
 0x2c2   : > { %v5912_v46 = vpop.f32.mrf.mxu3  ;;  %7395 = vst [vmem:[#allocation34_spill] sm:$0xff] %v5931_v28 }
 0x2c3   : > { %v2258_v39 = vpop.f32.mrf.mxu0  ;;  %2386 = vmatmul.bf16.gmra.mxu1 %v5941_v0  ;;  %v1335_v0 = vld [vmem:[%s7293_s7 + $0x10] sm:$0xff] }
 0x2c4   : > { %v2259_v30 = vadd.f32 %v2258_v39, %v5773_v5 }
 0x2c6   : > { %2297 = vmatmul.bf16.gmra.mxu0 %v5931_v28  ;;  %v5946_v60 = vadd.f32 %v2347_v22, %v2259_v30 }
 0x2c7   : > { %1447 = vmatmul.f32.gmra.mxu3 %v1313_v42  ;;  %1542 = vmatmul.f32.gmra.mxu2 %v1302_v24  ;;  %v1334_v24 = vld [vmem:[%s7293_s7 + $0x8] sm:$0xff] }
 0x2c8   : > { %v1386_v39 = vadd.f32 %v5809_v36, %v1334_v24  ;;  %v1317_v36 = vld [vmem:[%s7292_s6 + $0x180] sm:$0xff]  ;;  %v3923_v24 = vld [vmem:[%s7287_s1 + $0x108] sm:$0xf] }
 0x2ca   : > { %v5944_v48 = vpop.f32.mrf.mxu3  ;;  %v1495_v20 = vpop.f32.mrf.mxu2 }
 0x2cb   : > { %v1496_v42 = vadd.f32 %v1495_v20, %v1383_v43  ;;  %v2260_v22 = vpop.f32.mrf.mxu0  ;;  %v2349_v43 = vpop.f32.mrf.mxu1 }
 0x2cc   : > { %v2261_v30 = vadd.f32 %v2260_v22, %v5878_v44 }
 0x2cd   : > { %2871 = vperm.xlu1 %4510, %v1496_v42   ;;  %v1306_v42 = vld [vmem:[%s7292_s6 + $0x128] sm:$0xff] }
 0x2ce   : > { %v5962_v5 = vadd.f32 %v2349_v43, %v2261_v30  ;;  %v4339_v30 = vld [vmem:[%s7287_s1 + $0x10c] sm:$0xf] }
 0x2cf   : > { %1450 = vmatmul.f32.gmra.mxu3 %v1315_v1  ;;  %1545 = vmatmul.f32.gmra.mxu2 %v1304_v37  ;;  %v4340_v1 = vld [vmem:[%s7287_s1 + $0x110] sm:$0xf0] }
 0x2d0   : > { %7397 = vst [vmem:[#allocation36_spill] sm:$0xff] %v5962_v5  ;;  %v5979_v37 = vor.u32 %v4340_v1, %v3923_v24  ;;  %v1319_v1 = vld [vmem:[%s7292_s6 + $0x190] sm:$0xff] }
 0x2d2   : > { %v5960_v31 = vpop.f32.mrf.mxu3  ;;  %v1498_v20 = vpop.f32.mrf.mxu2  ;;  %7398 = vst [vmem:[#allocation37_spill] sm:$0xff] %v5979_v37 }
 0x2d3   : > { %v1499_v28 = vadd.f32 %v1498_v20, %v1386_v39  ;;  %v1389_v39 = vadd.f32 %v5843_v17, %v1335_v0  ;;  %v2263_v22 = vpop.f32.mrf.mxu0  ;;  %v2352_v20 = vpop.f32.mrf.mxu1 }
 0x2d4   : > { %v2264_v43 = vadd.f32 %v2263_v22, %v5763_v15  ;;  %v1308_v22 = vld [vmem:[%s7292_s6 + $0x138] sm:$0xff] }
 0x2d5   : > { %2876 = vperm.xlu0 %4512, %v1499_v28   ;;  %v3925_v28 = vld [vmem:[%s7287_s1 + $0x114] sm:$0xf0] }
 0x2d6   : > { %v5989_v44 = vor.u32 %v4339_v30, %v3925_v28  ;;  %2302 = vmatmul.bf16.gmra.mxu0 %v5979_v37  ;;  %v5994_v17 = vadd.f32 %v2352_v20, %v2264_v43 }
 0x2d7   : > { %1453 = vmatmul.f32.gmra.mxu3 %v1317_v36  ;;  %1548 = vmatmul.f32.gmra.mxu2 %v1306_v42  ;;  %v1336_v42 = vld [vmem:[%s7293_s7 + $0x18] sm:$0xff] }
 0x2d8   : > { %7399 = vst [vmem:[#allocation38_spill] sm:$0xff] %v5989_v44  ;;  %2391 = vmatmul.bf16.gmra.mxu1 %v5989_v44  ;;  %v1392_v30 = vadd.f32 %v5865_v16, %v1336_v42  ;;  %v1321_v16 = vld [vmem:[%s7292_s6 + $0x1a0] sm:$0xff]  ;;  %v1310_v42 = vld [vmem:[%s7292_s6 + $0x148] sm:$0xff]  ;;  %v3937_v44 = vld [vmem:[%s7287_s1 + $0x12c] sm:$0xf0] }
 0x2d9   : > { %7400 = vst [vmem:[#allocation39_spill] sm:$0xff] %v5994_v17 }
 0x2da   : > { %v5992_v24 = vpop.f32.mrf.mxu3  ;;  %v1501_v0 = vpop.f32.mrf.mxu2 }
 0x2db   : > { %v1502_v36 = vadd.f32 %v1501_v0, %v1389_v39  ;;  %v2265_v39 = vpop.f32.mrf.mxu0  ;;  %v2354_v43 = vpop.f32.mrf.mxu1 }
 0x2dc   : > { %v2266_v28 = vadd.f32 %v2265_v39, %v5761_v7  ;;  %v4135_v39 = vld [vmem:[%s4678_s21 + $0x130] sm:$0xf]  ;;  %v4342_v7 = vld [vmem:[%s7287_s1 + $0x124] sm:$0xf] }
 0x2dd   : > { %2881 = vperm.xlu2 %4511, %v1502_v36   ;;  %v1337_v36 = vld [vmem:[%s7293_s7 + $0x20] sm:$0xff] }
 0x2de   : > { %v6010_v15 = vadd.f32 %v2354_v43, %v2266_v28  ;;  %v4425_v28 = vld [vmem:[%s4678_s21 + $0x134] sm:$0xf0]  ;;  %v1395_v43 = vadd.f32 %v5897_v6, %v1337_v36 }
 0x2df   : > { %1456 = vmatmul.f32.gmra.mxu3 %v1319_v1  ;;  %1551 = vmatmul.f32.gmra.mxu2 %v1308_v22  ;;  %v3935_v1 = vld [vmem:[%s7287_s1 + $0x120] sm:$0xf]  ;;  %v4343_v22 = vld [vmem:[%s7287_s1 + $0x128] sm:$0xf0] }
 0x2e0   : > { %7401 = vst [vmem:[#allocation40_spill] sm:$0xff] %v6010_v15  ;;  %v6039_v15 = vor.u32 %v4342_v7, %v3937_v44  ;;  %v1338_v7 = vld [vmem:[%s7293_s7 + $0x28] sm:$0xff]  ;;  %v1323_v44 = vld [vmem:[%s7292_s6 + $0x1b0] sm:$0xff] }
 0x2e2   : > { %v6008_v20 = vpop.f32.mrf.mxu3  ;;  %v1504_v0 = vpop.f32.mrf.mxu2  ;;  %7403 = vst [vmem:[#allocation42_spill] sm:$0xff] %v6039_v15 }
 0x2e3   : > { %v1505_v37 = vadd.f32 %v1504_v0, %v1392_v30  ;;  %v6027_v30 = vor.u32 %v4343_v22, %v3935_v1  ;;  %v2268_v0 = vpop.f32.mrf.mxu0  ;;  %v2357_v22 = vpop.f32.mrf.mxu1 }
 0x2e4   : > { %v2269_v1 = vadd.f32 %v2268_v0, %v5803_v41  ;;  %v1312_v0 = vld [vmem:[%s7292_s6 + $0x158] sm:$0xff] }
 0x2e5   : > { %2886 = vperm.xlu1 %4510, %v1505_v37   ;;  %7402 = vst [vmem:[#allocation41_spill] sm:$0xff] %v6027_v30  ;;  %v4136_v37 = vor.u32 %v4425_v28, %v4135_v39  ;;  %v4423_v39 = vld [vmem:[%s4678_s21 + $0x124] sm:$0xf0] }
 0x2e6   : > { %2307 = vmatmul.bf16.gmra.mxu0 %v6027_v30 }
 0x2e7   : > { %1459 = vmatmul.f32.gmra.mxu3 %v1321_v16  ;;  %1554 = vmatmul.f32.gmra.mxu2 %v1310_v42  ;;  %v6044_v16 = vadd.f32 %v2357_v22, %v2269_v1  ;;  %v4127_v42 = vld [vmem:[%s4678_s21 + $0x120] sm:$0xf]  ;;  %v1398_v1 = vadd.f32 %v5912_v46, %v1338_v7  ;;  %v1339_v46 = vld [vmem:[%s7293_s7 + $0x30] sm:$0xff] }
 0x2e8   : > { %2421 = vmatpush.bf16.msra.mxu3 %v4136_v37  ;;  %2396 = vmatmul.bf16.gmra.mxu1 %v6039_v15  ;;  %v4128_v17 = vor.u32 %v4423_v39, %v4127_v42  ;;  %v4421_v37 = vld [vmem:[%s4678_s21 + $0x114] sm:$0xf0]  ;;  %v1325_v7 = vld [vmem:[%s7292_s6 + $0x1c0] sm:$0xff] }
 0x2e9   : > { %7404 = vst [vmem:[#allocation43_spill] sm:$0xff] %v6044_v16  ;;  %v4419_v16 = vld [vmem:[%s4678_s21 + $0x104] sm:$0xf0] }
 0x2ea   : > { %v6042_v6 = vpop.f32.mrf.mxu3  ;;  %v1507_v36 = vpop.f32.mrf.mxu2 }
 0x2eb   : > { %v1508_v28 = vadd.f32 %v1507_v36, %v1395_v43  ;;  %v4119_v43 = vld [vmem:[%s4678_s21 + $0x110] sm:$0xf]  ;;  %v2270_v22 = vpop.f32.mrf.mxu0  ;;  %v2359_v39 = vpop.f32.mrf.mxu1 }
 0x2ec   : > { %2422 = vmatpush.bf16.msra.mxu3 %v4128_v17  ;;  %v4120_v36 = vor.u32 %v4421_v37, %v4119_v43  ;;  %v2271_v42 = vadd.f32 %v2270_v22, %v5739_v35  ;;  %v1401_v43 = vadd.f32 %v5944_v48, %v1339_v46  ;;  %v1340_v46 = vld [vmem:[%s7293_s7 + $0x38] sm:$0xff] }
 0x2ed   : > { %2891 = vperm.xlu0 %4512, %v1508_v28   ;;  %v4111_v28 = vld [vmem:[%s4678_s21 + $0x100] sm:$0xf] }
 0x2ee   : > { %v6064_v15 = vadd.f32 %v2359_v39, %v2271_v42  ;;  %v4112_v5 = vor.u32 %v4419_v16, %v4111_v28 }
 0x2ef   : > { %1462 = vmatmul.f32.gmra.mxu3 %v1323_v44  ;;  %1557 = vmatmul.f32.gmra.mxu2 %v1312_v0  ;;  %v1314_v44 = vld [vmem:[%s7292_s6 + $0x168] sm:$0xff]  ;;  %v3947_v0 = vld [vmem:[%s7287_s1 + $0x138] sm:$0xf] }
 0x2f0   : > { %2423 = vmatpush.bf16.msra.mxu3 %v4120_v36 }
 0x2f2   : > { %v6062_v41 = vpop.f32.mrf.mxu3  ;;  %v1510_v30 = vpop.f32.mrf.mxu2 }
 0x2f3   : > { %v1511_v17 = vadd.f32 %v1510_v30, %v1398_v1  ;;  %v4346_v30 = vld [vmem:[%s7287_s1 + $0x140] sm:$0xf0]  ;;  %v2273_v37 = vpop.f32.mrf.mxu0  ;;  %v4345_v1 = vld [vmem:[%s7287_s1 + $0x13c] sm:$0xf]  ;;  %v2362_v36 = vpop.f32.mrf.mxu1 }
 0x2f4   : > { %2424 = vmatpush.bf16.msra.mxu3 %v4112_v5  ;;  %v6083_v16 = vor.u32 %v4346_v30, %v3947_v0  ;;  %v3949_v5 = vld [vmem:[%s7287_s1 + $0x144] sm:$0xf0]  ;;  %v2274_v22 = vadd.f32 %v2273_v37, %v5695_v32  ;;  %v1404_v0 = vadd.f32 %v5960_v31, %v1340_v46  ;;  %v1341_v31 = vld [vmem:[%s7293_s7 + $0x40] sm:$0xff]  ;;  %v3959_v46 = vld [vmem:[%s7287_s1 + $0x150] sm:$0xf] }
 0x2f5   : > { %2896 = vperm.xlu2 %4511, %v1511_v17   ;;  %v6093_v42 = vor.u32 %v4345_v1, %v3949_v5 }
 0x2f6   : > { %7405 = vst [vmem:[#allocation44_spill] sm:$0xff] %v6083_v16  ;;  %2312 = vmatmul.bf16.gmra.mxu0 %v6083_v16  ;;  %v6098_v28 = vadd.f32 %v2362_v36, %v2274_v22 }
 0x2f7   : > { %1465 = vmatmul.f32.gmra.mxu3 %v1325_v7  ;;  %1560 = vmatmul.f32.gmra.mxu2 %v1314_v44  ;;  %7406 = vst [vmem:[#allocation45_spill] sm:$0xff] %v6093_v42  ;;  %v1327_v7 = vld [vmem:[%s7292_s6 + $0x1d0] sm:$0xff]  ;;  %v1316_v44 = vld [vmem:[%s7292_s6 + $0x178] sm:$0xff] }
 0x2f8   : > { %2401 = vmatmul.bf16.gmra.mxu1 %v6093_v42  ;;  %v4424_v42 = vld [vmem:[%s4678_s21 + $0x134] sm:$0xf] }
 0x2fa   : > { %v6096_v39 = vpop.f32.mrf.mxu3  ;;  %v1513_v48 = vpop.f32.mrf.mxu2 }
 0x2fb   : > { %v1514_v17 = vadd.f32 %v1513_v48, %v1401_v43  ;;  %v2275_v30 = vpop.f32.mrf.mxu0  ;;  %v2364_v37 = vpop.f32.mrf.mxu1  ;;  %v1329_v48 = vld [vmem:[%s7292_s6 + $0x1e0] sm:$0xff] }
 0x2fc   : > { %v2276_v43 = vadd.f32 %v2275_v30, %v5765_v45  ;;  %v1407_v30 = vadd.f32 %v5992_v24, %v1341_v31  ;;  %v3961_v24 = vld [vmem:[%s7287_s1 + $0x15c] sm:$0xf0] }
 0x2fd   : > { %2901 = vperm.xlu1 %4510, %v1514_v17   ;;  %v1318_v17 = vld [vmem:[%s7292_s6 + $0x188] sm:$0xff] }
 0x2fe   : > { %v6114_v22 = vadd.f32 %v2364_v37, %v2276_v43  ;;  %v4041_v37 = vld [vmem:[%s4678_s21 + $0x78] sm:$0xf0] }
 0x2ff   : > { %1468 = vmatmul.f32.gmra.mxu3 %v1327_v7  ;;  %1563 = vmatmul.f32.gmra.mxu2 %v1316_v44  ;;  %v4349_v7 = vld [vmem:[%s7287_s1 + $0x158] sm:$0xf0] }
 0x300   : > { %7407 = vst [vmem:[#allocation46_spill] sm:$0xff] %v6114_v22  ;;  %v6131_v44 = vor.u32 %v4349_v7, %v3959_v46  ;;  %v4348_v46 = vld [vmem:[%s7287_s1 + $0x154] sm:$0xf]  ;;  %v4137_v22 = vld [vmem:[%s4678_s21 + $0x138] sm:$0xf0] }
 0x301   : > { %v6146_v31 = vor.u32 %v4348_v46, %v3961_v24  ;;  %v1342_v46 = vld [vmem:[%s7293_s7 + $0x48] sm:$0xff]  ;;  %v4412_v24 = vld [vmem:[%s4678_s21 + $0xd4] sm:$0xf] }
 0x302   : > { %v6112_v1 = vpop.f32.mrf.mxu3  ;;  %v1516_v5 = vpop.f32.mrf.mxu2  ;;  %7408 = vst [vmem:[#allocation47_spill] sm:$0xff] %v6131_v44 }
 0x303   : > { %v1517_v36 = vadd.f32 %v1516_v5, %v1404_v0  ;;  %v4400_v0 = vld [vmem:[%s4678_s21 + $0x74] sm:$0xf]  ;;  %v2278_v43 = vpop.f32.mrf.mxu0  ;;  %v2367_v32 = vpop.f32.mrf.mxu1  ;;  %7409 = vst [vmem:[#allocation48_spill] sm:$0xff] %v6146_v31 }
 0x304   : > { %v4416_v5 = vld [vmem:[%s4678_s21 + $0xf4] sm:$0xf]  ;;  %v2279_v35 = vadd.f32 %v2278_v43, %v5657_v55  ;;  %v4044_v45 = vor.u32 %v4400_v0, %v4041_v37  ;;  %v4398_v0 = vld [vmem:[%s4678_s21 + $0x64] sm:$0xf]  ;;  %v4033_v43 = vld [vmem:[%s4678_s21 + $0x68] sm:$0xf0] }
 0x305   : > { %2906 = vperm.xlu0 %4512, %v1517_v36   ;;  %v4105_v36 = vld [vmem:[%s4678_s21 + $0xf8] sm:$0xf0]  ;;  %v4414_v37 = vld [vmem:[%s4678_s21 + $0xe4] sm:$0xf]  ;;  %v4097_v55 = vld [vmem:[%s4678_s21 + $0xe8] sm:$0xf0] }
 0x306   : > { %v4108_v16 = vor.u32 %v4416_v5, %v4105_v36  ;;  %2317 = vmatmul.bf16.gmra.mxu0 %v6131_v44  ;;  %v6150_v7 = vadd.f32 %v2367_v32, %v2279_v35  ;;  %2506 = vmatpush.bf16.msra.mxu2 %v4044_v45  ;;  %v4036_v36 = vor.u32 %v4398_v0, %v4033_v43  ;;  %v1331_v32 = vld [vmem:[%s7292_s6 + $0x1f0] sm:$0xff]  ;;  %v1320_v35 = vld [vmem:[%s7292_s6 + $0x198] sm:$0xff] }
 0x307   : > { %1471 = vmatmul.f32.gmra.mxu3 %v1329_v48  ;;  %1566 = vmatmul.f32.gmra.mxu2 %v1318_v17  ;;  %v4100_v45 = vor.u32 %v4414_v37, %v4097_v55  ;;  %v4089_v44 = vld [vmem:[%s4678_s21 + $0xd8] sm:$0xf0]  ;;  %v3799_v55 = vld [vmem:[%s7287_s1 + $0x8] sm:$0xf]  ;;  %v4308_v37 = vld [vmem:[%s7287_s1 + $0x10] sm:$0xf0] }
 0x308   : > { %7410 = vst [vmem:[#allocation49_spill] sm:$0xff] %v6150_v7  ;;  %2595 = vmatpush.bf16.msra.mxu0 %v4108_v16  ;;  %2406 = vmatmul.bf16.gmra.mxu1 %v6146_v31  ;;  %v4396_v16 = vld [vmem:[%s4678_s21 + $0x54] sm:$0xf]  ;;  %v6185_v7 = vor.u32 %v4308_v37, %v3799_v55  ;;  %v3971_v55 = vld [vmem:[%s7287_s1 + $0x168] sm:$0xf] }
 0x309   : > { %v4352_v37 = vld [vmem:[%s7287_s1 + $0x170] sm:$0xf0] }
 0x30a   : > { %v6148_v48 = vpop.f32.mrf.mxu3  ;;  %v1519_v17 = vpop.f32.mrf.mxu2  ;;  %2507 = vmatpush.bf16.msra.mxu2 %v4036_v36  ;;  %v4092_v36 = vor.u32 %v4412_v24, %v4089_v44  ;;  %v1343_v44 = vld [vmem:[%s7293_s7 + $0x50] sm:$0xff]  ;;  %v1322_v24 = vld [vmem:[%s7292_s6 + $0x1a8] sm:$0xff] }
 0x30b   : > { %v1520_v5 = vadd.f32 %v1519_v17, %v1407_v30  ;;  %v4025_v30 = vld [vmem:[%s4678_s21 + $0x58] sm:$0xf0]  ;;  %v1410_v17 = vadd.f32 %v6008_v20, %v1342_v46  ;;  %v2280_v0 = vpop.f32.mrf.mxu0 }
 0x30c   : > { %2596 = vmatpush.bf16.msra.mxu0 %v4100_v45  ;;  %v4028_v43 = vor.u32 %v4396_v16, %v4025_v30  ;;  %v2281_v20 = vadd.f32 %v2280_v0, %v5683_v33  ;;  %v4394_v45 = vld [vmem:[%s4678_s21 + $0x44] sm:$0xf]  ;;  %v4017_v16 = vld [vmem:[%s4678_s21 + $0x48] sm:$0xf0] }
 0x30d   : > { %2911 = vperm.xlu2 %4511, %v1520_v5   ;;  %v2369_v5 = vpop.f32.mrf.mxu1  ;;  %v4410_v30 = vld [vmem:[%s4678_s21 + $0xc4] sm:$0xf]  ;;  %v4020_v0 = vor.u32 %v4394_v45, %v4017_v16  ;;  %v4081_v33 = vld [vmem:[%s4678_s21 + $0xc8] sm:$0xf0] }
 0x30e   : > { %2508 = vmatpush.bf16.msra.mxu2 %v4028_v43  ;;  %v4140_v43 = vor.u32 %v4424_v42, %v4137_v22  ;;  %v4009_v42 = vld [vmem:[%s4678_s21 + $0x38] sm:$0xf0]  ;;  %v4408_v22 = vld [vmem:[%s4678_s21 + $0xb4] sm:$0xf] }
 0x30f   : > { %1474 = vmatmul.f32.gmra.mxu3 %v1331_v32  ;;  %1569 = vmatmul.f32.gmra.mxu2 %v1320_v35  ;;  %v6180_v35 = vadd.f32 %v2369_v5, %v2281_v20  ;;  %v6202_v20 = vor.u32 %v4352_v37, %v3971_v55  ;;  %v4392_v5 = vld [vmem:[%s4678_s21 + $0x34] sm:$0xf]  ;;  %v4390_v55 = vld [vmem:[%s4678_s21 + $0x24] sm:$0xf]  ;;  %v4001_v37 = vld [vmem:[%s4678_s21 + $0x28] sm:$0xf0] }
 0x310   : > { %2597 = vmatpush.bf16.msra.mxu0 %v4092_v36  ;;  %2688 = vmatpush.bf16.msra.mxu1 %v4140_v43  ;;  %v1413_v36 = vadd.f32 %v6042_v6, %v1343_v44  ;;  %v4012_v16 = vor.u32 %v4392_v5, %v4009_v42  ;;  %v4351_v6 = vld [vmem:[%s7287_s1 + $0x16c] sm:$0xf]  ;;  %v4406_v5 = vld [vmem:[%s4678_s21 + $0xa4] sm:$0xf] }
 0x311   : > { %7411 = vst [vmem:[#allocation50_spill] sm:$0xff] %v6180_v35  ;;  %v4402_v35 = vld [vmem:[%s4678_s21 + $0x84] sm:$0xf] }
 0x312   : > { %v6178_v46 = vpop.f32.mrf.mxu3  ;;  %v1522_v32 = vpop.f32.mrf.mxu2  ;;  %2509 = vmatpush.bf16.msra.mxu2 %v4020_v0  ;;  %7412 = vst [vmem:[#allocation51_spill] sm:$0xff] %v6202_v20  ;;  %v3973_v0 = vld [vmem:[%s7287_s1 + $0x174] sm:$0xf0] }
 0x313   : > { %v1523_v31 = vadd.f32 %v1522_v32, %v1410_v17  ;;  %v4084_v17 = vor.u32 %v4410_v30, %v4081_v33  ;;  %v2283_v33 = vpop.f32.mrf.mxu0  ;;  %v6219_v44 = vor.u32 %v4351_v6, %v3973_v0  ;;  %v4129_v6 = vld [vmem:[%s4678_s21 + $0x128] sm:$0xf0]  ;;  %v6238_v0 = vpop.permute.xlu0 %1688 }
 0x314   : > { %v2284_v32 = vadd.f32 %v2283_v33, %v5647_v11  ;;  %v1344_v33 = vld [vmem:[%s7293_s7 + $0x58] sm:$0xff]  ;;  %7415 = vst [vmem:[#allocation54_spill] sm:$0xff] %v6238_v0 }
 0x315   : > { %2916 = vperm.xlu1 %4510, %v1523_v31   ;;  %v4073_v31 = vld [vmem:[%s4678_s21 + $0xb8] sm:$0xf0]  ;;  %2598 = vmatpush.bf16.msra.mxu0 %v4084_v17  ;;  %v2372_v45 = vpop.f32.mrf.mxu1  ;;  %7413 = vst [vmem:[#allocation52_spill] sm:$0xff] %v6219_v44 }
 0x316   : > { %v4076_v30 = vor.u32 %v4408_v22, %v4073_v31  ;;  %2322 = vmatmul.bf16.gmra.mxu0 %v6202_v20  ;;  %v6223_v17 = vadd.f32 %v2372_v45, %v2284_v32  ;;  %2510 = vmatpush.bf16.msra.mxu2 %v4012_v16  ;;  %v4004_v22 = vor.u32 %v4390_v55, %v4001_v37  ;;  %v4065_v31 = vld [vmem:[%s4678_s21 + $0xa8] sm:$0xf0]  ;;  %v1324_v32 = vld [vmem:[%s7292_s6 + $0x1b8] sm:$0xff]  ;;  %v4422_v16 = vld [vmem:[%s4678_s21 + $0x124] sm:$0xf] }
 0x317   : > { %1572 = vmatmul.f32.gmra.mxu2 %v1322_v24  ;;  %4141 = vmatmul.msk.bf16.vlgmr.msra.gmra.mxu3 %vm801_vm0, %v6185_v7  ;;  %v4068_v45 = vor.u32 %v4406_v5, %v4065_v31  ;;  %v4132_v11 = vor.u32 %v4422_v16, %v4129_v6  ;;  %v4404_v55 = vld [vmem:[%s4678_s21 + $0x94] sm:$0xf]  ;;  %v1416_v37 = vadd.f32 %v6062_v41, %v1344_v33  ;;  %v4057_v31 = vld [vmem:[%s4678_s21 + $0x98] sm:$0xf0] }
 0x318   : > { %7414 = vst [vmem:[#allocation53_spill] sm:$0xff] %v6223_v17  ;;  %2411 = vmatmul.bf16.gmra.mxu1 %v6219_v44  ;;  %v4060_v33 = vor.u32 %v4404_v55, %v4057_v31  ;;  %v4121_v6 = vld [vmem:[%s4678_s21 + $0x118] sm:$0xf0]  ;;  %v3985_v17 = vld [vmem:[%s4678_s21 + $0x8] sm:$0xf0] }
 0x319   : > { %2599 = vmatpush.bf16.msra.mxu0 %v4076_v30  ;;  %v3811_v30 = vld [vmem:[%s7287_s1 + $0x20] sm:$0xf]  ;;  %2689 = vmatpush.bf16.msra.mxu1 %v4132_v11 }
 0x31a   : > { %v6221_v24 = vpop.f32.mrf.mxu3  ;;  %v1525_v43 = vpop.f32.mrf.mxu2  ;;  %2511 = vmatpush.bf16.msra.mxu2 %v4004_v22  ;;  %v4311_v22 = vld [vmem:[%s7287_s1 + $0x28] sm:$0xf0] }
 0x31b   : > { %v1526_v42 = vadd.f32 %v1525_v43, %v1413_v36  ;;  %v4388_v36 = vld [vmem:[%s4678_s21 + $0x14] sm:$0xf]  ;;  %v3993_v43 = vld [vmem:[%s4678_s21 + $0x18] sm:$0xf0]  ;;  %v2285_v5 = vpop.f32.mrf.mxu0 }
 0x31c   : > { %v2286_v16 = vadd.f32 %v2285_v5, %v5645_v51  ;;  %v3812_v5 = vor.u32 %v4311_v22, %v3811_v30 }
 0x31d   : > { %2921 = vperm.xlu0 %4512, %v1526_v42   ;;  %v3996_v42 = vor.u32 %v4388_v36, %v3993_v43  ;;  %2600 = vmatpush.bf16.msra.mxu0 %v4068_v45  ;;  %v2374_v41 = vpop.f32.mrf.mxu1  ;;  %v4386_v43 = vld [vmem:[%s4678_s21 + $0x4] sm:$0xf] }
 0x31e   : > { %v6256_v36 = vadd.f32 %v2374_v41, %v2286_v16  ;;  %v1345_v45 = vld [vmem:[%s7293_s7 + $0x60] sm:$0xff]  ;;  %v3988_v31 = vor.u32 %v4386_v43, %v3985_v17  ;;  %v1328_v43 = vld [vmem:[%s7292_s6 + $0x1d8] sm:$0xff] }
 0x31f   : > { %1575 = vmatmul.f32.gmra.mxu2 %v1324_v32  ;;  %v4420_v32 = vld [vmem:[%s4678_s21 + $0x114] sm:$0xf]  ;;  %v4418_v41 = vld [vmem:[%s4678_s21 + $0x104] sm:$0xf] }
 0x320   : > { %v4124_v20 = vor.u32 %v4420_v32, %v4121_v6  ;;  %7416 = vst [vmem:[#allocation55_spill] sm:$0xff] %v6256_v36  ;;  %2512 = vmatpush.bf16.msra.mxu2 %v3996_v42  ;;  %v4049_v32 = vld [vmem:[%s4678_s21 + $0x88] sm:$0xf0]  ;;  %v1419_v36 = vadd.f32 %v6096_v39, %v1345_v45  ;;  %v6289_v45 = vpop.permute.xlu2 %1678 }
 0x321   : > { %v1326_v6 = vld [vmem:[%s7292_s6 + $0x1c8] sm:$0xff]  ;;  %2601 = vmatpush.bf16.msra.mxu0 %v4060_v33  ;;  %v4052_v16 = vor.u32 %v4402_v35, %v4049_v32  ;;  %7417 = vst [vmem:[#allocation56_spill] sm:$0xff] %v6289_v45 }
 0x322   : > { %v6254_v44 = vpop.f32.mrf.mxu3  ;;  %v1528_v11 = vpop.f32.mrf.mxu2  ;;  %2690 = vmatpush.bf16.msra.mxu1 %v4124_v20  ;;  %v4113_v42 = vld [vmem:[%s4678_s21 + $0x108] sm:$0xf0] }
 0x323   : > { %v1529_v55 = vadd.f32 %v1528_v11, %v1416_v37  ;;  %v4116_v51 = vor.u32 %v4418_v41, %v4113_v42  ;;  %v6272_v37 = vpop.permute.xlu0 %1673  ;;  %v2288_v20 = vpop.f32.mrf.mxu0  ;;  %v1346_v39 = vld [vmem:[%s7293_s7 + $0x68] sm:$0xff]  ;;  %v1347_v42 = vld [vmem:[%s7293_s7 + $0x70] sm:$0xff] }
 0x324   : > { %2513 = vmatpush.bf16.msra.mxu2 %v3988_v31  ;;  %v2289_v17 = vadd.f32 %v2288_v20, %v6272_v37  ;;  %v1330_v20 = vld [vmem:[%s7292_s6 + $0x1e8] sm:$0xff] }
 0x325   : > { %2926 = vperm.xlu2 %4511, %v1529_v55   ;;  %2602 = vmatpush.bf16.msra.mxu0 %v4052_v16  ;;  %v2377_v30 = vpop.f32.mrf.mxu1 }
 0x326   : > { %2691 = vmatpush.bf16.msra.mxu1 %v4116_v51  ;;  %v6277_v33 = vadd.f32 %v2377_v30, %v2289_v17  ;;  %v1422_v51 = vadd.f32 %v6112_v1, %v1346_v39  ;;  %v1425_v17 = vadd.f32 %v6148_v48, %v1347_v42  ;;  %v1348_v48 = vld [vmem:[%s7293_s7 + $0x78] sm:$0xff] }
 0x327   : > { %1578 = vmatmul.f32.gmra.mxu2 %v1326_v6  ;;  %4142 = vmatmul.msk.bf16.gmra.mxu3 %vm801_vm0, %v3812_v5 }
 0x328   : > { %2603 = vmatmul.bf16.vlgmr.msra.gmra.mxu0 %v5467_v34  ;;  %v3823_v34 = vld [vmem:[%s7287_s1 + $0x38] sm:$0xf] }
 0x329   : > { %4157 = vmatmul.msk.bf16.vlgmr.msra.gmra.mxu1 %vm801_vm0, %v6185_v7  ;;  %v4314_v7 = vld [vmem:[%s7287_s1 + $0x40] sm:$0xf0] }
 0x32a   : > { %v6275_v22 = vpop.f32.mrf.mxu3  ;;  %v1531_v35 = vpop.f32.mrf.mxu2  ;;  %v3824_v41 = vor.u32 %v4314_v7, %v3823_v34  ;;  %v1332_v34 = vld [vmem:[%s7292_s6 + $0x1f8] sm:$0xff]  ;;  %v1428_v7 = vadd.f32 %v6178_v46, %v1348_v48 }
 0x32b   : > { %v1532_v11 = vadd.f32 %v1531_v35, %v1419_v36  ;;  %v2290_v36 = vpop.f32.mrf.mxu0 }
 0x32c   : > { %v2291_v55 = vadd.f32 %v2290_v36, %v6289_v45 }
 0x32d   : > { %2931 = vperm.xlu1 %4510, %v1532_v11   ;;  %v2379_v31 = vpop.f32.mrf.mxu1 }
 0x32e   : > { %v6300_v16 = vadd.f32 %v2379_v31, %v2291_v55  ;;  %v3835_v31 = vld [vmem:[%s7287_s1 + $0x50] sm:$0xf] }
 0x32f   : > { %1581 = vmatmul.f32.gmra.mxu2 %v1328_v43 }
 0x332   : > { %v6298_v32 = vpop.f32.mrf.mxu3  ;;  %v1534_v6 = vpop.f32.mrf.mxu2 }
 0x333   : > { %v1535_v1 = vadd.f32 %v1534_v6, %v1422_v51  ;;  %v2293_v30 = vpop.f32.mrf.mxu0 }
 0x334   : > { %v2294_v35 = vadd.f32 %v2293_v30, %v5830_v29  ;;  %v1349_v30 = vld [vmem:[%s7293_s7 + $0x80] sm:$0xff] }
 0x335   : > { %2936 = vperm.xlu0 %4512, %v1535_v1   ;;  %v2382_v11 = vpop.f32.mrf.mxu1 }
 0x336   : > { %v6313_v51 = vadd.f32 %v2382_v11, %v2294_v35  ;;  %v1431_v35 = vadd.f32 %v6221_v24, %v1349_v30  ;;  %v1350_v24 = vld [vmem:[%s7293_s7 + $0x88] sm:$0xff] }
 0x337   : > { %1584 = vmatmul.f32.gmra.mxu2 %v1330_v20  ;;  %4143 = vmatmul.msk.bf16.gmra.mxu3 %vm801_vm0, %v3824_v41 }
 0x338   : > { %2608 = vmatmul.bf16.gmra.mxu0 %v5548_v59  ;;  %v4317_v59 = vld [vmem:[%s7287_s1 + $0x58] sm:$0xf0] }
 0x339   : > { %4158 = vmatmul.msk.bf16.gmra.mxu1 %vm801_vm0, %v3812_v5  ;;  %v3836_v46 = vor.u32 %v4317_v59, %v3835_v31  ;;  %v3847_v59 = vld [vmem:[%s7287_s1 + $0x68] sm:$0xf] }
 0x33a   : > { %v6311_v39 = vpop.f32.mrf.mxu3  ;;  %v1537_v43 = vpop.f32.mrf.mxu2 }
 0x33b   : > { %v1538_v36 = vadd.f32 %v1537_v43, %v1425_v17  ;;  %v2295_v55 = vpop.f32.mrf.mxu0 }
 0x33c   : > { %v2296_v5 = vadd.f32 %v2295_v55, %v6238_v0 }
 0x33d   : > { %2941 = vperm.xlu2 %4511, %v1538_v36   ;;  %v2384_v6 = vpop.f32.mrf.mxu1 }
 0x33e   : > { %v6333_v20 = vadd.f32 %v2384_v6, %v2296_v5  ;;  %v4320_v5 = vld [vmem:[%s7287_s1 + $0x70] sm:$0xf0] }
 0x33f   : > { %1587 = vmatmul.f32.gmra.mxu2 %v1332_v34 }
 0x342   : > { %v6331_v1 = vpop.f32.mrf.mxu3  ;;  %v1540_v42 = vpop.f32.mrf.mxu2 }
 0x343   : > { %v1541_v17 = vadd.f32 %v1540_v42, %v1428_v7  ;;  %v2298_v11 = vpop.f32.mrf.mxu0 }
 0x344   : > { %v2299_v43 = vadd.f32 %v2298_v11, %v5805_v25 }
 0x345   : > { %2946 = vperm.xlu1 %4510, %v1541_v17   ;;  %v2387_v36 = vpop.f32.mrf.mxu1 }
 0x346   : > { %v6344_v7 = vadd.f32 %v2387_v36, %v2299_v43 }
 0x347   : > { %4144 = vmatmul.msk.bf16.gmra.mxu3 %vm801_vm0, %v3836_v46  ;;  %2514 = vmatmul.bf16.vlgmr.msra.gmra.mxu2 %v5456_v2  ;;  %v1434_v2 = vadd.f32 %v6254_v44, %v1350_v24  ;;  %v1351_v44 = vld [vmem:[%s7293_s7 + $0x90] sm:$0xff] }
 0x348   : > { %2613 = vmatmul.bf16.gmra.mxu0 %v5596_v10  ;;  %v1437_v11 = vadd.f32 %v6275_v22, %v1351_v44  ;;  %v1352_v22 = vld [vmem:[%s7293_s7 + $0x98] sm:$0xff] }
 0x349   : > { %4159 = vmatmul.msk.bf16.gmra.mxu1 %vm801_vm0, %v3824_v41 }
 0x34a   : > { %v6342_v48 = vpop.f32.mrf.mxu3  ;;  %v1543_v34 = vpop.f32.mrf.mxu2 }
 0x34b   : > { %v1544_v55 = vadd.f32 %v1543_v34, %v1431_v35  ;;  %v2300_v31 = vpop.f32.mrf.mxu0  ;;  %v3848_v35 = vor.u32 %v4320_v5, %v3847_v59  ;;  %v3859_v5 = vld [vmem:[%s7287_s1 + $0x80] sm:$0xf] }
 0x34c   : > { %v2301_v10 = vadd.f32 %v2300_v31, %v5807_v49 }
 0x34d   : > { %2951 = vperm.xlu0 %4512, %v1544_v55   ;;  %v2389_v6 = vpop.f32.mrf.mxu1 }
 0x34e   : > { %v6361_v17 = vadd.f32 %v2389_v6, %v2301_v10  ;;  %v4323_v10 = vld [vmem:[%s7287_s1 + $0x88] sm:$0xf0] }
 0x352   : > { %v6359_v41 = vpop.f32.mrf.mxu3  ;;  %v1546_v42 = vpop.f32.mrf.mxu2 }
 0x353   : > { %v1547_v30 = vadd.f32 %v1546_v42, %v1434_v2  ;;  %v2303_v43 = vpop.f32.mrf.mxu0 }
 0x354   : > { %v2304_v36 = vadd.f32 %v2303_v43, %v5855_v47 }
 0x355   : > { %2956 = vperm.xlu2 %4511, %v1547_v30   ;;  %v2392_v34 = vpop.f32.mrf.mxu1 }
 0x356   : > { %v6372_v2 = vadd.f32 %v2392_v34, %v2304_v36 }
 0x357   : > { %4145 = vmatmul.msk.bf16.gmra.mxu3 %vm801_vm0, %v3848_v35  ;;  %2519 = vmatmul.bf16.gmra.mxu2 %v5538_v4  ;;  %v1440_v4 = vadd.f32 %v6298_v32, %v1352_v22  ;;  %v1353_v32 = vld [vmem:[%s7293_s7 + $0xa0] sm:$0xff] }
 0x358   : > { %2618 = vmatmul.bf16.gmra.mxu0 %v5635_v27  ;;  %v1443_v43 = vadd.f32 %v6311_v39, %v1353_v32  ;;  %v1354_v39 = vld [vmem:[%s7293_s7 + $0xa8] sm:$0xff] }
 0x359   : > { %4160 = vmatmul.msk.bf16.gmra.mxu1 %vm801_vm0, %v3836_v46 }
 0x35a   : > { %v6370_v55 = vpop.f32.mrf.mxu3  ;;  %v1549_v24 = vpop.f32.mrf.mxu2 }
 0x35b   : > { %v1550_v31 = vadd.f32 %v1549_v24, %v1437_v11  ;;  %v2305_v59 = vpop.f32.mrf.mxu0  ;;  %v3860_v11 = vor.u32 %v4323_v10, %v3859_v5  ;;  %v3871_v10 = vld [vmem:[%s7287_s1 + $0x98] sm:$0xf] }
 0x35c   : > { %v2306_v27 = vadd.f32 %v2305_v59, %v5781_v61 }
 0x35d   : > { %2961 = vperm.xlu1 %4510, %v1550_v31   ;;  %v2394_v6 = vpop.f32.mrf.mxu1 }
 0x35e   : > { %v6389_v30 = vadd.f32 %v2394_v6, %v2306_v27  ;;  %v4326_v27 = vld [vmem:[%s7287_s1 + $0xa0] sm:$0xf0] }
 0x362   : > { %v6387_v46 = vpop.f32.mrf.mxu3  ;;  %v1552_v42 = vpop.f32.mrf.mxu2 }
 0x363   : > { %v1553_v44 = vadd.f32 %v1552_v42, %v1440_v4  ;;  %v2308_v36 = vpop.f32.mrf.mxu0 }
 0x364   : > { %v2309_v34 = vadd.f32 %v2308_v36, %v5731_v53 }
 0x365   : > { %2966 = vperm.xlu0 %4512, %v1553_v44   ;;  %v2397_v24 = vpop.f32.mrf.mxu1 }
 0x366   : > { %v6400_v4 = vadd.f32 %v2397_v24, %v2309_v34 }
 0x367   : > { %4146 = vmatmul.msk.bf16.gmra.mxu3 %vm801_vm0, %v3860_v11  ;;  %2524 = vmatmul.bf16.gmra.mxu2 %v5588_v26  ;;  %v1446_v26 = vadd.f32 %v6331_v1, %v1354_v39  ;;  %v1355_v1 = vld [vmem:[%s7293_s7 + $0xb0] sm:$0xff] }
 0x368   : > { %2623 = vmatmul.bf16.gmra.mxu0 %v5673_v63  ;;  %v1449_v36 = vadd.f32 %v6342_v48, %v1355_v1  ;;  %v1356_v48 = vld [vmem:[%s7293_s7 + $0xb8] sm:$0xff] }
 0x369   : > { %4161 = vmatmul.msk.bf16.gmra.mxu1 %vm801_vm0, %v3848_v35 }
 0x36a   : > { %v6398_v31 = vpop.f32.mrf.mxu3  ;;  %v1555_v22 = vpop.f32.mrf.mxu2 }
 0x36b   : > { %v1556_v59 = vadd.f32 %v1555_v22, %v1443_v43  ;;  %v2310_v5 = vpop.f32.mrf.mxu0  ;;  %v3872_v43 = vor.u32 %v4326_v27, %v3871_v10  ;;  %v3883_v27 = vld [vmem:[%s7287_s1 + $0xb0] sm:$0xf] }
 0x36c   : > { %v2311_v63 = vadd.f32 %v2310_v5, %v5820_v13 }
 0x36d   : > { %2971 = vperm.xlu2 %4511, %v1556_v59   ;;  %v2399_v6 = vpop.f32.mrf.mxu1 }
 0x36e   : > { %v6417_v44 = vadd.f32 %v2399_v6, %v2311_v63  ;;  %v4329_v63 = vld [vmem:[%s7287_s1 + $0xb8] sm:$0xf0] }
 0x372   : > { %v6415_v35 = vpop.f32.mrf.mxu3  ;;  %v1558_v42 = vpop.f32.mrf.mxu2 }
 0x373   : > { %v1559_v32 = vadd.f32 %v1558_v42, %v1446_v26  ;;  %v2313_v34 = vpop.f32.mrf.mxu0 }
 0x374   : > { %v2314_v24 = vadd.f32 %v2313_v34, %v5721_v14 }
 0x375   : > { %2976 = vperm.xlu1 %4510, %v1559_v32   ;;  %v2402_v22 = vpop.f32.mrf.mxu1 }
 0x376   : > { %v6428_v26 = vadd.f32 %v2402_v22, %v2314_v24 }
 0x377   : > { %4147 = vmatmul.msk.bf16.gmra.mxu3 %vm801_vm0, %v3872_v43  ;;  %2529 = vmatmul.bf16.gmra.mxu2 %v5627_v21  ;;  %v1452_v21 = vadd.f32 %v6359_v41, %v1356_v48  ;;  %v1357_v41 = vld [vmem:[%s7293_s7 + $0xc0] sm:$0xff] }
 0x378   : > { %2628 = vmatmul.bf16.gmra.mxu0 %v5711_v54  ;;  %v1455_v34 = vadd.f32 %v6370_v55, %v1357_v41  ;;  %v1358_v55 = vld [vmem:[%s7293_s7 + $0xc8] sm:$0xff] }
 0x379   : > { %4162 = vmatmul.msk.bf16.gmra.mxu1 %vm801_vm0, %v3860_v11 }
 0x37a   : > { %v6426_v59 = vpop.f32.mrf.mxu3  ;;  %v1561_v39 = vpop.f32.mrf.mxu2 }
 0x37b   : > { %v1562_v5 = vadd.f32 %v1561_v39, %v1449_v36  ;;  %v2315_v10 = vpop.f32.mrf.mxu0  ;;  %v3884_v36 = vor.u32 %v4329_v63, %v3883_v27  ;;  %v3895_v63 = vld [vmem:[%s7287_s1 + $0xc8] sm:$0xf] }
 0x37c   : > { %v2316_v54 = vadd.f32 %v2315_v10, %v5723_v19 }
 0x37d   : > { %2981 = vperm.xlu0 %4512, %v1562_v5   ;;  %v2404_v6 = vpop.f32.mrf.mxu1 }
 0x37e   : > { %v6445_v32 = vadd.f32 %v2404_v6, %v2316_v54  ;;  %v4332_v54 = vld [vmem:[%s7287_s1 + $0xd0] sm:$0xf0] }
 0x382   : > { %v6443_v11 = vpop.f32.mrf.mxu3  ;;  %v1564_v42 = vpop.f32.mrf.mxu2 }
 0x383   : > { %v1565_v1 = vadd.f32 %v1564_v42, %v1452_v21  ;;  %v2318_v24 = vpop.f32.mrf.mxu0 }
 0x384   : > { %v2319_v22 = vadd.f32 %v2318_v24, %v5685_v9 }
 0x385   : > { %2986 = vperm.xlu2 %4511, %v1565_v1   ;;  %v2407_v39 = vpop.f32.mrf.mxu1 }
 0x386   : > { %v6456_v21 = vadd.f32 %v2407_v39, %v2319_v22 }
 0x387   : > { %4148 = vmatmul.msk.bf16.gmra.mxu3 %vm801_vm0, %v3884_v36  ;;  %2534 = vmatmul.bf16.gmra.mxu2 %v5665_v57  ;;  %v1458_v57 = vadd.f32 %v6387_v46, %v1358_v55  ;;  %v1359_v46 = vld [vmem:[%s7293_s7 + $0xd0] sm:$0xff] }
 0x388   : > { %2633 = vmatmul.bf16.gmra.mxu0 %v5749_v58  ;;  %v1461_v24 = vadd.f32 %v6398_v31, %v1359_v46  ;;  %v1360_v31 = vld [vmem:[%s7293_s7 + $0xd8] sm:$0xff] }
 0x389   : > { %4163 = vmatmul.msk.bf16.gmra.mxu1 %vm801_vm0, %v3872_v43 }
 0x38a   : > { %v6454_v5 = vpop.f32.mrf.mxu3  ;;  %v1567_v48 = vpop.f32.mrf.mxu2 }
 0x38b   : > { %v1568_v10 = vadd.f32 %v1567_v48, %v1455_v34  ;;  %v2320_v27 = vpop.f32.mrf.mxu0  ;;  %v3896_v34 = vor.u32 %v4332_v54, %v3895_v63 }
 0x38c   : > { %v2321_v58 = vadd.f32 %v2320_v27, %v5693_v56 }
 0x38d   : > { %2991 = vperm.xlu1 %4510, %v1568_v10   ;;  %v2409_v6 = vpop.f32.mrf.mxu1 }
 0x38e   : > { %v6473_v1 = vadd.f32 %v2409_v6, %v2321_v58  ;;  %v3907_v58 = vld [vmem:[%s7287_s1 + $0xe0] sm:$0xf] }
 0x392   : > { %v6471_v43 = vpop.f32.mrf.mxu3  ;;  %v1570_v42 = vpop.f32.mrf.mxu2 }
 0x393   : > { %v1571_v41 = vadd.f32 %v1570_v42, %v1458_v57  ;;  %v2323_v22 = vpop.f32.mrf.mxu0 }
 0x394   : > { %v2324_v39 = vadd.f32 %v2323_v22, %v5753_v62  ;;  %v1361_v22 = vld [vmem:[%s7293_s7 + $0xe0] sm:$0xff] }
 0x395   : > { %2996 = vperm.xlu0 %4512, %v1571_v41   ;;  %v2412_v48 = vpop.f32.mrf.mxu1 }
 0x396   : > { %v6482_v27 = vadd.f32 %v2412_v48, %v2324_v39 }
 0x397   : > { %4149 = vmatmul.msk.bf16.gmra.mxu3 %vm801_vm0, %v3896_v34  ;;  %2539 = vmatmul.bf16.gmra.mxu2 %v5703_v50  ;;  %v1464_v50 = vadd.f32 %v6415_v35, %v1360_v31 }
 0x398   : > { %2638 = vmatmul.bf16.gmra.mxu0 %v5791_v12 }
 0x399   : > { %4164 = vmatmul.msk.bf16.gmra.mxu1 %vm801_vm0, %v3884_v36 }
 0x39a   : > { %v1573_v10 = vpop.f32.mrf.mxu2  ;;  %v2426_v55 = vpop.f32.mrf.mxu3 }
 0x39b   : > { %v1574_v57 = vadd.f32 %v1573_v10, %v1461_v24  ;;  %v2427_v63 = vadd.f32 %v2426_v55, %v5863_v23  ;;  %v2325_v54 = vpop.f32.mrf.mxu0  ;;  %v4335_v23 = vld [vmem:[%s7287_s1 + $0xe8] sm:$0xf0]  ;;  %v1467_v10 = vadd.f32 %v6426_v59, %v1361_v22 }
 0x39c   : > { %v2326_v12 = vadd.f32 %v2325_v54, %v5655_v52  ;;  %v3908_v35 = vor.u32 %v4335_v23, %v3907_v58  ;;  %v1362_v59 = vld [vmem:[%s7293_s7 + $0xe8] sm:$0xff]  ;;  %v4338_v23 = vld [vmem:[%s7287_s1 + $0x100] sm:$0xf0] }
 0x39d   : > { %3001 = vperm.xlu2 %4511, %v1574_v57   ;;  %v2414_v6 = vpop.f32.mrf.mxu1  ;;  %v2773_v39 = vmax.f32 %v2427_v63, 0.0  ;;  %v3919_v63 = vld [vmem:[%s7287_s1 + $0xf8] sm:$0xf] }
 0x39e   : > { %v6498_v41 = vadd.f32 %v2414_v6, %v2326_v12 }
 0x3a2   : > { %v1576_v36 = vpop.f32.mrf.mxu2  ;;  %v2428_v42 = vpop.f32.mrf.mxu3 }
 0x3a3   : > { %v1577_v46 = vadd.f32 %v1576_v36, %v1464_v50  ;;  %v2429_v24 = vadd.f32 %v2428_v42, %v5867_v8  ;;  %v3920_v42 = vor.u32 %v4338_v23, %v3919_v63  ;;  %v3931_v63 = vld [vmem:[%s7287_s1 + $0x110] sm:$0xf]  ;;  %v4341_v23 = vld [vmem:[%s7287_s1 + $0x118] sm:$0xf0] }
 0x3a5   : > { %v2775_v48 = vmax.f32 %v2429_v24, 0.0  ;;  %3006 = vperm.xlu1 %4510, %v1577_v46   ;;  %v2604_v57 = vpop.f32.mrf.mxu0 }
 0x3a6   : > { %v2693_v31 = vpop.f32.mrf.mxu1 }
 0x3a7   : > { %4150 = vmatmul.msk.bf16.gmra.mxu3 %vm801_vm0, %v3908_v35  ;;  %2544 = vmatmul.bf16.gmra.mxu2 %v5741_v18  ;;  %v6507_v55 = vpack.c.bf16 %v2775_v48, %v2773_v39  ;;  %v1470_v18 = vadd.f32 %v6443_v11, %v1362_v59  ;;  %v1363_v11 = vld [vmem:[%s7293_s7 + $0xf0] sm:$0xff]  ;;  %v7418_v39 = vld [vmem:[#allocation22_spill] sm:$0xff] }
 0x3a8   : > { %2643 = vmatmul.bf16.gmra.mxu0 %v5840_v3  ;;  %v1473_v22 = vadd.f32 %v6454_v5, %v1363_v11  ;;  %v1364_v5 = vld [vmem:[%s7293_s7 + $0xf8] sm:$0xff] }
 0x3a9   : > { %4165 = vmatmul.msk.bf16.gmra.mxu1 %vm801_vm0, %v3896_v34 }
 0x3aa   : > { %v1579_v50 = vpop.f32.mrf.mxu2  ;;  %v2431_v8 = vpop.f32.mrf.mxu3 }
 0x3ab   : > { %v1580_v54 = vadd.f32 %v1579_v50, %v1467_v10  ;;  %v2432_v58 = vadd.f32 %v2431_v8, %v5910_v40 }
 0x3ad   : > { %3011 = vperm.xlu0 %4512, %v1580_v54   ;;  %v2606_v40 = vpop.f32.mrf.mxu0  ;;  %v2777_v46 = vmax.f32 %v2432_v58, 0.0  ;;  %v7419_v58 = vld [vmem:[#allocation32_spill] sm:$0xff] }
 0x3ae   : > { %v2695_v12 = vpop.f32.mrf.mxu1 }
 0x3b2   : > { %v1582_v3 = vpop.f32.mrf.mxu2  ;;  %v2433_v6 = vpop.f32.mrf.mxu3 }
 0x3b3   : > { %v1583_v34 = vadd.f32 %v1582_v3, %v1470_v18  ;;  %v2434_v36 = vadd.f32 %v2433_v6, %v5914_v38  ;;  %v1476_v18 = vadd.f32 %v6471_v43, %v1364_v5  ;;  %v7422_v5 = vld [vmem:[#allocation39_spill] sm:$0xff] }
 0x3b5   : > { %v2779_v24 = vmax.f32 %v2434_v36, 0.0  ;;  %3016 = vperm.xlu2 %4511, %v1583_v34   ;;  %v6531_v10 = vpop.f32.mrf.mxu0  ;;  %v7420_v36 = vld [vmem:[#allocation36_spill] sm:$0xff] }
 0x3b6   : > { %v6533_v50 = vpop.f32.mrf.mxu1 }
 0x3b7   : > { %4151 = vmatmul.msk.bf16.gmra.mxu3 %vm801_vm0, %v3920_v42  ;;  %2549 = vmatmul.bf16.gmra.mxu2 %v7418_v39  ;;  %v6529_v48 = vpack.c.bf16 %v2779_v24, %v2777_v46  ;;  %v3932_v46 = vor.u32 %v4341_v23, %v3931_v63  ;;  %v7424_v63 = vld [vmem:[#allocation35_spill] sm:$0xff] }
 0x3b8   : > { %2648 = vmatmul.bf16.gmra.mxu0 %v7419_v58 }
 0x3b9   : > { %4166 = vmatmul.msk.bf16.gmra.mxu1 %vm801_vm0, %v3908_v35 }
 0x3ba   : > { %v1585_v38 = vpop.f32.mrf.mxu2  ;;  %v2436_v8 = vpop.f32.mrf.mxu3 }
 0x3bb   : > { %v1586_v54 = vadd.f32 %v1585_v38, %v1473_v22  ;;  %v2437_v59 = vadd.f32 %v2436_v8, %v5946_v60  ;;  %v7421_v22 = vld [vmem:[#allocation27_spill] sm:$0xff] }
 0x3bd   : > { %3021 = vperm.xlu1 %4510, %v1586_v54   ;;  %v6548_v60 = vpop.f32.mrf.mxu0  ;;  %v2781_v24 = vmax.f32 %v2437_v59, 0.0 }
 0x3be   : > { %v6550_v3 = vpop.f32.mrf.mxu1 }
 0x3c2   : > { %v1588_v35 = vpop.f32.mrf.mxu2  ;;  %v2438_v6 = vpop.f32.mrf.mxu3 }
 0x3c3   : > { %v1589_v34 = vadd.f32 %v1588_v35, %v1476_v18  ;;  %v2439_v11 = vadd.f32 %v2438_v6, %v7420_v36  ;;  %v7423_v35 = vld [vmem:[#allocation28_spill] sm:$0xff]  ;;  %v4344_v36 = vld [vmem:[%s7287_s1 + $0x130] sm:$0xf0] }
 0x3c5   : > { %v2783_v43 = vmax.f32 %v2439_v11, 0.0  ;;  %3026 = vperm.xlu0 %4512, %v1589_v34   ;;  %v6557_v38 = vpop.f32.mrf.mxu0  ;;  %v3943_v34 = vld [vmem:[%s7287_s1 + $0x128] sm:$0xf] }
 0x3c6   : > { %v6559_v8 = vpop.f32.mrf.mxu1 }
 0x3c7   : > { %4152 = vmatmul.msk.bf16.gmra.mxu3 %vm801_vm0, %v3932_v46  ;;  %2554 = vmatmul.bf16.gmra.mxu2 %v7421_v22  ;;  %v6555_v39 = vpack.c.bf16 %v2783_v43, %v2781_v24 }
 0x3c8   : > { %2653 = vmatmul.bf16.gmra.mxu0 %v7424_v63 }
 0x3c9   : > { %4167 = vmatmul.msk.bf16.gmra.mxu1 %vm801_vm0, %v3920_v42 }
 0x3ca   : > { %v2441_v54 = vpop.f32.mrf.mxu3  ;;  %v2515_v58 = vpop.f32.mrf.mxu2 }
 0x3cb   : > { %v2442_v18 = vadd.f32 %v2441_v54, %v7422_v5  ;;  %v2516_v6 = vadd.f32 %v2515_v58, %v7423_v35  ;;  %v7425_v54 = vld [vmem:[#allocation40_spill] sm:$0xff]  ;;  %v7426_v5 = vld [vmem:[#allocation29_spill] sm:$0xff] }
 0x3cd   : > { %v2605_v59 = vadd.f32 %v2604_v57, %v2516_v6  ;;  %v6571_v11 = vpop.f32.mrf.mxu0  ;;  %v3944_v57 = vor.u32 %v4344_v36, %v3943_v34 }
 0x3ce   : > { %v6573_v24 = vpop.f32.mrf.mxu1 }
 0x3cf   : > { %v2694_v23 = vadd.f32 %v2693_v31, %v2605_v59  ;;  %v2785_v31 = vmax.f32 %v2442_v18, 0.0  ;;  %v7427_v59 = vld [vmem:[#allocation31_spill] sm:$0xff]  ;;  %v7429_v18 = vld [vmem:[#allocation33_spill] sm:$0xff] }
 0x3d1   : > { %v2774_v61 = vmax.f32 %v2694_v23, 0.0  ;;  %v3955_v23 = vld [vmem:[%s7287_s1 + $0x140] sm:$0xf] }
 0x3d2   : > { %v2443_v43 = vpop.f32.mrf.mxu3  ;;  %v2517_v22 = vpop.f32.mrf.mxu2 }
 0x3d3   : > { %v2444_v58 = vadd.f32 %v2443_v43, %v7425_v54  ;;  %v2518_v42 = vadd.f32 %v2517_v22, %v7426_v5  ;;  %v7428_v22 = vld [vmem:[#allocation43_spill] sm:$0xff] }
 0x3d5   : > { %v2787_v35 = vmax.f32 %v2444_v58, 0.0  ;;  %v2607_v6 = vadd.f32 %v2606_v40, %v2518_v42  ;;  %v6581_v0 = vpop.f32.mrf.mxu0  ;;  %v7430_v40 = vld [vmem:[#allocation38_spill] sm:$0xff] }
 0x3d6   : > { %v6583_v49 = vpop.f32.mrf.mxu1  ;;  %v4347_v42 = vld [vmem:[%s7287_s1 + $0x148] sm:$0xf0] }
 0x3d7   : > { %v2696_v63 = vadd.f32 %v2695_v12, %v2607_v6  ;;  %4153 = vmatmul.msk.bf16.gmra.mxu3 %vm801_vm0, %v3944_v57  ;;  %2559 = vmatmul.bf16.gmra.mxu2 %v7427_v59  ;;  %v6579_v45 = vpack.c.bf16 %v2787_v35, %v2785_v31 }
 0x3d8   : > { %2658 = vmatmul.bf16.gmra.mxu0 %v7430_v40 }
 0x3d9   : > { %v2776_v13 = vmax.f32 %v2696_v63, 0.0  ;;  %4168 = vmatmul.msk.bf16.gmra.mxu1 %vm801_vm0, %v3932_v46  ;;  %v3956_v63 = vor.u32 %v4347_v42, %v3955_v23 }
 0x3da   : > { %v2446_v43 = vpop.f32.mrf.mxu3  ;;  %v2520_v54 = vpop.f32.mrf.mxu2 }
 0x3db   : > { %v2447_v34 = vadd.f32 %v2446_v43, %v7428_v22  ;;  %v2521_v36 = vadd.f32 %v2520_v54, %v7429_v18  ;;  %v6589_v12 = vpack.c.bf16 %v2776_v13, %v2774_v61  ;;  %v7431_v13 = vld [vmem:[#allocation26_spill] sm:$0xff] }
 0x3dc   : > { %v7432_v22 = vld [vmem:[#allocation34_spill] sm:$0xff] }
 0x3dd   : > { %v2610_v58 = vadd.f32 %v6531_v10, %v2521_v36  ;;  %v6599_v31 = vpop.f32.mrf.mxu0 }
 0x3de   : > { %v6601_v35 = vpop.f32.mrf.mxu1 }
 0x3df   : > { %v2699_v5 = vadd.f32 %v6533_v50, %v2610_v58  ;;  %v2789_v50 = vmax.f32 %v2447_v34, 0.0  ;;  %v7433_v34 = vld [vmem:[#allocation20_spill] sm:$0xff] }
 0x3e2   : > { %v2448_v6 = vpop.f32.mrf.mxu3  ;;  %v2522_v46 = vpop.f32.mrf.mxu2 }
 0x3e3   : > { %v2449_v61 = vadd.f32 %v2448_v6, %v6064_v15  ;;  %v2523_v10 = vadd.f32 %v2522_v46, %v7431_v13  ;;  %v2778_v15 = vmax.f32 %v2699_v5, 0.0  ;;  %v7434_v46 = vld [vmem:[#allocation42_spill] sm:$0xff]  ;;  %v3967_v13 = vld [vmem:[%s7287_s1 + $0x158] sm:$0xf]  ;;  %v4350_v5 = vld [vmem:[%s7287_s1 + $0x160] sm:$0xf0] }
 0x3e5   : > { %v2791_v59 = vmax.f32 %v2449_v61, 0.0  ;;  %v2612_v43 = vadd.f32 %v6548_v60, %v2523_v10  ;;  %v6611_v36 = vpop.f32.mrf.mxu0 }
 0x3e6   : > { %v6613_v40 = vpop.f32.mrf.mxu1 }
 0x3e7   : > { %v2701_v54 = vadd.f32 %v6550_v3, %v2612_v43  ;;  %4154 = vmatmul.msk.bf16.gmra.mxu3 %vm801_vm0, %v3956_v63  ;;  %2564 = vmatmul.bf16.gmra.mxu2 %v7432_v22  ;;  %v6609_v18 = vpack.c.bf16 %v2791_v59, %v2789_v50  ;;  %v7436_v22 = vld [vmem:[#allocation30_spill] sm:$0xff] }
 0x3e8   : > { %2663 = vmatmul.bf16.gmra.mxu0 %v7434_v46  ;;  %v7437_v46 = vld [vmem:[#allocation37_spill] sm:$0xff] }
 0x3e9   : > { %v2780_v58 = vmax.f32 %v2701_v54, 0.0  ;;  %4169 = vmatmul.msk.bf16.gmra.mxu1 %vm801_vm0, %v3944_v57  ;;  %v7435_v54 = vld [vmem:[#allocation46_spill] sm:$0xff] }
 0x3ea   : > { %v2451_v6 = vpop.f32.mrf.mxu3  ;;  %v2525_v23 = vpop.f32.mrf.mxu2 }
 0x3eb   : > { %v2526_v42 = vadd.f32 %v2525_v23, %v7433_v34  ;;  %v6618_v60 = vpack.c.bf16 %v2780_v58, %v2778_v15  ;;  %v2452_v57 = vadd.f32 %v2451_v6, %v6098_v28  ;;  %v3968_v15 = vor.u32 %v4350_v5, %v3967_v13  ;;  %v7438_v13 = vld [vmem:[#allocation18_spill] sm:$0xff] }
 0x3ed   : > { %v2615_v3 = vadd.f32 %v6557_v38, %v2526_v42  ;;  %v6628_v10 = vpop.f32.mrf.mxu0  ;;  %v2793_v58 = vmax.f32 %v2452_v57, 0.0  ;;  %v7439_v57 = vld [vmem:[#allocation45_spill] sm:$0xff] }
 0x3ee   : > { %v6630_v50 = vpop.f32.mrf.mxu1 }
 0x3ef   : > { %v2704_v61 = vadd.f32 %v6559_v8, %v2615_v3 }
 0x3f1   : > { %v2782_v6 = vmax.f32 %v2704_v61, 0.0  ;;  %v4353_v61 = vld [vmem:[%s7287_s1 + $0x178] sm:$0xf0] }
 0x3f2   : > { %v2453_v59 = vpop.f32.mrf.mxu3  ;;  %v2527_v43 = vpop.f32.mrf.mxu2 }
 0x3f3   : > { %v2454_v38 = vadd.f32 %v2453_v59, %v7435_v54  ;;  %v2528_v8 = vadd.f32 %v2527_v43, %v7436_v22  ;;  %v3979_v22 = vld [vmem:[%s7287_s1 + $0x170] sm:$0xf] }
 0x3f5   : > { %v2795_v23 = vmax.f32 %v2454_v38, 0.0  ;;  %v2617_v34 = vadd.f32 %v6571_v11, %v2528_v8  ;;  %v6639_v14 = vpop.f32.mrf.mxu0 }
 0x3f6   : > { %v6641_v28 = vpop.f32.mrf.mxu1 }
 0x3f7   : > { %v2706_v42 = vadd.f32 %v6573_v24, %v2617_v34  ;;  %4155 = vmatmul.msk.bf16.gmra.mxu3 %vm801_vm0, %v3968_v15  ;;  %2569 = vmatmul.bf16.gmra.mxu2 %v7437_v46  ;;  %v2847_v3 = vpack.c.bf16 %v2795_v23, %v2793_v58  ;;  %v7440_v23 = vld [vmem:[#allocation49_spill] sm:$0xff]  ;;  %v7441_v46 = vld [vmem:[#allocation50_spill] sm:$0xff] }
 0x3f8   : > { %2668 = vmatmul.bf16.gmra.mxu0 %v7439_v57 }
 0x3f9   : > { %v2784_v59 = vmax.f32 %v2706_v42, 0.0  ;;  %4170 = vmatmul.msk.bf16.gmra.mxu1 %vm801_vm0, %v3956_v63 }
 0x3fa   : > { %v2456_v54 = vpop.f32.mrf.mxu3  ;;  %v2530_v43 = vpop.f32.mrf.mxu2 }
 0x3fb   : > { %v2531_v5 = vadd.f32 %v2530_v43, %v7438_v13  ;;  %v6646_v11 = vpack.c.bf16 %v2784_v59, %v2782_v6  ;;  %v2457_v63 = vadd.f32 %v2456_v54, %v7440_v23  ;;  %v7442_v6 = vld [vmem:[#allocation12_spill] sm:$0xff]  ;;  %v3980_v59 = vor.u32 %v4353_v61, %v3979_v22  ;;  %v7444_v22 = vld [vmem:[#allocation23_spill] sm:$0xff] }
 0x3fd   : > { %v2620_v24 = vadd.f32 %v6581_v0, %v2531_v5  ;;  %v6656_v8 = vpop.f32.mrf.mxu0  ;;  %v2797_v43 = vmax.f32 %v2457_v63, 0.0  ;;  %v7445_v63 = vld [vmem:[#allocation48_spill] sm:$0xff] }
 0x3fe   : > { %v6658_v58 = vpop.f32.mrf.mxu1 }
 0x3ff   : > { %v2709_v38 = vadd.f32 %v6583_v49, %v2620_v24  ;;  %v7443_v24 = vld [vmem:[#allocation41_spill] sm:$0xff] }
 0x401   : > { %v2786_v23 = vmax.f32 %v2709_v38, 0.0 }
 0x402   : > { %v2458_v34 = vpop.f32.mrf.mxu3  ;;  %v2532_v42 = vpop.f32.mrf.mxu2 }
 0x403   : > { %v2459_v0 = vadd.f32 %v2458_v34, %v7441_v46  ;;  %v2533_v49 = vadd.f32 %v2532_v42, %v7442_v6 }
 0x405   : > { %v2799_v13 = vmax.f32 %v2459_v0, 0.0  ;;  %v2622_v5 = vadd.f32 %v6599_v31, %v2533_v49  ;;  %v6667_v19 = vpop.f32.mrf.mxu0  ;;  %v7446_v49 = vld [vmem:[#allocation53_spill] sm:$0xff] }
 0x406   : > { %v6669_v54 = vpop.f32.mrf.mxu1 }
 0x407   : > { %v2711_v57 = vadd.f32 %v6601_v35, %v2622_v5  ;;  %4156 = vmatmul.msk.bf16.gmra.mxu3 %vm801_vm0, %v3980_v59  ;;  %2574 = vmatmul.bf16.gmra.mxu2 %v7443_v24  ;;  %v2849_v52 = vpack.c.bf16 %v2799_v13, %v2797_v43 }
 0x408   : > { %2673 = vmatmul.bf16.gmra.mxu0 %v7445_v63 }
 0x409   : > { %v2788_v34 = vmax.f32 %v2711_v57, 0.0  ;;  %4171 = vmatmul.msk.bf16.gmra.mxu1 %vm801_vm0, %v3968_v15  ;;  %v7447_v57 = vld [vmem:[#allocation55_spill] sm:$0xff] }
 0x40a   : > { %v2461_v46 = vpop.f32.mrf.mxu3  ;;  %v2535_v42 = vpop.f32.mrf.mxu2 }
 0x40b   : > { %v2536_v61 = vadd.f32 %v2535_v42, %v7444_v22  ;;  %v6674_v31 = vpack.c.bf16 %v2788_v34, %v2786_v23  ;;  %v2462_v38 = vadd.f32 %v2461_v46, %v7446_v49  ;;  %v7448_v34 = vld [vmem:[#allocation44_spill] sm:$0xff] }
 0x40c   : > { %v7449_v46 = vld [vmem:[#allocation52_spill] sm:$0xff] }
 0x40d   : > { %v2625_v35 = vadd.f32 %v6611_v36, %v2536_v61  ;;  %v6680_v6 = vpop.f32.mrf.mxu0  ;;  %v2801_v42 = vmax.f32 %v2462_v38, 0.0 }
 0x40e   : > { %v6683_v43 = vpop.f32.mrf.mxu1 }
 0x40f   : > { %v6678_v0 = vadd.f32 %v6613_v40, %v2625_v35 }
 0x412   : > { %v2463_v13 = vpop.f32.mrf.mxu3  ;;  %v6685_v5 = vpop.f32.mrf.mxu2 }
 0x413   : > { %v2464_v24 = vadd.f32 %v2463_v13, %v7447_v57 }
 0x415   : > { %v2803_v15 = vmax.f32 %v2464_v24, 0.0  ;;  %v2639_v36 = vpop.f32.mrf.mxu0 }
 0x416   : > { %v2728_v63 = vpop.f32.mrf.mxu1 }
 0x417   : > { %v2851_v23 = vpack.c.bf16 %v2803_v15, %v2801_v42  ;;  %2579 = vmatmul.bf16.gmra.mxu2 %v7448_v34  ;;  %v7450_v15 = vld [vmem:[#allocation47_spill] sm:$0xff]  ;;  %v4355_v34 = vld [vmem:[%s7291_s5 + $0x4] sm:$0xf0] }
 0x418   : > { %2678 = vmatmul.bf16.gmra.mxu0 %v7449_v46 }
 0x419   : > { %3189 = vmatpush.bf16.msrb.mxu3 %v2851_v23  ;;  %4172 = vmatmul.msk.bf16.gmra.mxu1 %vm801_vm0, %v3980_v59 }
 0x41a   : > { %v2466_v40 = vpop.f32.mrf.mxu3  ;;  %v2540_v22 = vpop.f32.mrf.mxu2 }
 0x41b   : > { %v2467_v61 = vadd.f32 %v2466_v40, %v6277_v33 }
 0x41d   : > { %3190 = vmatpush.bf16.msrb.mxu3 %v2849_v52  ;;  %v2641_v13 = vpop.f32.mrf.mxu0  ;;  %v2805_v57 = vmax.f32 %v2467_v61, 0.0 }
 0x41e   : > { %v2730_v42 = vpop.f32.mrf.mxu1 }
 0x421   : > { %3191 = vmatpush.bf16.msrb.mxu3 %v2847_v3 }
 0x422   : > { %v2468_v35 = vpop.f32.mrf.mxu3  ;;  %v2542_v49 = vpop.f32.mrf.mxu2 }
 0x423   : > { %v2469_v38 = vadd.f32 %v2468_v35, %v6300_v16  ;;  %v7452_v35 = vld [vmem:[#allocation51_spill] sm:$0xff] }
 0x425   : > { %v2807_v24 = vmax.f32 %v2469_v38, 0.0  ;;  %3192 = vmatpush.bf16.msrb.mxu3 %v6609_v18  ;;  %v2644_v3 = vpop.f32.mrf.mxu0  ;;  %v4175_v18 = vld [vmem:[%s7291_s5] sm:$0xf] }
 0x426   : > { %v6700_v16 = vpop.f32.mrf.mxu1 }
 0x427   : > { %2584 = vmatmul.bf16.gmra.mxu2 %v7450_v15  ;;  %v6695_v33 = vpack.c.bf16 %v2807_v24, %v2805_v57 }
 0x429   : > { %7451 = vst [vmem:[#allocation22_spill] sm:$0xff] %v6695_v33  ;;  %3193 = vmatpush.bf16.msrb.mxu3 %v6579_v45 }
 0x42a   : > { %v2471_v23 = vpop.f32.mrf.mxu3  ;;  %v2545_v59 = vpop.f32.mrf.mxu2 }
 0x42b   : > { %v2472_v52 = vadd.f32 %v2471_v23, %v6313_v51  ;;  %v6710_v51 = vor.u32 %v4355_v34, %v4175_v18  ;;  %v7456_v23 = vld [vmem:[#allocation15_spill] sm:$0xff] }
 0x42d   : > { %3194 = vmatpush.bf16.msrb.mxu3 %v6555_v39  ;;  %v2809_v39 = vmax.f32 %v2472_v52, 0.0  ;;  %v7457_v52 = vld [vmem:[#allocation6_spill] sm:$0xff] }
 0x42e   : > { %v6719_v57 = vpop.f32.mrf.mxu1 }
 0x42f   : > { %7455 = vst [vmem:[#allocation27_spill] sm:$0xff] %v6719_v57  ;;  %v7459_v57 = vld [vmem:[#allocation19_spill] sm:$0xff] }
 0x431   : > { %3195 = vmatpush.bf16.msrb.mxu3 %v6529_v48  ;;  %v6714_v48 = vpop.f32.mrf.mxu0 }
 0x432   : > { %v2473_v45 = vpop.f32.mrf.mxu3  ;;  %v2547_v40 = vpop.f32.mrf.mxu2  ;;  %7453 = vst [vmem:[#allocation32_spill] sm:$0xff] %v6714_v48  ;;  %v2543_v48 = vadd.f32 %v2542_v49, %v7459_v57  ;;  %v7462_v49 = vld [vmem:[#allocation16_spill] sm:$0xff] }
 0x433   : > { %v2474_v61 = vadd.f32 %v2473_v45, %v6333_v20  ;;  %v2548_v34 = vadd.f32 %v2547_v40, %v7457_v52  ;;  %v7458_v45 = vld [vmem:[#allocation13_spill] sm:$0xff]  ;;  %v2538_v57 = vadd.f32 %v6685_v5, %v7462_v49 }
 0x435   : > { %v2811_v46 = vmax.f32 %v2474_v61, 0.0  ;;  %3196 = vmatpush.bf16.msrb.mxu3 %v6507_v55  ;;  %v2546_v55 = vadd.f32 %v2545_v59, %v7458_v45  ;;  %v7460_v59 = vld [vmem:[#allocation8_spill] sm:$0xff] }
 0x437   : > { %2589 = vmatmul.bf16.gmra.mxu2 %v7452_v35  ;;  %v6716_v38 = vpack.c.bf16 %v2811_v46, %v2809_v39  ;;  %v4183_v39 = vld [vmem:[%s7291_s5 + $0x10] sm:$0xf]  ;;  %v4357_v46 = vld [vmem:[%s7291_s5 + $0x14] sm:$0xf0]  ;;  %v2635_v45 = vadd.f32 %v6667_v19, %v2546_v55 }
 0x438   : > { %3197 = vmatmul.bf16.vlgmr.msrb.gmra.mxu3 %v6710_v51  ;;  %v6739_v9 = vor.u32 %v4357_v46, %v4183_v39 }
 0x439   : > { %7454 = vst [vmem:[#allocation36_spill] sm:$0xff] %v6716_v38  ;;  %v6731_v35 = vpop.f32.mrf.mxu0 }
 0x43a   : > { %v2476_v24 = vpop.f32.mrf.mxu3  ;;  %v2550_v15 = vpop.f32.mrf.mxu2 }
 0x43b   : > { %v2477_v20 = vadd.f32 %v2476_v24, %v6344_v7  ;;  %v2551_v18 = vadd.f32 %v2550_v15, %v7456_v23  ;;  %v2637_v15 = vadd.f32 %v6680_v6, %v2548_v34  ;;  %v2738_v23 = vpop.f32.mrf.mxu1  ;;  %v2632_v6 = vadd.f32 %v6656_v8, %v2543_v48 }
 0x43d   : > { %v2640_v61 = vadd.f32 %v2639_v36, %v2551_v18  ;;  %v7461_v18 = vld [vmem:[#allocation10_spill] sm:$0xff]  ;;  %v2813_v56 = vmax.f32 %v2477_v20, 0.0  ;;  %v2721_v55 = vadd.f32 %v6658_v58, %v2632_v6 }
 0x43e   : > { %v2541_v52 = vadd.f32 %v2540_v22, %v7461_v18  ;;  %v2724_v22 = vadd.f32 %v6669_v54, %v2635_v45 }
 0x43f   : > { %v2729_v62 = vadd.f32 %v2728_v63, %v2640_v61 }
 0x440   : > { %v2630_v19 = vadd.f32 %v6639_v14, %v2541_v52  ;;  %v2798_v48 = vmax.f32 %v2724_v22, 0.0  ;;  %v4199_v22 = vld [vmem:[%s7291_s5 + $0x30] sm:$0xf] }
 0x441   : > { %v2802_v20 = vmax.f32 %v2729_v62, 0.0 }
 0x442   : > { %v2478_v7 = vpop.f32.mrf.mxu3  ;;  %v2552_v24 = vpop.f32.mrf.mxu2  ;;  %v2719_v14 = vadd.f32 %v6641_v28, %v2630_v19  ;;  %v4359_v28 = vld [vmem:[%s7291_s5 + $0x24] sm:$0xf0] }
 0x443   : > { %v2479_v40 = vadd.f32 %v2478_v7, %v6361_v17  ;;  %v2553_v36 = vadd.f32 %v2552_v24, %v7460_v59  ;;  %v2726_v17 = vadd.f32 %v6683_v43, %v2637_v15  ;;  %v6757_v62 = vpop.f32.mrf.mxu1 }
 0x444   : > { %v2794_v39 = vmax.f32 %v2719_v14, 0.0 }
 0x445   : > { %v2815_v33 = vmax.f32 %v2479_v40, 0.0  ;;  %v2642_v38 = vadd.f32 %v2641_v13, %v2553_v36  ;;  %v2627_v13 = vadd.f32 %v6628_v10, %v2538_v57  ;;  %v2790_v40 = vmax.f32 %v6678_v0, 0.0 }
 0x447   : > { %v2731_v34 = vadd.f32 %v2730_v42, %v2642_v38  ;;  %v6745_v7 = vpack.c.bf16 %v2815_v33, %v2813_v56  ;;  %v2800_v42 = vmax.f32 %v2726_v17, 0.0  ;;  %v6754_v33 = vpop.f32.mrf.mxu0  ;;  %v2716_v10 = vadd.f32 %v6630_v50, %v2627_v13 }
 0x448   : > { %3202 = vmatmul.bf16.gmra.mxu3 %v6739_v9 }
 0x449   : > { %v2804_v63 = vmax.f32 %v2731_v34, 0.0  ;;  %v2850_v38 = vpack.c.bf16 %v2800_v42, %v2798_v48 }
 0x44a   : > { %v2481_v5 = vpop.f32.mrf.mxu3  ;;  %v2555_v61 = vpop.f32.mrf.mxu2 }
 0x44b   : > { %v2482_v8 = vadd.f32 %v2481_v5, %v6372_v2  ;;  %v2556_v43 = vadd.f32 %v2555_v61, %v6272_v37  ;;  %v2852_v56 = vpack.c.bf16 %v2804_v63, %v2802_v20  ;;  %v2796_v2 = vmax.f32 %v2721_v55, 0.0  ;;  %v4191_v37 = vld [vmem:[%s7291_s5 + $0x20] sm:$0xf]  ;;  %v2743_v45 = vpop.f32.mrf.mxu1 }
 0x44c   : > { %v6772_v15 = vor.u32 %v4359_v28, %v4191_v37 }
 0x44d   : > { %v2645_v54 = vadd.f32 %v2644_v3, %v2556_v43  ;;  %3367 = vmatpush.bf16.msrb.mxu0 %v2852_v56  ;;  %v2848_v24 = vpack.c.bf16 %v2796_v2, %v2794_v39  ;;  %v2817_v59 = vmax.f32 %v2482_v8, 0.0 }
 0x44f   : > { %v6761_v58 = vadd.f32 %v6700_v16, %v2645_v54  ;;  %v2792_v16 = vmax.f32 %v2716_v10, 0.0  ;;  %v2654_v18 = vpop.f32.mrf.mxu0 }
 0x451   : > { %3368 = vmatpush.bf16.msrb.mxu0 %v2850_v38  ;;  %v2846_v52 = vpack.c.bf16 %v2792_v16, %v2790_v40  ;;  %v4215_v40 = vld [vmem:[%s7291_s5 + $0x50] sm:$0xf] }
 0x452   : > { %v2483_v3 = vpop.f32.mrf.mxu3  ;;  %v6769_v46 = vpop.f32.mrf.mxu2 }
 0x453   : > { %v2484_v50 = vadd.f32 %v2483_v3, %v6389_v30  ;;  %v6793_v20 = vpop.f32.mrf.mxu1 }
 0x455   : > { %v2819_v36 = vmax.f32 %v2484_v50, 0.0  ;;  %3369 = vmatpush.bf16.msrb.mxu0 %v2848_v24 }
 0x457   : > { %v6775_v49 = vpack.c.bf16 %v2819_v36, %v2817_v59  ;;  %v6784_v19 = vpop.f32.mrf.mxu0  ;;  %v4365_v59 = vld [vmem:[%s7291_s5 + $0x54] sm:$0xf0] }
 0x458   : > { %3207 = vmatmul.bf16.gmra.mxu3 %v6772_v15 }
 0x459   : > { %3370 = vmatpush.bf16.msrb.mxu0 %v2846_v52 }
 0x45a   : > { %v2486_v57 = vpop.f32.mrf.mxu3  ;;  %v2560_v6 = vpop.f32.mrf.mxu2 }
 0x45b   : > { %v2487_v30 = vadd.f32 %v2486_v57, %v6400_v4  ;;  %v2561_v17 = vadd.f32 %v2560_v6, %v5830_v29  ;;  %v4361_v4 = vld [vmem:[%s7291_s5 + $0x34] sm:$0xf0]  ;;  %v2748_v43 = vpop.f32.mrf.mxu1 }
 0x45d   : > { %v2650_v34 = vadd.f32 %v6731_v35, %v2561_v17  ;;  %3371 = vmatpush.bf16.msrb.mxu0 %v6674_v31  ;;  %v2821_v63 = vmax.f32 %v2487_v30, 0.0 }
 0x45f   : > { %v6782_v0 = vadd.f32 %v2738_v23, %v2650_v34  ;;  %v6798_v23 = vor.u32 %v4361_v4, %v4199_v22  ;;  %v2659_v55 = vpop.f32.mrf.mxu0 }
 0x461   : > { %3372 = vmatpush.bf16.msrb.mxu0 %v6646_v11 }
 0x462   : > { %v2488_v29 = vpop.f32.mrf.mxu3  ;;  %v6795_v35 = vpop.f32.mrf.mxu2 }
 0x463   : > { %v2489_v31 = vadd.f32 %v2488_v29, %v6417_v44  ;;  %v6821_v2 = vpop.f32.mrf.mxu1 }
 0x465   : > { %v2823_v13 = vmax.f32 %v2489_v31, 0.0  ;;  %3373 = vmatpush.bf16.msrb.mxu0 %v6618_v60  ;;  %v4207_v60 = vld [vmem:[%s7291_s5 + $0x40] sm:$0xf] }
 0x466   : > { %v4223_v31 = vld [vmem:[%s7291_s5 + $0x60] sm:$0xf] }
 0x467   : > { %v6801_v11 = vpack.c.bf16 %v2823_v13, %v2821_v63  ;;  %v6819_v54 = vpop.f32.mrf.mxu0  ;;  %v4367_v63 = vld [vmem:[%s7291_s5 + $0x64] sm:$0xf0] }
 0x468   : > { %3212 = vmatmul.bf16.gmra.mxu3 %v6798_v23 }
 0x469   : > { %3374 = vmatpush.bf16.msrb.mxu0 %v6589_v12  ;;  %v4363_v12 = vld [vmem:[%s7291_s5 + $0x44] sm:$0xf0] }
 0x46a   : > { %v2491_v5 = vpop.f32.mrf.mxu3  ;;  %v2565_v61 = vpop.f32.mrf.mxu2 }
 0x46b   : > { %v2566_v8 = vadd.f32 %v2565_v61, %v5805_v25  ;;  %v2492_v42 = vadd.f32 %v2491_v5, %v6428_v26  ;;  %v6859_v5 = vor.u32 %v4367_v63, %v4223_v31  ;;  %v7468_v31 = vld [vmem:[#allocation17_spill] sm:$0xff] }
 0x46c   : > { %3375 = vmatmul.bf16.vlgmr.msrb.gmra.mxu0 %v6710_v51  ;;  %v4208_v51 = vor.u32 %v4363_v12, %v4207_v60  ;;  %v4369_v60 = vld [vmem:[%s7291_s5 + $0x74] sm:$0xf0] }
 0x46d   : > { %v2655_v44 = vadd.f32 %v2654_v18, %v2566_v8  ;;  %v2825_v10 = vmax.f32 %v2492_v42, 0.0 }
 0x46f   : > { %v6807_v56 = vadd.f32 %v2743_v45, %v2655_v44  ;;  %v2664_v50 = vpop.f32.mrf.mxu0 }
 0x472   : > { %v2493_v14 = vpop.f32.mrf.mxu3  ;;  %v6816_v48 = vpop.f32.mrf.mxu2 }
 0x473   : > { %v2494_v25 = vadd.f32 %v2493_v14, %v6445_v32  ;;  %v2753_v32 = vpop.f32.mrf.mxu1 }
 0x475   : > { %v2827_v38 = vmax.f32 %v2494_v25, 0.0 }
 0x477   : > { %v2863_v26 = vpack.c.bf16 %v2827_v38, %v2825_v10  ;;  %v6837_v57 = vpop.f32.mrf.mxu0 }
 0x478   : > { %3217 = vmatmul.bf16.gmra.mxu3 %v4208_v51 }
 0x47a   : > { %v2496_v39 = vpop.f32.mrf.mxu3  ;;  %v2570_v37 = vpop.f32.mrf.mxu2 }
 0x47b   : > { %v2571_v28 = vadd.f32 %v2570_v37, %v5855_v47  ;;  %v2497_v16 = vadd.f32 %v2496_v39, %v6456_v21  ;;  %v4216_v47 = vor.u32 %v4365_v59, %v4215_v40  ;;  %v6839_v21 = vpop.f32.mrf.mxu1  ;;  %v7463_v39 = vld [vmem:[#allocation36_spill] sm:$0xff]  ;;  %v4354_v37 = vld [vmem:[%s7291_s5 + $0x4] sm:$0xf]  ;;  %v7465_v59 = vld [vmem:[#allocation14_spill] sm:$0xff] }
 0x47c   : > { %3380 = vmatmul.bf16.gmra.mxu0 %v6739_v9 }
 0x47d   : > { %v2660_v3 = vadd.f32 %v2659_v55, %v2571_v28  ;;  %v2829_v52 = vmax.f32 %v2497_v16, 0.0 }
 0x47f   : > { %v6825_v24 = vadd.f32 %v2748_v43, %v2660_v3  ;;  %v6846_v29 = vpop.f32.mrf.mxu0 }
 0x482   : > { %v2498_v36 = vpop.f32.mrf.mxu3  ;;  %v6834_v18 = vpop.f32.mrf.mxu2 }
 0x483   : > { %v2499_v9 = vadd.f32 %v2498_v36, %v6473_v1 }
 0x485   : > { %v2831_v45 = vmax.f32 %v2499_v9, 0.0  ;;  %v7466_v9 = vld [vmem:[#allocation5_spill] sm:$0xff] }
 0x487   : > { %v2865_v6 = vpack.c.bf16 %v2831_v45, %v2829_v52  ;;  %v2671_v44 = vpop.f32.mrf.mxu0  ;;  %v4247_v45 = vld [vmem:[%s7291_s5 + $0x90] sm:$0xf] }
 0x488   : > { %3222 = vmatmul.bf16.gmra.mxu3 %v4216_v47 }
 0x48a   : > { %v2501_v30 = vpop.f32.mrf.mxu3  ;;  %v2575_v17 = vpop.f32.mrf.mxu2 }
 0x48b   : > { %v2576_v34 = vadd.f32 %v2575_v17, %v5731_v53  ;;  %v2502_v1 = vadd.f32 %v2501_v30, %v6482_v27 }
 0x48c   : > { %3385 = vmatmul.bf16.gmra.mxu0 %v6772_v15  ;;  %v6857_v15 = vpop.f32.mrf.mxu1 }
 0x48d   : > { %v2665_v22 = vadd.f32 %v2664_v50, %v2576_v34  ;;  %v2833_v27 = vmax.f32 %v2502_v1, 0.0  ;;  %v7464_v50 = vld [vmem:[#allocation22_spill] sm:$0xff]  ;;  %v4373_v34 = vld [vmem:[%s7291_s5 + $0x94] sm:$0xf0] }
 0x48f   : > { %v6843_v4 = vadd.f32 %v2753_v32, %v2665_v22  ;;  %v2674_v25 = vpop.f32.mrf.mxu0  ;;  %v4356_v22 = vld [vmem:[%s7291_s5 + $0x14] sm:$0xf] }
 0x492   : > { %v2503_v13 = vpop.f32.mrf.mxu3  ;;  %v6854_v55 = vpop.f32.mrf.mxu2 }
 0x493   : > { %v2504_v53 = vadd.f32 %v2503_v13, %v6498_v41  ;;  %v4231_v41 = vld [vmem:[%s7291_s5 + $0x70] sm:$0xf] }
 0x494   : > { %v6863_v42 = vpop.f32.mrf.mxu1  ;;  %v6871_v14 = vor.u32 %v4369_v60, %v4231_v41  ;;  %v6915_v60 = vor.u32 %v4373_v34, %v4247_v45 }
 0x495   : > { %v2835_v61 = vmax.f32 %v2504_v53, 0.0  ;;  %v7469_v53 = vld [vmem:[#allocation7_spill] sm:$0xff] }
 0x497   : > { %v2867_v8 = vpack.c.bf16 %v2835_v61, %v2833_v27  ;;  %v2676_v38 = vpop.f32.mrf.mxu0  ;;  %v7470_v61 = vld [vmem:[#allocation9_spill] sm:$0xff] }
 0x498   : > { %3227 = vmatmul.bf16.gmra.mxu3 %v6859_v5 }
 0x499   : > { %3278 = vmatpush.bf16.msrb.mxu2 %v2867_v8 }
 0x49a   : > { %v2580_v43 = vpop.f32.mrf.mxu2 }
 0x49b   : > { %v2581_v8 = vadd.f32 %v2580_v43, %v7470_v61 }
 0x49c   : > { %3390 = vmatmul.bf16.gmra.mxu0 %v6798_v23  ;;  %v2763_v10 = vpop.f32.mrf.mxu1 }
 0x49d   : > { %3279 = vmatpush.bf16.msrb.mxu2 %v2865_v6  ;;  %v7467_v6 = vld [vmem:[#allocation11_spill] sm:$0xff] }
 0x49f   : > { %v2679_v32 = vpop.f32.mrf.mxu0 }
 0x4a1   : > { %3280 = vmatpush.bf16.msrb.mxu2 %v2863_v26  ;;  %v4239_v26 = vld [vmem:[%s7291_s5 + $0x80] sm:$0xf] }
 0x4a2   : > { %v2582_v12 = vpop.f32.mrf.mxu2 }
 0x4a3   : > { %v2583_v63 = vadd.f32 %v2582_v12, %v7468_v31 }
 0x4a5   : > { %3281 = vmatpush.bf16.msrb.mxu2 %v6801_v11  ;;  %v4371_v11 = vld [vmem:[%s7291_s5 + $0x84] sm:$0xf0] }
 0x4a6   : > { %v6890_v28 = vor.u32 %v4371_v11, %v4239_v26 }
 0x4a7   : > { %v2681_v41 = vpop.f32.mrf.mxu0 }
 0x4a8   : > { %3232 = vmatmul.bf16.gmra.mxu3 %v6871_v14 }
 0x4a9   : > { %3282 = vmatpush.bf16.msrb.mxu2 %v6775_v49  ;;  %v4177_v49 = vld [vmem:[%s7291_s5 + $0x8] sm:$0xf0] }
 0x4aa   : > { %v2585_v23 = vpop.f32.mrf.mxu2  ;;  %v6892_v3 = vor.u32 %v4354_v37, %v4177_v49  ;;  %v7471_v49 = vld [vmem:[#allocation25_spill] sm:$0xff] }
 0x4ab   : > { %v2586_v30 = vadd.f32 %v2585_v23, %v7467_v6 }
 0x4ac   : > { %3395 = vmatmul.bf16.gmra.mxu0 %v4208_v51 }
 0x4ad   : > { %3283 = vmatpush.bf16.msrb.mxu2 %v6745_v7  ;;  %v2765_v7 = vpop.f32.mrf.mxu1  ;;  %v2675_v26 = vadd.f32 %v2674_v25, %v2586_v30 }
 0x4af   : > { %v2764_v43 = vadd.f32 %v2763_v10, %v2675_v26 }
 0x4b1   : > { %3284 = vmatpush.bf16.msrb.mxu2 %v7463_v39 }
 0x4b2   : > { %v2587_v51 = vpop.f32.mrf.mxu2 }
 0x4b3   : > { %v2588_v52 = vadd.f32 %v2587_v51, %v7466_v9  ;;  %v2578_v51 = vadd.f32 %v6854_v55, %v7471_v49  ;;  %v2810_v49 = vmax.f32 %v6782_v0, 0.0 }
 0x4b5   : > { %3285 = vmatpush.bf16.msrb.mxu2 %v7464_v50  ;;  %v2768_v40 = vpop.f32.mrf.mxu1  ;;  %v2677_v13 = vadd.f32 %v2676_v38, %v2588_v52  ;;  %v2672_v50 = vadd.f32 %v2671_v44, %v2583_v63  ;;  %v2670_v38 = vadd.f32 %v6846_v29, %v2581_v8  ;;  %v2830_v29 = vmax.f32 %v2764_v43, 0.0  ;;  %v7473_v52 = vld [vmem:[#allocation24_spill] sm:$0xff] }
 0x4b6   : > { %v2568_v10 = vadd.f32 %v6816_v48, %v7473_v52  ;;  %v4358_v48 = vld [vmem:[%s7291_s5 + $0x24] sm:$0xf]  ;;  %v2822_v63 = vmax.f32 %v6843_v4, 0.0  ;;  %v7476_v8 = vld [vmem:[#allocation32_spill] sm:$0xff] }
 0x4b7   : > { %v2761_v9 = vadd.f32 %v6863_v42, %v2672_v50  ;;  %v4255_v42 = vld [vmem:[%s7291_s5 + $0xa0] sm:$0xf] }
 0x4b8   : > { %3237 = vmatmul.bf16.gmra.mxu3 %v6890_v28  ;;  %3286 = vmatmul.bf16.vlgmr.msrb.gmra.mxu2 %v6892_v3 }
 0x4b9   : > { %v2828_v30 = vmax.f32 %v2761_v9, 0.0 }
 0x4ba   : > { %v2590_v16 = vpop.f32.mrf.mxu2 }
 0x4bb   : > { %v2591_v36 = vadd.f32 %v2590_v16, %v7465_v59 }
 0x4bc   : > { %3400 = vmatmul.bf16.gmra.mxu0 %v4216_v47  ;;  %v4185_v47 = vld [vmem:[%s7291_s5 + $0x18] sm:$0xf0] }
 0x4bd   : > { %v2680_v17 = vadd.f32 %v2679_v32, %v2591_v36  ;;  %v6917_v23 = vor.u32 %v4356_v22, %v4185_v47  ;;  %v2770_v37 = vpop.f32.mrf.mxu1  ;;  %v2766_v32 = vadd.f32 %v2765_v7, %v2677_v13  ;;  %v7472_v36 = vld [vmem:[#allocation21_spill] sm:$0xff]  ;;  %v2759_v7 = vadd.f32 %v6857_v15, %v2670_v38  ;;  %v4375_v15 = vld [vmem:[%s7291_s5 + $0xa4] sm:$0xf0]  ;;  %v7475_v13 = vld [vmem:[#allocation56_spill] sm:$0xff] }
 0x4be   : > { %v2573_v25 = vadd.f32 %v6834_v18, %v7472_v36  ;;  %v2806_v38 = vmax.f32 %v6761_v58, 0.0  ;;  %v4379_v36 = vld [vmem:[%s7291_s5 + $0xc4] sm:$0xf0]  ;;  %v4362_v58 = vld [vmem:[%s7291_s5 + $0x44] sm:$0xf] }
 0x4bf   : > { %v2769_v39 = vadd.f32 %v2768_v40, %v2680_v17  ;;  %v2667_v40 = vadd.f32 %v6837_v57, %v2578_v51  ;;  %v2832_v44 = vmax.f32 %v2766_v32, 0.0  ;;  %v2826_v57 = vmax.f32 %v2759_v7, 0.0  ;;  %v6980_v51 = vpop.f32.mrf.mxu3  ;;  %v4364_v7 = vld [vmem:[%s7291_s5 + $0x54] sm:$0xf] }
 0x4c0   : > { %v2662_v45 = vadd.f32 %v6819_v54, %v2573_v25  ;;  %v4193_v54 = vld [vmem:[%s7291_s5 + $0x28] sm:$0xf0]  ;;  %v2657_v17 = vadd.f32 %v6784_v19, %v2568_v10  ;;  %v4287_v10 = vld [vmem:[%s7291_s5 + $0xe0] sm:$0xf] }
 0x4c1   : > { %v2834_v16 = vmax.f32 %v2769_v39, 0.0  ;;  %v2756_v6 = vadd.f32 %v6839_v21, %v2667_v40  ;;  %v2866_v18 = vpack.c.bf16 %v2832_v44, %v2830_v29  ;;  %v7474_v21 = vld [vmem:[#allocation54_spill] sm:$0xff]  ;;  %v2864_v22 = vpack.c.bf16 %v2828_v30, %v2826_v57  ;;  %v4381_v44 = vld [vmem:[%s7291_s5 + $0xd4] sm:$0xf0] }
 0x4c2   : > { %v2592_v1 = vpop.f32.mrf.mxu2  ;;  %v2751_v34 = vadd.f32 %v6821_v2, %v2662_v45  ;;  %v6952_v31 = vor.u32 %v4358_v48, %v4193_v54  ;;  %v2818_v2 = vmax.f32 %v6825_v24, 0.0  ;;  %v4263_v24 = vld [vmem:[%s7291_s5 + $0xb0] sm:$0xf]  ;;  %v4209_v25 = vld [vmem:[%s7291_s5 + $0x48] sm:$0xf0] }
 0x4c3   : > { %v2593_v27 = vadd.f32 %v2592_v1, %v7469_v53  ;;  %v2824_v47 = vmax.f32 %v2756_v6, 0.0  ;;  %v6950_v1 = vor.u32 %v4375_v15, %v4255_v42  ;;  %v2558_v53 = vadd.f32 %v6769_v46, %v7475_v13  ;;  %v7477_v46 = vld [vmem:[#allocation27_spill] sm:$0xff]  ;;  %v4383_v45 = vld [vmem:[%s7291_s5 + $0xe4] sm:$0xf0]  ;;  %v4366_v6 = vld [vmem:[%s7291_s5 + $0x64] sm:$0xf] }
 0x4c4   : > { %v2820_v19 = vmax.f32 %v2751_v34, 0.0  ;;  %v4288_v57 = vor.u32 %v4383_v45, %v4287_v10  ;;  %v4233_v34 = vld [vmem:[%s7291_s5 + $0x78] sm:$0xf0]  ;;  %v4241_v13 = vld [vmem:[%s7291_s5 + $0x88] sm:$0xf0] }
 0x4c5   : > { %v2682_v11 = vadd.f32 %v2681_v41, %v2593_v27  ;;  %v2862_v61 = vpack.c.bf16 %v2824_v47, %v2822_v63  ;;  %v2647_v41 = vadd.f32 %v7476_v8, %v2558_v53  ;;  %v4370_v63 = vld [vmem:[%s7291_s5 + $0x84] sm:$0xf] }
 0x4c6   : > { %v2860_v26 = vpack.c.bf16 %v2820_v19, %v2818_v2  ;;  %v4372_v19 = vld [vmem:[%s7291_s5 + $0x94] sm:$0xf]  ;;  %v4249_v2 = vld [vmem:[%s7291_s5 + $0x98] sm:$0xf0] }
 0x4c7   : > { %v2771_v12 = vadd.f32 %v2770_v37, %v2682_v11 }
 0x4c8   : > { %3242 = vmatmul.bf16.gmra.mxu3 %v6915_v60  ;;  %3291 = vmatmul.bf16.gmra.mxu2 %v6917_v23 }
 0x4c9   : > { %v2836_v59 = vmax.f32 %v2771_v12, 0.0 }
 0x4cb   : > { %v2868_v55 = vpack.c.bf16 %v2836_v59, %v2834_v16  ;;  %v6983_v16 = vpop.f32.mrf.mxu3  ;;  %v4271_v59 = vld [vmem:[%s7291_s5 + $0xc0] sm:$0xf] }
 0x4cc   : > { %3405 = vmatmul.bf16.gmra.mxu0 %v6859_v5  ;;  %v2563_v5 = vadd.f32 %v6795_v35, %v7474_v21  ;;  %v2746_v35 = vadd.f32 %v6793_v20, %v2657_v17  ;;  %v2736_v20 = vadd.f32 %v7477_v46, %v2647_v41  ;;  %v4272_v40 = vor.u32 %v4379_v36, %v4271_v59  ;;  %v4295_v21 = vld [vmem:[%s7291_s5 + $0xf0] sm:$0xf]  ;;  %v4368_v17 = vld [vmem:[%s7291_s5 + $0x74] sm:$0xf] }
 0x4cd   : > { %3456 = vmatpush.bf16.msrb.mxu1 %v2868_v55  ;;  %v4279_v55 = vld [vmem:[%s7291_s5 + $0xd0] sm:$0xf]  ;;  %v4236_v47 = vor.u32 %v4368_v17, %v4233_v34  ;;  %v4252_v41 = vor.u32 %v4372_v19, %v4249_v2 }
 0x4ce   : > { %v2652_v27 = vadd.f32 %v6754_v33, %v2563_v5  ;;  %v2816_v39 = vmax.f32 %v2746_v35, 0.0  ;;  %v2814_v33 = vmax.f32 %v6807_v56, 0.0  ;;  %v4360_v56 = vld [vmem:[%s7291_s5 + $0x34] sm:$0xf]  ;;  %v2808_v50 = vmax.f32 %v2736_v20, 0.0 }
 0x4cf   : > { %v4280_v29 = vor.u32 %v4381_v44, %v4279_v55  ;;  %v4385_v5 = vld [vmem:[%s7291_s5 + $0xf4] sm:$0xf0] }
 0x4d0   : > { %v2741_v4 = vadd.f32 %v6757_v62, %v2652_v27  ;;  %v2858_v11 = vpack.c.bf16 %v2816_v39, %v2814_v33  ;;  %v4377_v62 = vld [vmem:[%s7291_s5 + $0xb4] sm:$0xf0]  ;;  %v2854_v43 = vpack.c.bf16 %v2808_v50, %v2806_v38  ;;  %v4244_v27 = vor.u32 %v4370_v63, %v4241_v13  ;;  %v4374_v39 = vld [vmem:[%s7291_s5 + $0xa4] sm:$0xf]  ;;  %v4257_v33 = vld [vmem:[%s7291_s5 + $0xa8] sm:$0xf0] }
 0x4d1   : > { %3457 = vmatpush.bf16.msrb.mxu1 %v2866_v18  ;;  %v4264_v32 = vor.u32 %v4377_v62, %v4263_v24  ;;  %v4225_v18 = vld [vmem:[%s7291_s5 + $0x68] sm:$0xf0]  ;;  %v4376_v24 = vld [vmem:[%s7291_s5 + $0xb4] sm:$0xf]  ;;  %v4265_v62 = vld [vmem:[%s7291_s5 + $0xb8] sm:$0xf0] }
 0x4d2   : > { %v2812_v37 = vmax.f32 %v2741_v4, 0.0  ;;  %v4228_v42 = vor.u32 %v4366_v6, %v4225_v18  ;;  %v2882_v6 = vpop.permute.xlu2 %2881 }
 0x4d3   : > { %v6999_v9 = vpop.f32.mrf.mxu3 }
 0x4d4   : > { %v2856_v0 = vpack.c.bf16 %v2812_v37, %v2810_v49 }
 0x4d5   : > { %3458 = vmatpush.bf16.msrb.mxu1 %v2864_v22  ;;  %v4296_v22 = vor.u32 %v4385_v5, %v4295_v21 }
 0x4d8   : > { %3247 = vmatmul.bf16.gmra.mxu3 %v6950_v1  ;;  %3296 = vmatmul.bf16.gmra.mxu2 %v6952_v31 }
 0x4d9   : > { %3459 = vmatpush.bf16.msrb.mxu1 %v2862_v61 }
 0x4dc   : > { %3410 = vmatmul.bf16.gmra.mxu0 %v6871_v14  ;;  %v4201_v14 = vld [vmem:[%s7291_s5 + $0x38] sm:$0xf0] }
 0x4dd   : > { %3460 = vmatpush.bf16.msrb.mxu1 %v2860_v26  ;;  %v4204_v12 = vor.u32 %v4360_v56, %v4201_v14  ;;  %v7094_v14 = vor.u32 %v4376_v24, %v4265_v62 }
 0x4e1   : > { %3461 = vmatpush.bf16.msrb.mxu1 %v2858_v11  ;;  %v7079_v11 = vor.u32 %v4374_v39, %v4257_v33 }
 0x4e5   : > { %3462 = vmatpush.bf16.msrb.mxu1 %v2856_v0  ;;  %v2872_v0 = vpop.permute.xlu1 %2871 }
 0x4e6   : > { %v3199_v50 = vadd.f32 %v6980_v51, %v2872_v0 }
 0x4e8   : > { %3252 = vmatmul.bf16.gmra.mxu3 %v4264_v32  ;;  %3301 = vmatmul.bf16.gmra.mxu2 %v4204_v12 }
 0x4e9   : > { %3463 = vmatpush.bf16.msrb.mxu1 %v2854_v43  ;;  %v3376_v15 = vpop.f32.mrf.mxu0 }
 0x4ec   : > { %3415 = vmatmul.bf16.gmra.mxu0 %v6890_v28  ;;  %3464 = vmatmul.bf16.vlgmr.msrb.gmra.mxu1 %v6892_v3  ;;  %v4212_v28 = vor.u32 %v4362_v58, %v4209_v25  ;;  %v7003_v3 = vpop.f32.mrf.mxu3  ;;  %v2877_v25 = vpop.permute.xlu0 %2876 }
 0x4ed   : > { %v2887_v63 = vpop.permute.xlu1 %2886 }
 0x4f1   : > { %v3378_v54 = vpop.f32.mrf.mxu0 }
 0x4f2   : > { %v3379_v55 = vadd.f32 %v3378_v54, %v2877_v25 }
 0x4f4   : > { %v7017_v52 = vpop.f32.mrf.mxu3  ;;  %v2892_v24 = vpop.permute.xlu0 %2891 }
 0x4f8   : > { %3257 = vmatmul.bf16.gmra.mxu3 %v4272_v40  ;;  %3306 = vmatmul.bf16.gmra.mxu2 %v4212_v28 }
 0x4fc   : > { %3420 = vmatmul.bf16.gmra.mxu0 %v6915_v60  ;;  %3469 = vmatmul.bf16.gmra.mxu1 %v6917_v23  ;;  %v4217_v60 = vld [vmem:[%s7291_s5 + $0x58] sm:$0xf0]  ;;  %v7033_v30 = vpop.f32.mrf.mxu3 }
 0x4fd   : > { %v4220_v23 = vor.u32 %v4364_v7, %v4217_v60  ;;  %v4378_v7 = vld [vmem:[%s7291_s5 + $0xc4] sm:$0xf]  ;;  %v4273_v60 = vld [vmem:[%s7291_s5 + $0xc8] sm:$0xf0] }
 0x4fe   : > { %v7115_v45 = vor.u32 %v4378_v7, %v4273_v60 }
 0x504   : > { %v7035_v48 = vpop.f32.mrf.mxu3 }
 0x508   : > { %3262 = vmatmul.bf16.gmra.mxu3 %v4280_v29  ;;  %3311 = vmatmul.bf16.gmra.mxu2 %v4220_v23 }
 0x50c   : > { %3425 = vmatmul.bf16.gmra.mxu0 %v6950_v1  ;;  %3474 = vmatmul.bf16.gmra.mxu1 %v6952_v31  ;;  %v7049_v1 = vpop.f32.mrf.mxu3  ;;  %v7051_v31 = vpop.f32.mrf.mxu0 }
 0x50d   : > { %v3382_v54 = vadd.f32 %v7051_v31, %v2882_v6 }
 0x514   : > { %v7059_v53 = vpop.f32.mrf.mxu0  ;;  %v7117_v18 = vpop.f32.mrf.mxu3 }
 0x515   : > { %v3384_v31 = vadd.f32 %v7059_v53, %v2887_v63 }
 0x518   : > { %3267 = vmatmul.bf16.gmra.mxu3 %v4288_v57  ;;  %3316 = vmatmul.bf16.gmra.mxu2 %v4228_v42 }
 0x51c   : > { %3430 = vmatmul.bf16.gmra.mxu0 %v4264_v32  ;;  %3479 = vmatmul.bf16.gmra.mxu1 %v4204_v12  ;;  %v7061_v61 = vpop.f32.mrf.mxu0  ;;  %v3377_v32 = vadd.f32 %v3376_v15, %v2872_v0 }
 0x51d   : > { %v3387_v0 = vadd.f32 %v7061_v61, %v2892_v24 }
 0x524   : > { %v7069_v4 = vpop.f32.mrf.mxu0 }
 0x528   : > { %3272 = vmatmul.bf16.gmra.mxu3 %v4296_v22  ;;  %3321 = vmatmul.bf16.gmra.mxu2 %v4236_v47 }
 0x52c   : > { %3435 = vmatmul.bf16.gmra.mxu0 %v4272_v40  ;;  %3484 = vmatmul.bf16.gmra.mxu1 %v4212_v28  ;;  %v7077_v46 = vpop.f32.mrf.mxu0  ;;  %v3201_v40 = vadd.f32 %v6983_v16, %v2877_v25 }
 0x534   : > { %v7084_v49 = vpop.f32.mrf.mxu0 }
 0x538   : > { %3326 = vmatmul.bf16.gmra.mxu2 %v4244_v27 }
 0x53b   : > { %v3287_v35 = vpop.f32.mrf.mxu2 }
 0x53c   : > { %3440 = vmatmul.bf16.gmra.mxu0 %v4280_v29  ;;  %3489 = vmatmul.bf16.gmra.mxu1 %v4220_v23  ;;  %v3288_v12 = vadd.f32 %v3287_v35, %v3199_v50 }
 0x53e   : > { %v3545_v36 = vmax.f32 %v3288_v12, 0.0 }
 0x543   : > { %v3289_v8 = vpop.f32.mrf.mxu2 }
 0x544   : > { %v3290_v51 = vadd.f32 %v3289_v8, %v3201_v40  ;;  %v4380_v8 = vld [vmem:[%s7291_s5 + $0xd4] sm:$0xf] }
 0x546   : > { %v3547_v16 = vmax.f32 %v3290_v51, 0.0  ;;  %v4382_v51 = vld [vmem:[%s7291_s5 + $0xe4] sm:$0xf] }
 0x548   : > { %3331 = vmatmul.bf16.gmra.mxu2 %v4252_v41 }
 0x54b   : > { %v3292_v26 = vpop.f32.mrf.mxu2 }
 0x54c   : > { %3445 = vmatmul.bf16.gmra.mxu0 %v4288_v57  ;;  %3494 = vmatmul.bf16.gmra.mxu1 %v4228_v42  ;;  %v3204_v57 = vadd.f32 %v6999_v9, %v2882_v6  ;;  %v7120_v42 = vpop.f32.mrf.mxu0  ;;  %v3206_v9 = vadd.f32 %v7003_v3, %v2887_v63 }
 0x54e   : > { %v3293_v21 = vadd.f32 %v3292_v26, %v3204_v57 }
 0x553   : > { %v3294_v20 = vpop.f32.mrf.mxu2 }
 0x554   : > { %v7131_v35 = vpop.f32.mrf.mxu0  ;;  %v3295_v19 = vadd.f32 %v3294_v20, %v3206_v9  ;;  %v3209_v20 = vadd.f32 %v7017_v52, %v2892_v24  ;;  %v2897_v52 = vpop.permute.xlu2 %2896 }
 0x555   : > { %v3211_v61 = vadd.f32 %v7033_v30, %v2897_v52  ;;  %v3389_v40 = vadd.f32 %v7069_v4, %v2897_v52 }
 0x556   : > { %v3551_v39 = vmax.f32 %v3295_v19, 0.0 }
 0x558   : > { %3336 = vmatmul.bf16.gmra.mxu2 %v7079_v11 }
 0x55b   : > { %v7082_v37 = vpop.f32.mrf.mxu2 }
 0x55c   : > { %3450 = vmatmul.bf16.gmra.mxu0 %v4296_v22  ;;  %3499 = vmatmul.bf16.gmra.mxu1 %v4236_v47  ;;  %v3549_v22 = vmax.f32 %v3293_v21, 0.0  ;;  %v3298_v50 = vadd.f32 %v7082_v37, %v3209_v20 }
 0x563   : > { %v7092_v56 = vpop.f32.mrf.mxu2 }
 0x568   : > { %3341 = vmatmul.bf16.gmra.mxu2 %v7094_v14 }
 0x569   : > { %v3465_v38 = vpop.f32.mrf.mxu1 }
 0x56a   : > { %v3466_v43 = vadd.f32 %v3465_v38, %v3377_v32  ;;  %v7151_v38 = vpop.f32.mrf.mxu0 }
 0x56b   : > { %v7101_v59 = vpop.f32.mrf.mxu2 }
 0x56c   : > { %v3546_v58 = vmax.f32 %v3466_v43, 0.0  ;;  %3504 = vmatmul.bf16.gmra.mxu1 %v4244_v27  ;;  %v7128_v27 = vpop.f32.mrf.mxu3 }
 0x56e   : > { %v3609_v28 = vpack.c.bf16 %v3546_v58, %v3545_v36  ;;  %v3553_v58 = vmax.f32 %v3298_v50, 0.0 }
 0x570   : > { %3641 = vst [vmem:[%s7104_s18] sm:$0xff] %v3609_v28  ;;  %v3300_v28 = vadd.f32 %v7092_v56, %v3211_v61  ;;  %v2902_v56 = vpop.permute.xlu1 %2901 }
 0x571   : > { %v3467_v44 = vpop.f32.mrf.mxu1  ;;  %v3392_v57 = vadd.f32 %v7077_v46, %v2902_v56 }
 0x572   : > { %v3468_v29 = vadd.f32 %v3467_v44, %v3379_v55  ;;  %v4289_v44 = vld [vmem:[%s7291_s5 + $0xe8] sm:$0xf0]  ;;  %v7168_v30 = vpop.f32.mrf.mxu0  ;;  %v3555_v60 = vmax.f32 %v3300_v28, 0.0 }
 0x573   : > { %v7113_v23 = vpop.f32.mrf.mxu2 }
 0x574   : > { %v3548_v10 = vmax.f32 %v3468_v29, 0.0  ;;  %v7149_v32 = vpop.f32.mrf.mxu3  ;;  %v7170_v29 = vor.u32 %v4382_v51, %v4289_v44 }
 0x576   : > { %v3610_v15 = vpack.c.bf16 %v3548_v10, %v3547_v16  ;;  %v3214_v10 = vadd.f32 %v7035_v48, %v2902_v56 }
 0x578   : > { %3642 = vst [vmem:[%s7104_s18 + $0x8] sm:$0xff] %v3610_v15  ;;  %3346 = vmatmul.bf16.gmra.mxu2 %v7115_v45  ;;  %v3303_v15 = vadd.f32 %v7101_v59, %v3214_v10 }
 0x579   : > { %v3470_v5 = vpop.f32.mrf.mxu1 }
 0x57a   : > { %v3471_v17 = vadd.f32 %v3470_v5, %v3382_v54  ;;  %v3557_v5 = vmax.f32 %v3303_v15, 0.0  ;;  %v7183_v63 = vpop.f32.mrf.mxu0 }
 0x57b   : > { %v7125_v34 = vpop.f32.mrf.mxu2 }
 0x57c   : > { %v3550_v47 = vmax.f32 %v3471_v17, 0.0  ;;  %3509 = vmatmul.bf16.gmra.mxu1 %v4252_v41  ;;  %v4281_v41 = vld [vmem:[%s7291_s5 + $0xd8] sm:$0xf0]  ;;  %v7166_v7 = vpop.f32.mrf.mxu3 }
 0x57d   : > { %v7142_v53 = vor.u32 %v4380_v8, %v4281_v41 }
 0x57e   : > { %v3611_v13 = vpack.c.bf16 %v3550_v47, %v3549_v22  ;;  %v2907_v22 = vpop.permute.xlu0 %2906 }
 0x57f   : > { %v3216_v48 = vadd.f32 %v7049_v1, %v2907_v22  ;;  %v3394_v59 = vadd.f32 %v7084_v49, %v2907_v22  ;;  %v4297_v1 = vld [vmem:[%s7291_s5 + $0xf8] sm:$0xf0] }
 0x580   : > { %3643 = vst [vmem:[%s7104_s18 + $0x10] sm:$0xff] %v3611_v13 }
 0x581   : > { %v3472_v2 = vpop.f32.mrf.mxu1  ;;  %v3305_v13 = vadd.f32 %v7113_v23, %v3216_v48 }
 0x582   : > { %v3473_v3 = vadd.f32 %v3472_v2, %v3384_v31  ;;  %v7202_v24 = vpop.f32.mrf.mxu0 }
 0x583   : > { %v7140_v26 = vpop.f32.mrf.mxu2  ;;  %v3559_v2 = vmax.f32 %v3305_v13, 0.0 }
 0x584   : > { %v3552_v33 = vmax.f32 %v3473_v3, 0.0  ;;  %v7180_v47 = vpop.f32.mrf.mxu3  ;;  %v2912_v3 = vpop.permute.xlu2 %2911 }
 0x585   : > { %v3219_v49 = vadd.f32 %v7117_v18, %v2912_v3  ;;  %v2917_v18 = vpop.permute.xlu1 %2916 }
 0x586   : > { %v3612_v62 = vpack.c.bf16 %v3552_v33, %v3551_v39  ;;  %v3397_v33 = vadd.f32 %v7120_v42, %v2912_v3  ;;  %v2922_v44 = vpop.permute.xlu0 %2921 }
 0x587   : > { %v3308_v20 = vadd.f32 %v7125_v34, %v3219_v49 }
 0x588   : > { %3644 = vst [vmem:[%s7104_s18 + $0x18] sm:$0xff] %v3612_v62  ;;  %3351 = vmatmul.bf16.gmra.mxu2 %v7142_v53 }
 0x589   : > { %v3475_v12 = vpop.f32.mrf.mxu1 }
 0x58a   : > { %v3476_v43 = vadd.f32 %v3475_v12, %v3387_v0  ;;  %v3561_v12 = vmax.f32 %v3308_v20, 0.0 }
 0x58b   : > { %v7153_v36 = vpop.f32.mrf.mxu2 }
 0x58c   : > { %v3554_v25 = vmax.f32 %v3476_v43, 0.0  ;;  %3514 = vmatmul.bf16.gmra.mxu1 %v7079_v11  ;;  %v7199_v39 = vpop.f32.mrf.mxu3 }
 0x58d   : > { %v2932_v48 = vpop.permute.xlu1 %2931 }
 0x58e   : > { %v3613_v37 = vpack.c.bf16 %v3554_v25, %v3553_v58  ;;  %v3221_v58 = vadd.f32 %v7128_v27, %v2917_v18  ;;  %v3399_v25 = vadd.f32 %v7131_v35, %v2917_v18  ;;  %v3402_v27 = vadd.f32 %v7151_v38, %v2922_v44 }
 0x590   : > { %3645 = vst [vmem:[%s7104_s18 + $0x20] sm:$0xff] %v3613_v37  ;;  %v3310_v34 = vadd.f32 %v7140_v26, %v3221_v58  ;;  %v3411_v37 = vpop.f32.mrf.mxu0 }
 0x591   : > { %v3477_v55 = vpop.f32.mrf.mxu1 }
 0x592   : > { %v3478_v11 = vadd.f32 %v3477_v55, %v3389_v40  ;;  %v3563_v55 = vmax.f32 %v3310_v34, 0.0 }
 0x593   : > { %v7172_v16 = vpop.f32.mrf.mxu2 }
 0x594   : > { %v3556_v4 = vmax.f32 %v3478_v11, 0.0  ;;  %v3233_v52 = vpop.f32.mrf.mxu3 }
 0x596   : > { %v3614_v6 = vpack.c.bf16 %v3556_v4, %v3555_v60 }
 0x598   : > { %3646 = vst [vmem:[%s7104_s18 + $0x28] sm:$0xff] %v3614_v6  ;;  %3356 = vmatmul.bf16.gmra.mxu2 %v7170_v29  ;;  %v3413_v56 = vpop.f32.mrf.mxu0 }
 0x599   : > { %v3480_v54 = vpop.f32.mrf.mxu1 }
 0x59a   : > { %v3481_v21 = vadd.f32 %v3480_v54, %v3392_v57  ;;  %v2927_v57 = vpop.permute.xlu2 %2926 }
 0x59b   : > { %v7185_v9 = vpop.f32.mrf.mxu2  ;;  %v3226_v54 = vadd.f32 %v7166_v7, %v2927_v57  ;;  %v3404_v38 = vadd.f32 %v7168_v30, %v2927_v57  ;;  %v3407_v7 = vadd.f32 %v7183_v63, %v2932_v48 }
 0x59c   : > { %v3558_v17 = vmax.f32 %v3481_v21, 0.0  ;;  %3519 = vmatmul.bf16.gmra.mxu1 %v7094_v14  ;;  %v4384_v14 = vld [vmem:[%s7291_s5 + $0xf4] sm:$0xf]  ;;  %v3235_v4 = vpop.f32.mrf.mxu3 }
 0x59d   : > { %v7196_v41 = vor.u32 %v4384_v14, %v4297_v1  ;;  %v3315_v21 = vadd.f32 %v7172_v16, %v3226_v54 }
 0x59e   : > { %v3615_v46 = vpack.c.bf16 %v3558_v17, %v3557_v5 }
 0x59f   : > { %v3567_v17 = vmax.f32 %v3315_v21, 0.0 }
 0x5a0   : > { %3647 = vst [vmem:[%s7104_s18 + $0x30] sm:$0xff] %v3615_v46 }
 0x5a1   : > { %v3482_v31 = vpop.f32.mrf.mxu1 }
 0x5a2   : > { %v3483_v19 = vadd.f32 %v3482_v31, %v3394_v59  ;;  %v3229_v59 = vadd.f32 %v7180_v47, %v2932_v48 }
 0x5a3   : > { %v7207_v62 = vpop.f32.mrf.mxu2 }
 0x5a4   : > { %v3560_v8 = vmax.f32 %v3483_v19, 0.0  ;;  %v3238_v46 = vpop.f32.mrf.mxu3  ;;  %v3318_v14 = vadd.f32 %v7185_v9, %v3229_v59 }
 0x5a6   : > { %v3616_v23 = vpack.c.bf16 %v3560_v8, %v3559_v2  ;;  %v3569_v1 = vmax.f32 %v3318_v14, 0.0  ;;  %v2937_v2 = vpop.permute.xlu0 %2936 }
 0x5a7   : > { %v3231_v8 = vadd.f32 %v7199_v39, %v2937_v2  ;;  %v3409_v49 = vadd.f32 %v7202_v24, %v2937_v2 }
 0x5a8   : > { %3648 = vst [vmem:[%s7104_s18 + $0x38] sm:$0xff] %v3616_v23  ;;  %3361 = vmatmul.bf16.gmra.mxu2 %v7196_v41 }
 0x5a9   : > { %v3485_v0 = vpop.f32.mrf.mxu1  ;;  %v3320_v63 = vadd.f32 %v7207_v62, %v3231_v8 }
 0x5aa   : > { %v3486_v50 = vadd.f32 %v3485_v0, %v3397_v33 }
 0x5ab   : > { %v3322_v28 = vpop.f32.mrf.mxu2  ;;  %v3571_v0 = vmax.f32 %v3320_v63, 0.0 }
 0x5ac   : > { %v3562_v43 = vmax.f32 %v3486_v50, 0.0  ;;  %3524 = vmatmul.bf16.gmra.mxu1 %v7115_v45  ;;  %v3224_v45 = vadd.f32 %v7149_v32, %v2922_v44  ;;  %v3240_v47 = vpop.f32.mrf.mxu3 }
 0x5ae   : > { %v3617_v42 = vpack.c.bf16 %v3562_v43, %v3561_v12  ;;  %v3313_v60 = vadd.f32 %v7153_v36, %v3224_v45  ;;  %v2942_v12 = vpop.permute.xlu2 %2941 }
 0x5af   : > { %v3234_v43 = vadd.f32 %v3233_v52, %v2942_v12  ;;  %v3412_v18 = vadd.f32 %v3411_v37, %v2942_v12 }
 0x5b0   : > { %3649 = vst [vmem:[%s7104_s18 + $0x40] sm:$0xff] %v3617_v42  ;;  %v3565_v10 = vmax.f32 %v3313_v60, 0.0 }
 0x5b1   : > { %v3487_v61 = vpop.f32.mrf.mxu1  ;;  %v3323_v39 = vadd.f32 %v3322_v28, %v3234_v43 }
 0x5b2   : > { %v3488_v40 = vadd.f32 %v3487_v61, %v3399_v25 }
 0x5b3   : > { %v3324_v15 = vpop.f32.mrf.mxu2  ;;  %v3573_v61 = vmax.f32 %v3323_v39, 0.0 }
 0x5b4   : > { %v3564_v51 = vmax.f32 %v3488_v40, 0.0  ;;  %v3243_v58 = vpop.f32.mrf.mxu3  ;;  %v2947_v40 = vpop.permute.xlu1 %2946 }
 0x5b5   : > { %v3414_v44 = vadd.f32 %v3413_v56, %v2947_v40 }
 0x5b6   : > { %v3618_v11 = vpack.c.bf16 %v3564_v51, %v3563_v55  ;;  %v3236_v55 = vadd.f32 %v3235_v4, %v2947_v40 }
 0x5b8   : > { %3650 = vst [vmem:[%s7104_s18 + $0x48] sm:$0xff] %v3618_v11  ;;  %v3325_v52 = vadd.f32 %v3324_v15, %v3236_v55  ;;  %v2957_v15 = vpop.permute.xlu2 %2956 }
 0x5b9   : > { %v3490_v35 = vpop.f32.mrf.mxu1  ;;  %v3241_v21 = vadd.f32 %v3240_v47, %v2957_v15 }
 0x5ba   : > { %v3491_v26 = vadd.f32 %v3490_v35, %v3402_v27  ;;  %v3575_v27 = vmax.f32 %v3325_v52, 0.0  ;;  %v2952_v35 = vpop.permute.xlu0 %2951 }
 0x5bb   : > { %v3327_v31 = vpop.f32.mrf.mxu2 }
 0x5bc   : > { %v3566_v6 = vmax.f32 %v3491_v26, 0.0  ;;  %3529 = vmatmul.bf16.gmra.mxu1 %v7142_v53  ;;  %v3416_v53 = vpop.f32.mrf.mxu0  ;;  %v3245_v28 = vpop.f32.mrf.mxu3 }
 0x5bd   : > { %v3417_v57 = vadd.f32 %v3416_v53, %v2952_v35 }
 0x5be   : > { %v3619_v32 = vpack.c.bf16 %v3566_v6, %v3565_v10  ;;  %v3239_v10 = vadd.f32 %v3238_v46, %v2952_v35 }
 0x5c0   : > { %3651 = vst [vmem:[%s7104_s18 + $0x50] sm:$0xff] %v3619_v32 }
 0x5c1   : > { %v3492_v36 = vpop.f32.mrf.mxu1 }
 0x5c2   : > { %v3493_v5 = vadd.f32 %v3492_v36, %v3404_v38 }
 0x5c3   : > { %v3329_v9 = vpop.f32.mrf.mxu2 }
 0x5c4   : > { %v3568_v22 = vmax.f32 %v3493_v5, 0.0  ;;  %v3418_v23 = vpop.f32.mrf.mxu0  ;;  %v3248_v38 = vpop.f32.mrf.mxu3  ;;  %v3330_v48 = vadd.f32 %v3329_v9, %v3241_v21 }
 0x5c6   : > { %v3620_v13 = vpack.c.bf16 %v3568_v22, %v3567_v17  ;;  %v3419_v22 = vadd.f32 %v3418_v23, %v2957_v15  ;;  %v2967_v23 = vpop.permute.xlu0 %2966 }
 0x5c7   : > { %v3246_v63 = vadd.f32 %v3245_v28, %v2967_v23 }
 0x5c8   : > { %3652 = vst [vmem:[%s7104_s18 + $0x58] sm:$0xff] %v3620_v13  ;;  %v3579_v13 = vmax.f32 %v3330_v48, 0.0 }
 0x5c9   : > { %v3495_v30 = vpop.f32.mrf.mxu1 }
 0x5ca   : > { %v3496_v16 = vadd.f32 %v3495_v30, %v3407_v7 }
 0x5cb   : > { %v3332_v34 = vpop.f32.mrf.mxu2 }
 0x5cc   : > { %v3570_v19 = vmax.f32 %v3496_v16, 0.0  ;;  %3534 = vmatmul.bf16.gmra.mxu1 %v7170_v29  ;;  %v3421_v25 = vpop.f32.mrf.mxu0  ;;  %v3250_v30 = vpop.f32.mrf.mxu3 }
 0x5ce   : > { %v3621_v3 = vpack.c.bf16 %v3570_v19, %v3569_v1 }
 0x5d0   : > { %3653 = vst [vmem:[%s7104_s18 + $0x60] sm:$0xff] %v3621_v3 }
 0x5d1   : > { %v3497_v33 = vpop.f32.mrf.mxu1 }
 0x5d2   : > { %v3498_v20 = vadd.f32 %v3497_v33, %v3409_v49 }
 0x5d3   : > { %v3334_v26 = vpop.f32.mrf.mxu2 }
 0x5d4   : > { %v3572_v50 = vmax.f32 %v3498_v20, 0.0  ;;  %v3423_v11 = vpop.f32.mrf.mxu0  ;;  %v3335_v20 = vadd.f32 %v3334_v26, %v3246_v63 }
 0x5d5   : > { %v3424_v33 = vadd.f32 %v3423_v11, %v2967_v23 }
 0x5d6   : > { %v3622_v29 = vpack.c.bf16 %v3572_v50, %v3571_v0  ;;  %v3253_v0 = vpop.f32.mrf.mxu3 }
 0x5d8   : > { %3654 = vst [vmem:[%s7104_s18 + $0x68] sm:$0xff] %v3622_v29 }
 0x5d9   : > { %v3500_v42 = vpop.f32.mrf.mxu1 }
 0x5da   : > { %v3501_v24 = vadd.f32 %v3500_v42, %v3412_v18  ;;  %v3583_v18 = vmax.f32 %v3335_v20, 0.0 }
 0x5db   : > { %v3337_v17 = vpop.f32.mrf.mxu2 }
 0x5dc   : > { %v3574_v62 = vmax.f32 %v3501_v24, 0.0  ;;  %3539 = vmatmul.bf16.gmra.mxu1 %v7196_v41  ;;  %v3328_v41 = vadd.f32 %v3327_v31, %v3239_v10  ;;  %v3426_v36 = vpop.f32.mrf.mxu0  ;;  %v2962_v31 = vpop.permute.xlu1 %2961 }
 0x5dd   : > { %v3244_v7 = vadd.f32 %v3243_v58, %v2962_v31  ;;  %v3422_v16 = vadd.f32 %v3421_v25, %v2962_v31  ;;  %v2972_v58 = vpop.permute.xlu2 %2971 }
 0x5de   : > { %v3623_v51 = vpack.c.bf16 %v3574_v62, %v3573_v61  ;;  %v3577_v32 = vmax.f32 %v3328_v41, 0.0  ;;  %v3249_v42 = vadd.f32 %v3248_v38, %v2972_v58  ;;  %v3427_v24 = vadd.f32 %v3426_v36, %v2972_v58  ;;  %v3255_v40 = vpop.f32.mrf.mxu3 }
 0x5df   : > { %v3333_v19 = vadd.f32 %v3332_v34, %v3244_v7 }
 0x5e0   : > { %3655 = vst [vmem:[%s7104_s18 + $0x70] sm:$0xff] %v3623_v51  ;;  %v3338_v34 = vadd.f32 %v3337_v17, %v3249_v42 }
 0x5e1   : > { %v3502_v37 = vpop.f32.mrf.mxu1  ;;  %v3581_v47 = vmax.f32 %v3333_v19, 0.0 }
 0x5e2   : > { %v3503_v45 = vadd.f32 %v3502_v37, %v3414_v44  ;;  %v3585_v51 = vmax.f32 %v3338_v34, 0.0 }
 0x5e3   : > { %v3339_v2 = vpop.f32.mrf.mxu2 }
 0x5e4   : > { %v3576_v60 = vmax.f32 %v3503_v45, 0.0  ;;  %v3428_v1 = vpop.f32.mrf.mxu0  ;;  %v2977_v52 = vpop.permute.xlu1 %2976 }
 0x5e5   : > { %v3251_v45 = vadd.f32 %v3250_v30, %v2977_v52  ;;  %v3429_v11 = vadd.f32 %v3428_v1, %v2977_v52  ;;  %v2987_v17 = vpop.permute.xlu2 %2986 }
 0x5e6   : > { %v3624_v6 = vpack.c.bf16 %v3576_v60, %v3575_v27 }
 0x5e7   : > { %v3340_v27 = vadd.f32 %v3339_v2, %v3251_v45 }
 0x5e8   : > { %3656 = vst [vmem:[%s7104_s18 + $0x78] sm:$0xff] %v3624_v6  ;;  %v2982_v6 = vpop.permute.xlu0 %2981 }
 0x5e9   : > { %v3505_v4 = vpop.f32.mrf.mxu1  ;;  %v3587_v26 = vmax.f32 %v3340_v27, 0.0  ;;  %v3254_v41 = vadd.f32 %v3253_v0, %v2982_v6 }
 0x5ea   : > { %v3506_v54 = vadd.f32 %v3505_v4, %v3417_v57  ;;  %v3258_v57 = vpop.f32.mrf.mxu3 }
 0x5eb   : > { %v3342_v29 = vpop.f32.mrf.mxu2 }
 0x5ec   : > { %v3578_v56 = vmax.f32 %v3506_v54, 0.0  ;;  %v3431_v12 = vpop.f32.mrf.mxu0  ;;  %v3343_v15 = vadd.f32 %v3342_v29, %v3254_v41  ;;  %v2992_v1 = vpop.permute.xlu1 %2991 }
 0x5ed   : > { %v3259_v19 = vadd.f32 %v3258_v57, %v2992_v1  ;;  %v3002_v34 = vpop.permute.xlu2 %3001 }
 0x5ee   : > { %v3625_v5 = vpack.c.bf16 %v3578_v56, %v3577_v32  ;;  %v3432_v56 = vadd.f32 %v3431_v12, %v2982_v6  ;;  %v3589_v36 = vmax.f32 %v3343_v15, 0.0 }
 0x5f0   : > { %3657 = vst [vmem:[%s7104_s18 + $0x80] sm:$0xff] %v3625_v5  ;;  %v2997_v0 = vpop.permute.xlu0 %2996 }
 0x5f1   : > { %v3507_v46 = vpop.f32.mrf.mxu1 }
 0x5f2   : > { %v3508_v59 = vadd.f32 %v3507_v46, %v3419_v22  ;;  %v3256_v22 = vadd.f32 %v3255_v40, %v2987_v17  ;;  %v3260_v46 = vpop.f32.mrf.mxu3 }
 0x5f3   : > { %v3344_v37 = vpop.f32.mrf.mxu2 }
 0x5f4   : > { %v3580_v53 = vmax.f32 %v3508_v59, 0.0  ;;  %v3433_v55 = vpop.f32.mrf.mxu0 }
 0x5f5   : > { %v3434_v59 = vadd.f32 %v3433_v55, %v2987_v17 }
 0x5f6   : > { %v3626_v14 = vpack.c.bf16 %v3580_v53, %v3579_v13  ;;  %v3345_v53 = vadd.f32 %v3344_v37, %v3256_v22 }
 0x5f8   : > { %3658 = vst [vmem:[%s7104_s18 + $0x88] sm:$0xff] %v3626_v14  ;;  %v3591_v30 = vmax.f32 %v3345_v53, 0.0 }
 0x5f9   : > { %v3510_v8 = vpop.f32.mrf.mxu1 }
 0x5fa   : > { %v3511_v3 = vadd.f32 %v3510_v8, %v3422_v16 }
 0x5fb   : > { %v3347_v32 = vpop.f32.mrf.mxu2 }
 0x5fc   : > { %v3582_v49 = vmax.f32 %v3511_v3, 0.0  ;;  %v3436_v4 = vpop.f32.mrf.mxu0  ;;  %v3348_v3 = vadd.f32 %v3347_v32, %v3259_v19  ;;  %v3012_v32 = vpop.permute.xlu0 %3011 }
 0x5fd   : > { %v3437_v8 = vadd.f32 %v3436_v4, %v2992_v1 }
 0x5fe   : > { %v3627_v9 = vpack.c.bf16 %v3582_v49, %v3581_v47  ;;  %v3263_v47 = vpop.f32.mrf.mxu3 }
 0x600   : > { %3659 = vst [vmem:[%s7104_s18 + $0x90] sm:$0xff] %v3627_v9 }
 0x601   : > { %v3512_v50 = vpop.f32.mrf.mxu1 }
 0x602   : > { %v3513_v43 = vadd.f32 %v3512_v50, %v3424_v33  ;;  %v3593_v33 = vmax.f32 %v3348_v3, 0.0  ;;  %v3261_v50 = vadd.f32 %v3260_v46, %v2997_v0 }
 0x603   : > { %v3349_v31 = vpop.f32.mrf.mxu2 }
 0x604   : > { %v3584_v39 = vmax.f32 %v3513_v43, 0.0  ;;  %v3438_v13 = vpop.f32.mrf.mxu0  ;;  %v3350_v29 = vadd.f32 %v3349_v31, %v3261_v50  ;;  %v3027_v50 = vpop.permute.xlu0 %3026 }
 0x605   : > { %v3439_v43 = vadd.f32 %v3438_v13, %v2997_v0  ;;  %v3017_v13 = vpop.permute.xlu2 %3016 }
 0x606   : > { %v3628_v25 = vpack.c.bf16 %v3584_v39, %v3583_v18  ;;  %v3265_v58 = vpop.f32.mrf.mxu3 }
 0x608   : > { %3660 = vst [vmem:[%s7104_s18 + $0x98] sm:$0xff] %v3628_v25  ;;  %v3595_v25 = vmax.f32 %v3350_v29, 0.0 }
 0x609   : > { %v3515_v61 = vpop.f32.mrf.mxu1 }
 0x60a   : > { %v3516_v62 = vadd.f32 %v3515_v61, %v3427_v24 }
 0x60b   : > { %v3352_v9 = vpop.f32.mrf.mxu2 }
 0x60c   : > { %v3586_v44 = vmax.f32 %v3516_v62, 0.0  ;;  %v3441_v23 = vpop.f32.mrf.mxu0  ;;  %v3264_v62 = vadd.f32 %v3263_v47, %v3002_v34 }
 0x60d   : > { %v3442_v55 = vadd.f32 %v3441_v23, %v3002_v34 }
 0x60e   : > { %v3629_v28 = vpack.c.bf16 %v3586_v44, %v3585_v51  ;;  %v3353_v51 = vadd.f32 %v3352_v9, %v3264_v62 }
 0x610   : > { %3661 = vst [vmem:[%s7104_s18 + $0xa0] sm:$0xff] %v3629_v28  ;;  %v3597_v37 = vmax.f32 %v3353_v51, 0.0  ;;  %v3007_v28 = vpop.permute.xlu1 %3006 }
 0x611   : > { %v3517_v60 = vpop.f32.mrf.mxu1  ;;  %v3266_v27 = vadd.f32 %v3265_v58, %v3007_v28 }
 0x612   : > { %v3518_v35 = vadd.f32 %v3517_v60, %v3429_v11  ;;  %v3268_v11 = vpop.f32.mrf.mxu3 }
 0x613   : > { %v3354_v61 = vpop.f32.mrf.mxu2 }
 0x614   : > { %v3588_v10 = vmax.f32 %v3518_v35, 0.0  ;;  %v3443_v42 = vpop.f32.mrf.mxu0  ;;  %v3355_v6 = vadd.f32 %v3354_v61, %v3266_v27 }
 0x616   : > { %v3630_v54 = vpack.c.bf16 %v3588_v10, %v3587_v26  ;;  %v3444_v10 = vadd.f32 %v3443_v42, %v3007_v28  ;;  %v3599_v4 = vmax.f32 %v3355_v6, 0.0 }
 0x618   : > { %3662 = vst [vmem:[%s7104_s18 + $0xa8] sm:$0xff] %v3630_v54  ;;  %v3022_v47 = vpop.permute.xlu1 %3021 }
 0x619   : > { %v3520_v38 = vpop.f32.mrf.mxu1 }
 0x61a   : > { %v3521_v21 = vadd.f32 %v3520_v38, %v3432_v56  ;;  %v3269_v56 = vadd.f32 %v3268_v11, %v3012_v32  ;;  %v3270_v38 = vpop.f32.mrf.mxu3 }
 0x61b   : > { %v3357_v26 = vpop.f32.mrf.mxu2  ;;  %v3271_v53 = vadd.f32 %v3270_v38, %v3017_v13 }
 0x61c   : > { %v3590_v5 = vmax.f32 %v3521_v21, 0.0  ;;  %v3446_v60 = vpop.f32.mrf.mxu0 }
 0x61d   : > { %v3447_v21 = vadd.f32 %v3446_v60, %v3012_v32 }
 0x61e   : > { %v3631_v48 = vpack.c.bf16 %v3590_v5, %v3589_v36  ;;  %v3358_v5 = vadd.f32 %v3357_v26, %v3269_v56 }
 0x620   : > { %3663 = vst [vmem:[%s7104_s18 + $0xb0] sm:$0xff] %v3631_v48  ;;  %v3601_v46 = vmax.f32 %v3358_v5, 0.0 }
 0x621   : > { %v3522_v7 = vpop.f32.mrf.mxu1 }
 0x622   : > { %v3523_v14 = vadd.f32 %v3522_v7, %v3434_v59 }
 0x623   : > { %v3359_v17 = vpop.f32.mrf.mxu2 }
 0x624   : > { %v3592_v16 = vmax.f32 %v3523_v14, 0.0  ;;  %v3448_v36 = vpop.f32.mrf.mxu0  ;;  %v3360_v14 = vadd.f32 %v3359_v17, %v3271_v53 }
 0x625   : > { %v3449_v7 = vadd.f32 %v3448_v36, %v3017_v13 }
 0x626   : > { %v3632_v2 = vpack.c.bf16 %v3592_v16, %v3591_v30  ;;  %v3273_v30 = vpop.f32.mrf.mxu3 }
 0x628   : > { %3664 = vst [vmem:[%s7104_s18 + $0xb8] sm:$0xff] %v3632_v2 }
 0x629   : > { %v3525_v49 = vpop.f32.mrf.mxu1 }
 0x62a   : > { %v3526_v63 = vadd.f32 %v3525_v49, %v3437_v8  ;;  %v3603_v8 = vmax.f32 %v3360_v14, 0.0  ;;  %v3274_v49 = vadd.f32 %v3273_v30, %v3022_v47 }
 0x62b   : > { %v3362_v2 = vpop.f32.mrf.mxu2 }
 0x62c   : > { %v3594_v20 = vmax.f32 %v3526_v63, 0.0  ;;  %v3451_v19 = vpop.f32.mrf.mxu0  ;;  %v3363_v9 = vadd.f32 %v3362_v2, %v3274_v49 }
 0x62d   : > { %v3452_v63 = vadd.f32 %v3451_v19, %v3022_v47 }
 0x62e   : > { %v3633_v12 = vpack.c.bf16 %v3594_v20, %v3593_v33  ;;  %v3275_v0 = vpop.f32.mrf.mxu3 }
 0x630   : > { %3665 = vst [vmem:[%s7104_s18 + $0xc0] sm:$0xff] %v3633_v12  ;;  %v3605_v12 = vmax.f32 %v3363_v9, 0.0 }
 0x631   : > { %v3527_v18 = vpop.f32.mrf.mxu1 }
 0x632   : > { %v3528_v39 = vadd.f32 %v3527_v18, %v3439_v43 }
 0x633   : > { %v3364_v18 = vpop.f32.mrf.mxu2 }
 0x634   : > { %v3596_v24 = vmax.f32 %v3528_v39, 0.0  ;;  %v3453_v29 = vpop.f32.mrf.mxu0  ;;  %v3276_v39 = vadd.f32 %v3275_v0, %v3027_v50 }
 0x635   : > { %v3454_v42 = vadd.f32 %v3453_v29, %v3027_v50 }
 0x636   : > { %v3634_v40 = vpack.c.bf16 %v3596_v24, %v3595_v25  ;;  %v3365_v25 = vadd.f32 %v3364_v18, %v3276_v39 }
 0x638   : > { %3666 = vst [vmem:[%s7104_s18 + $0xc8] sm:$0xff] %v3634_v40  ;;  %v3607_v61 = vmax.f32 %v3365_v25, 0.0 }
 0x639   : > { %v3530_v44 = vpop.f32.mrf.mxu1 }
 0x63a   : > { %v3531_v52 = vadd.f32 %v3530_v44, %v3442_v55 }
 0x63c   : > { %v3598_v45 = vmax.f32 %v3531_v52, 0.0 }
 0x63e   : > { %v3635_v35 = vpack.c.bf16 %v3598_v45, %v3597_v37 }
 0x640   : > { %3667 = vst [vmem:[%s7104_s18 + $0xd0] sm:$0xff] %v3635_v35 }
 0x641   : > { %v3532_v57 = vpop.f32.mrf.mxu1 }
 0x642   : > { %v3533_v41 = vadd.f32 %v3532_v57, %v3444_v10 }
 0x644   : > { %v3600_v54 = vmax.f32 %v3533_v41, 0.0 }
 0x646   : > { %v3636_v15 = vpack.c.bf16 %v3600_v54, %v3599_v4 }
 0x648   : > { %3668 = vst [vmem:[%s7104_s18 + $0xd8] sm:$0xff] %v3636_v15 }
 0x649   : > { %v3535_v22 = vpop.f32.mrf.mxu1 }
 0x64a   : > { %v3536_v48 = vadd.f32 %v3535_v22, %v3447_v21 }
 0x64c   : > { %v3602_v59 = vmax.f32 %v3536_v48, 0.0 }
 0x64e   : > { %v3637_v31 = vpack.c.bf16 %v3602_v59, %v3601_v46 }
 0x650   : > { %3669 = vst [vmem:[%s7104_s18 + $0xe0] sm:$0xff] %v3637_v31 }
 0x651   : > { %v3537_v16 = vpop.f32.mrf.mxu1 }
 0x652   : > { %v3538_v1 = vadd.f32 %v3537_v16, %v3449_v7 }
 0x654   : > { %v3604_v3 = vmax.f32 %v3538_v1, 0.0 }
 0x656   : > { %v3638_v23 = vpack.c.bf16 %v3604_v3, %v3603_v8 }
 0x658   : > { %3670 = vst [vmem:[%s7104_s18 + $0xe8] sm:$0xff] %v3638_v23 }
 0x659   : > { %v3540_v33 = vpop.f32.mrf.mxu1 }
 0x65a   : > { %v3541_v20 = vadd.f32 %v3540_v33, %v3452_v63 }
 0x65c   : > { %v3606_v43 = vmax.f32 %v3541_v20, 0.0 }
 0x65e   : > { %v3639_v58 = vpack.c.bf16 %v3606_v43, %v3605_v12 }
 0x660   : > { %3671 = vst [vmem:[%s7104_s18 + $0xf0] sm:$0xff] %v3639_v58 }
 0x661   : > { %v3542_v24 = vpop.f32.mrf.mxu1 }
 0x662   : > { %v3543_v34 = vadd.f32 %v3542_v24, %v3454_v42 }
 0x664   : > { %v3608_v62 = vmax.f32 %v3543_v34, 0.0 }
 0x666   : > { %v3640_v40 = vpack.c.bf16 %v3608_v62, %v3607_v61 }
 0x668   : > { %3672 = vst [vmem:[%s7104_s18 + $0xf8] sm:$0xff] %v3640_v40 }
 0x669   : > { %4540 = shalt.err (!%p4537_p3)
}
 0x66a   : > { %s4578_s13 = smov 128   ;;  %s4579_s18 = smov 8  }
 0x66b   : > { %4468 = dma.vmem_to_hbm [thread:$0]  (%p4663_p5), %s3687_s12, 4096, %s3689_s17, %s3674_s9, %s4578_s13, %s4578_s13, %s4579_s18  }
 0x66c PF: > { %p4474_p4 = scmp.ge.s32.totalorder %s4575_s30, 2  ;;  %s3703_s26 = sand.u32 1, %s4563_s27  }
 0x66d   : > { %s3704_s10 = scalar_lea.sflag [#allocation3], %s3703_s26 }
 0x66e   : > { %p4471_p7 = pnand %p4474_p4, %p4667_p6 }
 0x670   : > { %p4472_p8 = pneg %p4471_p7 }
 0x672   : > { %4558 = dma.done.wait (%p4472_p8), %s3704_s10, 4096  }
 0x673   : > { %4560 = vsyncadd (%p4472_p8), %s3704_s10, 4294963200  ;;  %p18_p9 = scmp.ge.s32.totalorder %s4650_s11, 4   ;;  %s7478_s27 = smov %s4567_s28 }
 0x674   : > { %s7479_s28 = smov %s4571_s29  ;;  %s7480_s29 = smov %s4661_s14 }
 0x675   : > { %s7481_s30 = smov %s4650_s11  ;;  %20 = sbr.rel (!%p18_p9) target bundleno = 3 (0x3), region = 87 }
 0x67a   :  { %3710 = vsyncpa [#allocation3], 1 }
 0x67b   :  { %3712 = vsyncpa [#allocation3 + $0x1], 1 }

</bundles_post_ra>
